<compile_context>
chip_gen: v5e
topology: v5e:2x2
jax: 0.10.0
libtpu: 0.0.40
codegen_flags: <defaults>
</compile_context>

<pallas_src>
import functools

import jax
import jax.numpy as jnp
from jax import lax
from jax.experimental import pallas as pl
from jax.experimental.pallas import tpu as pltpu

# Widths hard-coded by the PyTorch module.
C1 = 256          # conv1 out channels
C2 = 128          # conv2 out channels == GRU input size
GH = 64           # GRU hidden size per direction (bi-GRU output = 2*GH = 128)
K1, K2 = 5, 3     # conv kernel sizes
NUM_CLASSES = 2
BN_EPS = 1e-5


def _sigmoid(x):
    # tanh form: a single EUP op instead of exp followed by a divide; the GRU step is a
    # short serial chain so its latency multiplies by T.
    return 0.5 * (jnp.tanh(0.5 * x) + 1.0)


def _crnn_kernel(hs_ref,                                    # (T*B, H) bf16, time-major rows t*B+b
                 w1_ref, s1_ref, bias1_ref,                 # conv1 (bf16) + folded BN1 (+ conv bias)
                 w2_ref, s2_ref, bias2_ref,                 # conv2 (bf16) + folded BN2 (+ conv bias)
                 wihf_ref, wihb_ref, bihf_ref, bihb_ref,    # GRU input->hidden (b_ih + b_h{r,z} folded)
                 whhf_ref, whhb_ref, bhnf_ref, bhnb_ref,    # GRU hidden->hidden, + n-gate hidden bias
                 watt_ref, batt_ref,                        # attention Linear(128, 1)
                 wfc1_ref, bfc1_ref, wfc2_ref, bfc2_ref,    # fc1 / fc2
                 out_ref,                                   # (B, NUM_CLASSES)
                 pad1_ref, pad2_ref, gxf_ref, gxb_ref, fwd_ref, bwd_ref):
    f32 = jnp.float32
    T, B, _ = fwd_ref.shape
    TB = T * B
    H = hs_ref.shape[1]
    P1, P2 = K1 // 2, K2 // 2

    # ---------------- conv1 (k=5, p=2) + folded BN1 + ReLU ----------------
    # Zero only the halo rows; the interior is fully overwritten with the input.
    pad1_ref[pl.ds(0, P1 * B), :] = jnp.zeros((P1 * B, H), pad1_ref.dtype)
    pad1_ref[pl.ds((P1 + T) * B, P1 * B), :] = jnp.zeros((P1 * B, H), pad1_ref.dtype)
    pad1_ref[pl.ds(P1 * B, TB), :] = hs_ref[...]
    acc1 = jnp.dot(pad1_ref[pl.ds(0, TB), :], w1_ref[0], preferred_element_type=f32)
    for k in range(1, K1):                                  # conv as K shifted row-slice matmuls
        acc1 = acc1 + jnp.dot(pad1_ref[pl.ds(k * B, TB), :], w1_ref[k],
                              preferred_element_type=f32)
    y1 = jnp.maximum(acc1 * s1_ref[...] + bias1_ref[...], 0.0)          # (T*B, C1) f32

    # ---------------- conv2 (k=3, p=1) + folded BN2 + ReLU ----------------
    pad2_ref[pl.ds(0, P2 * B), :] = jnp.zeros((P2 * B, C1), pad2_ref.dtype)
    pad2_ref[pl.ds((P2 + T) * B, P2 * B), :] = jnp.zeros((P2 * B, C1), pad2_ref.dtype)
    pad2_ref[pl.ds(P2 * B, TB), :] = y1.astype(pad2_ref.dtype)
    acc2 = jnp.dot(pad2_ref[pl.ds(0, TB), :], w2_ref[0], preferred_element_type=f32)
    for k in range(1, K2):
        acc2 = acc2 + jnp.dot(pad2_ref[pl.ds(k * B, TB), :], w2_ref[k],
                              preferred_element_type=f32)
    y2 = jnp.maximum(acc2 * s2_ref[...] + bias2_ref[...], 0.0)          # (T*B, C2) f32

    # ---------------- GRU input gates hoisted out of the recurrence ----------------
    # One big MXU matmul per direction: (T*B, C2) @ (C2, 3*GH); b_ih (+ b_hr, b_hz) folded in.
    gxf_ref[...] = (jnp.dot(y2, wihf_ref[...], preferred_element_type=f32)
                    + bihf_ref[...]).reshape(T, B, 3 * GH)
    gxb_ref[...] = (jnp.dot(y2, wihb_ref[...], preferred_element_type=f32)
                    + bihb_ref[...]).reshape(T, B, 3 * GH)

    # ---------------- bidirectional GRU (PyTorch gate order r, z, n) ----------------
    # Both directions interleaved in one loop (two independent chains -> ILP); one fused
    # (B, GH) @ (GH, 3*GH) recurrent matmul per direction per step.  r/z hidden biases were
    # folded into the hoisted input gates; only the n-gate hidden bias remains here.
    whh_f = whhf_ref[...]
    whh_b = whhb_ref[...]
    bhn_f = bhnf_ref[...]
    bhn_b = bhnb_ref[...]

    def step(i, carry):
        h_f, h_b = carry
        tb = T - 1 - i
        gx_f = gxf_ref[i]                                   # (B, 3*GH) precomputed x-gates
        gx_b = gxb_ref[tb]
        gh_f = jnp.dot(h_f, whh_f, preferred_element_type=f32)
        gh_b = jnp.dot(h_b, whh_b, preferred_element_type=f32)
        rz_f = _sigmoid(gx_f[:, :2 * GH] + gh_f[:, :2 * GH])
        rz_b = _sigmoid(gx_b[:, :2 * GH] + gh_b[:, :2 * GH])
        n_f = jnp.tanh(gx_f[:, 2 * GH:] + rz_f[:, :GH] * (gh_f[:, 2 * GH:] + bhn_f))
        n_b = jnp.tanh(gx_b[:, 2 * GH:] + rz_b[:, :GH] * (gh_b[:, 2 * GH:] + bhn_b))
        z_f = rz_f[:, GH:]
        z_b = rz_b[:, GH:]
        h_f = n_f + z_f * (h_f - n_f)                       # == (1-z)*n + z*h
        h_b = n_b + z_b * (h_b - n_b)
        fwd_ref[i] = h_f
        bwd_ref[tb] = h_b
        return h_f, h_b

    h0 = jnp.zeros((B, GH), f32)
    lax.fori_loop(0, T, step, (h0, h0))

    gru_out = jnp.concatenate([fwd_ref[...], bwd_ref[...]], axis=-1)    # (T, B, 2*GH)

    # ---------------- attention pooling (softmax over time == PyTorch dim=1) ----------------
    att = jnp.sum(gru_out * watt_ref[...], axis=-1, keepdims=True) + batt_ref[...]
    att = att - jnp.max(att, axis=0, keepdims=True)
    e = jnp.exp(att)
    w = e / jnp.sum(e, axis=0, keepdims=True)
    pooled = jnp.sum(gru_out * w, axis=0)                               # (B, 2*GH)

    # ---------------- fc1 + ReLU + dropout(eval identity) + fc2 ----------------
    # TODO(synk): nn.Dropout(0.3) is identity at inference; training-mode RNG masking not implemented.
    z1 = jnp.maximum(jnp.dot(pooled, wfc1_ref[...], preferred_element_type=f32)
                     + bfc1_ref[...], 0.0)
    out_ref[...] = jnp.dot(z1, wfc2_ref[...], preferred_element_type=f32) + bfc2_ref[...]


def wav2vec_crnn_forward(hidden_states, params):
    """hidden_states: (B, T, H) float32 -- wav2vec2 `last_hidden_state`."""
    B, T, H = hidden_states.shape
    bf16 = jnp.bfloat16
    f32 = jnp.float32

    # Time-major, flattened to lane-dense 2-D rows (t*B + b); bf16 halves HBM/VMEM traffic
    # of the widest tensor and feeds the MXU at full bf16 rate (accumulation stays f32).
    hs_tm = jnp.transpose(hidden_states, (1, 0, 2)).reshape(T * B, H).astype(bf16)

    # Fold the conv bias into the folded-BN affine:  relu((acc+b)*s+be) == relu(acc*s + (b*s+be)).
    bias1 = params['b1'] * params['s1'] + params['be1']
    bias2 = params['b2'] * params['s2'] + params['be2']

    # Concatenate the r,z,n GRU gates into single (in, 3*GH) matrices per direction so the
    # recurrence does one matmul per direction per step and the input part is precomputed.
    def cat_gates(w3):          # (3, I, O) -> (I, 3*O), column blocks [r | z | n]
        return jnp.transpose(w3, (1, 0, 2)).reshape(w3.shape[1], 3 * w3.shape[2])

    wih_f, wih_b = cat_gates(params['wih'][0]), cat_gates(params['wih'][1])
    whh_f, whh_b = cat_gates(params['whh'][0]), cat_gates(params['whh'][1])

    # Fold the r/z hidden biases into the hoisted input-gate bias; keep only the n-gate
    # hidden bias (it must stay inside the r*(W_hn h + b_hn) term of the recurrence).
    def fold_bias(bih3, bhh3):  # (3, GH), (3, GH) -> (1, 3*GH), (1, GH)
        comb = jnp.concatenate([bih3[0] + bhh3[0], bih3[1] + bhh3[1], bih3[2]])
        return comb.reshape(1, 3 * GH).astype(f32), bhh3[2].reshape(1, GH).astype(f32)

    bih_f, bhn_f = fold_bias(params['bih'][0], params['bhh'][0])
    bih_b, bhn_b = fold_bias(params['bih'][1], params['bhh'][1])

    inputs = (hs_tm,
              params['w1'].astype(bf16), params['s1'], bias1,
              params['w2'].astype(bf16), params['s2'], bias2,
              wih_f, wih_b, bih_f, bih_b,
              whh_f, whh_b, bhn_f, bhn_b,
              params['watt'], params['batt'],
              params['wfc1'], params['bfc1'], params['wfc2'], params['bfc2'])

    def full_spec(x):
        nd = x.ndim
        return pl.BlockSpec(x.shape, lambda i, _nd=nd: (0,) * _nd)

    in_specs = [full_spec(x) for x in inputs]
    out_spec = pl.BlockSpec((B, NUM_CLASSES), lambda i: (0, 0))

    scratch_shapes = [
        pltpu.VMEM(((T + K1 - 1) * B, H), bf16),        # zero-halo padded conv1 input
        pltpu.VMEM(((T + K2 - 1) * B, C1), bf16),       # zero-halo padded conv2 input
        pltpu.VMEM((T, B, 3 * GH), jnp.float32),        # precomputed fwd input gates (x@Wih + bias)
        pltpu.VMEM((T, B, 3 * GH), jnp.float32),        # precomputed bwd input gates
        pltpu.VMEM((T, B, GH), jnp.float32),            # forward GRU outputs
        pltpu.VMEM((T, B, GH), jnp.float32),            # backward GRU outputs
    ]

    # Explicit VMEM budget (default scoped limit is only 16 MiB on v5e, 32 MiB on v6e/v7x).
    # TODO(synk): real wav2vec shapes (H=768, T~500) need a T-tiled conv grid / split
    # pallas_calls to fit v7x's 64 MiB VMEM; monolithic residency is fine at these shapes.
    def _nbytes(a):
        return int(a.size) * a.dtype.itemsize

    sub = max(B, 8)   # sublane padding of the (T, B, .) GRU scratch buffers
    scratch_bytes = ((T + K1 - 1) * B * H + (T + K2 - 1) * B * C1) * 2 \
        + (2 * T * sub * 3 * GH + 2 * T * sub * GH) * 4
    approx = 2 * sum(_nbytes(a) for a in inputs) + scratch_bytes + B * NUM_CLASSES * 4
    vmem_limit = int(min(max(4 * approx, 32 * 1024 * 1024), 64 * 1024 * 1024))

    return pl.pallas_call(
        _crnn_kernel,
        out_shape=jax.ShapeDtypeStruct((B, NUM_CLASSES), jnp.float32),
        grid_spec=pltpu.PrefetchScalarGridSpec(
            num_scalar_prefetch=0,
            grid=(1,),
            in_specs=in_specs,
            out_specs=out_spec,
            scratch_shapes=scratch_shapes),
        compiler_params=pltpu.CompilerParams(
            dimension_semantics=("arbitrary",),
            vmem_limit_bytes=vmem_limit),
    )(*inputs)


def init_params(key, hidden_size):
    """Deterministic synthetic parameters (shapes follow the PyTorch module's __init__)."""
    ks = jax.random.split(key, 22)

    def nrm(k, shape, scale=0.1):
        return (scale * jax.random.normal(k, shape)).astype(jnp.float32)

    def unif(k, shape, lo=0.5, hi=1.5):
        return jax.random.uniform(k, shape, jnp.float32, lo, hi)

    p = {}
    # conv1: PyTorch weight is (C1, H, K1); stored here as (K1, H, C1) for per-tap matmuls.
    p['w1'] = nrm(ks[0], (K1, hidden_size, C1))
    p['b1'] = nrm(ks[1], (1, C1))
    g1, be1, m1, v1 = unif(ks[2], (1, C1)), nrm(ks[3], (1, C1)), nrm(ks[4], (1, C1)), unif(ks[5], (1, C1))
    p['s1'] = g1 / jnp.sqrt(v1 + BN_EPS)          # folded eval-mode BatchNorm1d(256)
    p['be1'] = be1 - m1 * p['s1']
    # conv2: PyTorch (C2, C1, K2) -> (K2, C1, C2)
    p['w2'] = nrm(ks[6], (K2, C1, C2))
    p['b2'] = nrm(ks[7], (1, C2))
    g2, be2, m2, v2 = unif(ks[8], (1, C2)), nrm(ks[9], (1, C2)), nrm(ks[10], (1, C2)), unif(ks[11], (1, C2))
    p['s2'] = g2 / jnp.sqrt(v2 + BN_EPS)          # folded eval-mode BatchNorm1d(128)
    p['be2'] = be2 - m2 * p['s2']
    # bi-GRU: PyTorch weight_ih_l0{,_reverse} is (3*GH, C2) with gate order r,z,n;
    # stored here pre-transposed per (direction, gate): (2, 3, C2, GH) / (2, 3, GH, GH).
    p['wih'] = nrm(ks[12], (2, 3, C2, GH))
    p['whh'] = nrm(ks[13], (2, 3, GH, GH))
    p['bih'] = nrm(ks[14], (2, 3, GH))
    p['bhh'] = nrm(ks[15], (2, 3, GH))
    # attention Linear(128, 1): weight (1, 128) stored as (1, 1, 2*GH) for broadcasting.
    p['watt'] = nrm(ks[16], (1, 1, 2 * GH))
    p['batt'] = nrm(ks[17], (1, 1))
    # fc1 / fc2 (stored transposed: (in, out)).
    p['wfc1'] = nrm(ks[18], (2 * GH, GH))
    p['bfc1'] = nrm(ks[19], (1, GH))
    p['wfc2'] = nrm(ks[20], (GH, NUM_CLASSES))
    p['bfc2'] = nrm(ks[21], (1, NUM_CLASSES))
    return p


def reference_forward(hs, p, conv_dtype=jnp.float32):
    """Pure-JAX reference mirroring the PyTorch forward (batch-major, eval mode).

    conv_dtype=float32   -> exact PyTorch-style f32 math.
    conv_dtype=bfloat16  -> mirrors the kernel's deliberate bf16 conv quantization
                            (f32 accumulation) so the kernel can be checked tightly.
    """
    B, T, H = hs.shape
    f32 = jnp.float32
    hp = lax.Precision.HIGHEST
    mm = functools.partial(jnp.dot, precision=hp)

    def conv_bn_relu(x, w, b, s, be, K):
        pad = jnp.pad(x, ((0, 0), (K // 2, K // 2), (0, 0))).astype(conv_dtype)
        wq = w.astype(conv_dtype)
        acc = sum(jnp.einsum('btc,cd->btd', pad[:, k:k + T, :], wq[k],
                             precision=hp, preferred_element_type=f32)
                  for k in range(K))
        return jnp.maximum((acc + b) * s + be, 0.0)

    y1 = conv_bn_relu(hs, p['w1'], p['b1'], p['s1'], p['be1'], K1)       # (B, T, C1)
    y2 = conv_bn_relu(y1, p['w2'], p['b2'], p['s2'], p['be2'], K2)       # (B, T, C2)

    x_tm = jnp.transpose(y2, (1, 0, 2))                                  # (T, B, C2)

    def gru_dir(xseq, d):
        wih, whh, bih, bhh = p['wih'][d], p['whh'][d], p['bih'][d], p['bhh'][d]

        def step(h, x_t):
            r = jax.nn.sigmoid(mm(x_t, wih[0]) + bih[0] + mm(h, whh[0]) + bhh[0])
            z = jax.nn.sigmoid(mm(x_t, wih[1]) + bih[1] + mm(h, whh[1]) + bhh[1])
            n = jnp.tanh(mm(x_t, wih[2]) + bih[2] + r * (mm(h, whh[2]) + bhh[2]))
            h_new = (1.0 - z) * n + z * h
            return h_new, h_new

        _, ys = lax.scan(step, jnp.zeros((xseq.shape[1], GH), f32), xseq)
        return ys

    fwd = gru_dir(x_tm, 0)
    bwd = gru_dir(x_tm[::-1], 1)[::-1]
    gru_out = jnp.transpose(jnp.concatenate([fwd, bwd], axis=-1), (1, 0, 2))   # (B, T, 2*GH)

    att = jnp.sum(gru_out * p['watt'], axis=-1, keepdims=True) + p['batt']
    w = jax.nn.softmax(att, axis=1)
    pooled = jnp.sum(gru_out * w, axis=1)

    z1 = jnp.maximum(mm(pooled, p['wfc1']) + p['bfc1'], 0.0)
    return mm(z1, p['wfc2']) + p['bfc2']


if __name__ == "__main__":
    B, T, H = 2, 16, 32   # batch, sequence length, synthetic wav2vec hidden size
    key = jax.random.PRNGKey(0)
    k_params, k_x = jax.random.split(key)
    params = init_params(k_params, H)

    # TODO(synk): the pretrained Wav2Vec2Model backbone is not translated; its
    # `last_hidden_state` (B, T, hidden) is synthesized here as the kernel input.
    hidden_states = jax.random.normal(k_x, (B, T, H), jnp.float32)

    logits = jax.block_until_ready(wav2vec_crnn_forward(hidden_states, params))

    ref_q = reference_forward(hidden_states, params, conv_dtype=jnp.bfloat16)   # matches kernel quantization
    ref_f = reference_forward(hidden_states, params, conv_dtype=jnp.float32)    # full-f32 PyTorch-style math

    assert logits.shape == (B, NUM_CLASSES)
    err_q = float(jnp.max(jnp.abs(logits - ref_q)))
    err_f = float(jnp.max(jnp.abs(logits - ref_f)))
    assert err_q < 2e-3, f"max abs error vs bf16-conv reference {err_q}"
    assert err_f < 5e-2, f"max abs error vs f32 reference {err_f}"     # bf16 conv quantization headroom
    print("KERNEL_OK")
</pallas_src>

<mosaic_0001>
module attributes {stable_mosaic.version = 11 : i64} {
  func.func @_crnn_kernel(%arg0: i32, %arg1: memref<32x32xbf16, #tpu.memory_space<vmem>>, %arg2: memref<5x32x256xbf16, #tpu.memory_space<vmem>>, %arg3: memref<1x256xf32, #tpu.memory_space<vmem>>, %arg4: memref<1x256xf32, #tpu.memory_space<vmem>>, %arg5: memref<3x256x128xbf16, #tpu.memory_space<vmem>>, %arg6: memref<1x128xf32, #tpu.memory_space<vmem>>, %arg7: memref<1x128xf32, #tpu.memory_space<vmem>>, %arg8: memref<128x192xf32, #tpu.memory_space<vmem>>, %arg9: memref<128x192xf32, #tpu.memory_space<vmem>>, %arg10: memref<1x192xf32, #tpu.memory_space<vmem>>, %arg11: memref<1x192xf32, #tpu.memory_space<vmem>>, %arg12: memref<64x192xf32, #tpu.memory_space<vmem>>, %arg13: memref<64x192xf32, #tpu.memory_space<vmem>>, %arg14: memref<1x64xf32, #tpu.memory_space<vmem>>, %arg15: memref<1x64xf32, #tpu.memory_space<vmem>>, %arg16: memref<1x1x128xf32, #tpu.memory_space<vmem>>, %arg17: memref<1x1xf32, #tpu.memory_space<vmem>>, %arg18: memref<128x64xf32, #tpu.memory_space<vmem>>, %arg19: memref<1x64xf32, #tpu.memory_space<vmem>>, %arg20: memref<64x2xf32, #tpu.memory_space<vmem>>, %arg21: memref<1x2xf32, #tpu.memory_space<vmem>>, %arg22: memref<2x2xf32, #tpu.memory_space<vmem>>, %arg23: memref<40x32xbf16, #tpu.memory_space<vmem>>, %arg24: memref<36x256xbf16, #tpu.memory_space<vmem>>, %arg25: memref<16x2x192xf32, #tpu.memory_space<vmem>>, %arg26: memref<16x2x192xf32, #tpu.memory_space<vmem>>, %arg27: memref<16x2x64xf32, #tpu.memory_space<vmem>>, %arg28: memref<16x2x64xf32, #tpu.memory_space<vmem>>) attributes {dimension_semantics = [#tpu.dimension_semantics<arbitrary>], iteration_bounds = array<i64: 1>, scalar_prefetch = 0 : i64, scratch_operands = 6 : i64, tpu.core_type = #tpu.core_type<tc>, window_params = [{pipeline_mode = #tpu.pipeline_mode<synchronous>, transform_indices = @transform_0, window_bounds = array<i64: 32, 32>}, {pipeline_mode = #tpu.pipeline_mode<synchronous>, transform_indices = @transform_1, window_bounds = array<i64: 5, 32, 256>}, {pipeline_mode = #tpu.pipeline_mode<synchronous>, transform_indices = @transform_2, window_bounds = array<i64: 1, 256>}, {pipeline_mode = #tpu.pipeline_mode<synchronous>, transform_indices = @transform_3, window_bounds = array<i64: 1, 256>}, {pipeline_mode = #tpu.pipeline_mode<synchronous>, transform_indices = @transform_4, window_bounds = array<i64: 3, 256, 128>}, {pipeline_mode = #tpu.pipeline_mode<synchronous>, transform_indices = @transform_5, window_bounds = array<i64: 1, 128>}, {pipeline_mode = #tpu.pipeline_mode<synchronous>, transform_indices = @transform_6, window_bounds = array<i64: 1, 128>}, {pipeline_mode = #tpu.pipeline_mode<synchronous>, transform_indices = @transform_7, window_bounds = array<i64: 128, 192>}, {pipeline_mode = #tpu.pipeline_mode<synchronous>, transform_indices = @transform_8, window_bounds = array<i64: 128, 192>}, {pipeline_mode = #tpu.pipeline_mode<synchronous>, transform_indices = @transform_9, window_bounds = array<i64: 1, 192>}, {pipeline_mode = #tpu.pipeline_mode<synchronous>, transform_indices = @transform_10, window_bounds = array<i64: 1, 192>}, {pipeline_mode = #tpu.pipeline_mode<synchronous>, transform_indices = @transform_11, window_bounds = array<i64: 64, 192>}, {pipeline_mode = #tpu.pipeline_mode<synchronous>, transform_indices = @transform_12, window_bounds = array<i64: 64, 192>}, {pipeline_mode = #tpu.pipeline_mode<synchronous>, transform_indices = @transform_13, window_bounds = array<i64: 1, 64>}, {pipeline_mode = #tpu.pipeline_mode<synchronous>, transform_indices = @transform_14, window_bounds = array<i64: 1, 64>}, {pipeline_mode = #tpu.pipeline_mode<synchronous>, transform_indices = @transform_15, window_bounds = array<i64: 1, 1, 128>}, {pipeline_mode = #tpu.pipeline_mode<synchronous>, transform_indices = @transform_16, window_bounds = array<i64: 1, 1>}, {pipeline_mode = #tpu.pipeline_mode<synchronous>, transform_indices = @transform_17, window_bounds = array<i64: 128, 64>}, {pipeline_mode = #tpu.pipeline_mode<synchronous>, transform_indices = @transform_18, window_bounds = array<i64: 1, 64>}, {pipeline_mode = #tpu.pipeline_mode<synchronous>, transform_indices = @transform_19, window_bounds = array<i64: 64, 2>}, {pipeline_mode = #tpu.pipeline_mode<synchronous>, transform_indices = @transform_20, window_bounds = array<i64: 1, 2>}, {pipeline_mode = #tpu.pipeline_mode<synchronous>, transform_indices = @transform_21, window_bounds = array<i64: 2, 2>}]} {
    %cst = arith.constant 0.000000e+00 : bf16
    %0 = vector.broadcast %cst : bf16 to vector<4x32xbf16>
    %c0 = arith.constant 0 : index
    %c0_0 = arith.constant 0 : index
    %1 = vector.load %arg23[%c0, %c0_0] : memref<40x32xbf16, #tpu.memory_space<vmem>>, vector<4x32xbf16>
    tpu.vector_store %arg23[%c0, %c0_0], %0 {strides = array<i32>} : memref<40x32xbf16, #tpu.memory_space<vmem>>, vector<4x32xbf16>,
    %cst_1 = arith.constant 0.000000e+00 : bf16
    %2 = vector.broadcast %cst_1 : bf16 to vector<4x32xbf16>
    %c36 = arith.constant 36 : index
    %c0_2 = arith.constant 0 : index
    %3 = vector.load %arg23[%c36, %c0_2] : memref<40x32xbf16, #tpu.memory_space<vmem>>, vector<4x32xbf16>
    tpu.vector_store %arg23[%c36, %c0_2], %2 {strides = array<i32>} : memref<40x32xbf16, #tpu.memory_space<vmem>>, vector<4x32xbf16>,
    %c0_3 = arith.constant 0 : index
    %c0_4 = arith.constant 0 : index
    %4 = vector.load %arg1[%c0_3, %c0_4] : memref<32x32xbf16, #tpu.memory_space<vmem>>, vector<32x32xbf16>
    %c4 = arith.constant 4 : index
    %c0_5 = arith.constant 0 : index
    %5 = vector.load %arg23[%c4, %c0_5] : memref<40x32xbf16, #tpu.memory_space<vmem>>, vector<32x32xbf16>
    tpu.vector_store %arg23[%c4, %c0_5], %4 {strides = array<i32>} : memref<40x32xbf16, #tpu.memory_space<vmem>>, vector<32x32xbf16>,
    %c0_6 = arith.constant 0 : index
    %c0_7 = arith.constant 0 : index
    %6 = vector.load %arg23[%c0_6, %c0_7] : memref<40x32xbf16, #tpu.memory_space<vmem>>, vector<32x32xbf16>
    %c0_8 = arith.constant 0 : index
    %c0_9 = arith.constant 0 : index
    %c0_10 = arith.constant 0 : index
    %7 = vector.load %arg2[%c0_8, %c0_9, %c0_10] : memref<5x32x256xbf16, #tpu.memory_space<vmem>>, vector<1x32x256xbf16>
    %8 = vector.shape_cast %7 : vector<1x32x256xbf16> to vector<32x256xbf16>
    %cst_11 = arith.constant dense<0.000000e+00> : vector<32x256xf32>
    %9 = tpu.matmul %6, %8, %cst_11 {dimension_numbers = #tpu.dot_dimension_numbers<[1], [0], [0], [1], [0, 0, 1, 1], [], []>} : vector<32x32xbf16>, vector<32x256xbf16>, vector<32x256xf32> -> vector<32x256xf32>
    %c2 = arith.constant 2 : index
    %c0_12 = arith.constant 0 : index
    %10 = vector.load %arg23[%c2, %c0_12] : memref<40x32xbf16, #tpu.memory_space<vmem>>, vector<32x32xbf16>
    %c1 = arith.constant 1 : index
    %c0_13 = arith.constant 0 : index
    %c0_14 = arith.constant 0 : index
    %11 = vector.load %arg2[%c1, %c0_13, %c0_14] : memref<5x32x256xbf16, #tpu.memory_space<vmem>>, vector<1x32x256xbf16>
    %12 = vector.shape_cast %11 : vector<1x32x256xbf16> to vector<32x256xbf16>
    %cst_15 = arith.constant dense<0.000000e+00> : vector<32x256xf32>
    %13 = tpu.matmul %10, %12, %cst_15 {dimension_numbers = #tpu.dot_dimension_numbers<[1], [0], [0], [1], [0, 0, 1, 1], [], []>} : vector<32x32xbf16>, vector<32x256xbf16>, vector<32x256xf32> -> vector<32x256xf32>
    %14 = arith.addf %9, %13 : vector<32x256xf32>
    %c4_16 = arith.constant 4 : index
    %c0_17 = arith.constant 0 : index
    %15 = vector.load %arg23[%c4_16, %c0_17] : memref<40x32xbf16, #tpu.memory_space<vmem>>, vector<32x32xbf16>
    %c2_18 = arith.constant 2 : index
    %c0_19 = arith.constant 0 : index
    %c0_20 = arith.constant 0 : index
    %16 = vector.load %arg2[%c2_18, %c0_19, %c0_20] : memref<5x32x256xbf16, #tpu.memory_space<vmem>>, vector<1x32x256xbf16>
    %17 = vector.shape_cast %16 : vector<1x32x256xbf16> to vector<32x256xbf16>
    %cst_21 = arith.constant dense<0.000000e+00> : vector<32x256xf32>
    %18 = tpu.matmul %15, %17, %cst_21 {dimension_numbers = #tpu.dot_dimension_numbers<[1], [0], [0], [1], [0, 0, 1, 1], [], []>} : vector<32x32xbf16>, vector<32x256xbf16>, vector<32x256xf32> -> vector<32x256xf32>
    %19 = arith.addf %14, %18 : vector<32x256xf32>
    %c6 = arith.constant 6 : index
    %c0_22 = arith.constant 0 : index
    %20 = vector.load %arg23[%c6, %c0_22] : memref<40x32xbf16, #tpu.memory_space<vmem>>, vector<32x32xbf16>
    %c3 = arith.constant 3 : index
    %c0_23 = arith.constant 0 : index
    %c0_24 = arith.constant 0 : index
    %21 = vector.load %arg2[%c3, %c0_23, %c0_24] : memref<5x32x256xbf16, #tpu.memory_space<vmem>>, vector<1x32x256xbf16>
    %22 = vector.shape_cast %21 : vector<1x32x256xbf16> to vector<32x256xbf16>
    %cst_25 = arith.constant dense<0.000000e+00> : vector<32x256xf32>
    %23 = tpu.matmul %20, %22, %cst_25 {dimension_numbers = #tpu.dot_dimension_numbers<[1], [0], [0], [1], [0, 0, 1, 1], [], []>} : vector<32x32xbf16>, vector<32x256xbf16>, vector<32x256xf32> -> vector<32x256xf32>
    %24 = arith.addf %19, %23 : vector<32x256xf32>
    %c8 = arith.constant 8 : index
    %c0_26 = arith.constant 0 : index
    %25 = vector.load %arg23[%c8, %c0_26] : memref<40x32xbf16, #tpu.memory_space<vmem>>, vector<32x32xbf16>
    %c4_27 = arith.constant 4 : index
    %c0_28 = arith.constant 0 : index
    %c0_29 = arith.constant 0 : index
    %26 = vector.load %arg2[%c4_27, %c0_28, %c0_29] : memref<5x32x256xbf16, #tpu.memory_space<vmem>>, vector<1x32x256xbf16>
    %27 = vector.shape_cast %26 : vector<1x32x256xbf16> to vector<32x256xbf16>
    %cst_30 = arith.constant dense<0.000000e+00> : vector<32x256xf32>
    %28 = tpu.matmul %25, %27, %cst_30 {dimension_numbers = #tpu.dot_dimension_numbers<[1], [0], [0], [1], [0, 0, 1, 1], [], []>} : vector<32x32xbf16>, vector<32x256xbf16>, vector<32x256xf32> -> vector<32x256xf32>
    %29 = arith.addf %24, %28 : vector<32x256xf32>
    %c0_31 = arith.constant 0 : index
    %c0_32 = arith.constant 0 : index
    %30 = vector.load %arg3[%c0_31, %c0_32] : memref<1x256xf32, #tpu.memory_space<vmem>>, vector<1x256xf32>
    %31 = vector.broadcast %30 : vector<1x256xf32> to vector<32x256xf32>
    %32 = arith.mulf %29, %31 : vector<32x256xf32>
    %c0_33 = arith.constant 0 : index
    %c0_34 = arith.constant 0 : index
    %33 = vector.load %arg4[%c0_33, %c0_34] : memref<1x256xf32, #tpu.memory_space<vmem>>, vector<1x256xf32>
    %34 = vector.broadcast %33 : vector<1x256xf32> to vector<32x256xf32>
    %35 = arith.addf %32, %34 : vector<32x256xf32>
    %cst_35 = arith.constant 0.000000e+00 : f32
    %36 = vector.broadcast %cst_35 : f32 to vector<32x256xf32>
    %37 = arith.maximumf %35, %36 : vector<32x256xf32>
    %cst_36 = arith.constant 0.000000e+00 : bf16
    %38 = vector.broadcast %cst_36 : bf16 to vector<2x256xbf16>
    %c0_37 = arith.constant 0 : index
    %c0_38 = arith.constant 0 : index
    %39 = vector.load %arg24[%c0_37, %c0_38] : memref<36x256xbf16, #tpu.memory_space<vmem>>, vector<2x256xbf16>
    tpu.vector_store %arg24[%c0_37, %c0_38], %38 {strides = array<i32>} : memref<36x256xbf16, #tpu.memory_space<vmem>>, vector<2x256xbf16>,
    %cst_39 = arith.constant 0.000000e+00 : bf16
    %40 = vector.broadcast %cst_39 : bf16 to vector<2x256xbf16>
    %c34 = arith.constant 34 : index
    %c0_40 = arith.constant 0 : index
    %41 = vector.load %arg24[%c34, %c0_40] : memref<36x256xbf16, #tpu.memory_space<vmem>>, vector<2x256xbf16>
    tpu.vector_store %arg24[%c34, %c0_40], %40 {strides = array<i32>} : memref<36x256xbf16, #tpu.memory_space<vmem>>, vector<2x256xbf16>,
    %42 = arith.truncf %37 : vector<32x256xf32> to vector<32x256xbf16>
    %c2_41 = arith.constant 2 : index
    %c0_42 = arith.constant 0 : index
    %43 = vector.load %arg24[%c2_41, %c0_42] : memref<36x256xbf16, #tpu.memory_space<vmem>>, vector<32x256xbf16>
    tpu.vector_store %arg24[%c2_41, %c0_42], %42 {strides = array<i32>} : memref<36x256xbf16, #tpu.memory_space<vmem>>, vector<32x256xbf16>,
    %c0_43 = arith.constant 0 : index
    %c0_44 = arith.constant 0 : index
    %44 = vector.load %arg24[%c0_43, %c0_44] : memref<36x256xbf16, #tpu.memory_space<vmem>>, vector<32x256xbf16>
    %c0_45 = arith.constant 0 : index
    %c0_46 = arith.constant 0 : index
    %c0_47 = arith.constant 0 : index
    %45 = vector.load %arg5[%c0_45, %c0_46, %c0_47] : memref<3x256x128xbf16, #tpu.memory_space<vmem>>, vector<1x256x128xbf16>
    %46 = vector.shape_cast %45 : vector<1x256x128xbf16> to vector<256x128xbf16>
    %cst_48 = arith.constant dense<0.000000e+00> : vector<32x128xf32>
    %47 = tpu.matmul %44, %46, %cst_48 {dimension_numbers = #tpu.dot_dimension_numbers<[1], [0], [0], [1], [0, 0, 1, 1], [], []>} : vector<32x256xbf16>, vector<256x128xbf16>, vector<32x128xf32> -> vector<32x128xf32>
    %c2_49 = arith.constant 2 : index
    %c0_50 = arith.constant 0 : index
    %48 = vector.load %arg24[%c2_49, %c0_50] : memref<36x256xbf16, #tpu.memory_space<vmem>>, vector<32x256xbf16>
    %c1_51 = arith.constant 1 : index
    %c0_52 = arith.constant 0 : index
    %c0_53 = arith.constant 0 : index
    %49 = vector.load %arg5[%c1_51, %c0_52, %c0_53] : memref<3x256x128xbf16, #tpu.memory_space<vmem>>, vector<1x256x128xbf16>
    %50 = vector.shape_cast %49 : vector<1x256x128xbf16> to vector<256x128xbf16>
    %cst_54 = arith.constant dense<0.000000e+00> : vector<32x128xf32>
    %51 = tpu.matmul %48, %50, %cst_54 {dimension_numbers = #tpu.dot_dimension_numbers<[1], [0], [0], [1], [0, 0, 1, 1], [], []>} : vector<32x256xbf16>, vector<256x128xbf16>, vector<32x128xf32> -> vector<32x128xf32>
    %52 = arith.addf %47, %51 : vector<32x128xf32>
    %c4_55 = arith.constant 4 : index
    %c0_56 = arith.constant 0 : index
    %53 = vector.load %arg24[%c4_55, %c0_56] : memref<36x256xbf16, #tpu.memory_space<vmem>>, vector<32x256xbf16>
    %c2_57 = arith.constant 2 : index
    %c0_58 = arith.constant 0 : index
    %c0_59 = arith.constant 0 : index
    %54 = vector.load %arg5[%c2_57, %c0_58, %c0_59] : memref<3x256x128xbf16, #tpu.memory_space<vmem>>, vector<1x256x128xbf16>
    %55 = vector.shape_cast %54 : vector<1x256x128xbf16> to vector<256x128xbf16>
    %cst_60 = arith.constant dense<0.000000e+00> : vector<32x128xf32>
    %56 = tpu.matmul %53, %55, %cst_60 {dimension_numbers = #tpu.dot_dimension_numbers<[1], [0], [0], [1], [0, 0, 1, 1], [], []>} : vector<32x256xbf16>, vector<256x128xbf16>, vector<32x128xf32> -> vector<32x128xf32>
    %57 = arith.addf %52, %56 : vector<32x128xf32>
    %c0_61 = arith.constant 0 : index
    %c0_62 = arith.constant 0 : index
    %58 = vector.load %arg6[%c0_61, %c0_62] : memref<1x128xf32, #tpu.memory_space<vmem>>, vector<1x128xf32>
    %59 = vector.broadcast %58 : vector<1x128xf32> to vector<32x128xf32>
    %60 = arith.mulf %57, %59 : vector<32x128xf32>
    %c0_63 = arith.constant 0 : index
    %c0_64 = arith.constant 0 : index
    %61 = vector.load %arg7[%c0_63, %c0_64] : memref<1x128xf32, #tpu.memory_space<vmem>>, vector<1x128xf32>
    %62 = vector.broadcast %61 : vector<1x128xf32> to vector<32x128xf32>
    %63 = arith.addf %60, %62 : vector<32x128xf32>
    %cst_65 = arith.constant 0.000000e+00 : f32
    %64 = vector.broadcast %cst_65 : f32 to vector<32x128xf32>
    %65 = arith.maximumf %63, %64 : vector<32x128xf32>
    %c0_66 = arith.constant 0 : index
    %c0_67 = arith.constant 0 : index
    %66 = vector.load %arg8[%c0_66, %c0_67] : memref<128x192xf32, #tpu.memory_space<vmem>>, vector<128x192xf32>
    %cst_68 = arith.constant dense<0.000000e+00> : vector<32x192xf32>
    %67 = tpu.matmul %65, %66, %cst_68 {dimension_numbers = #tpu.dot_dimension_numbers<[1], [0], [0], [1], [0, 0, 1, 1], [], []>} : vector<32x128xf32>, vector<128x192xf32>, vector<32x192xf32> -> vector<32x192xf32>
    %c0_69 = arith.constant 0 : index
    %c0_70 = arith.constant 0 : index
    %68 = vector.load %arg10[%c0_69, %c0_70] : memref<1x192xf32, #tpu.memory_space<vmem>>, vector<1x192xf32>
    %69 = vector.broadcast %68 : vector<1x192xf32> to vector<32x192xf32>
    %70 = arith.addf %67, %69 : vector<32x192xf32>
    %71 = vector.shape_cast %70 : vector<32x192xf32> to vector<16x2x192xf32>
    %c0_71 = arith.constant 0 : index
    %c0_72 = arith.constant 0 : index
    %c0_73 = arith.constant 0 : index
    %72 = vector.load %arg25[%c0_71, %c0_72, %c0_73] : memref<16x2x192xf32, #tpu.memory_space<vmem>>, vector<16x2x192xf32>
    tpu.vector_store %arg25[%c0_71, %c0_72, %c0_73], %71 {strides = array<i32>} : memref<16x2x192xf32, #tpu.memory_space<vmem>>, vector<16x2x192xf32>,
    %c0_74 = arith.constant 0 : index
    %c0_75 = arith.constant 0 : index
    %73 = vector.load %arg9[%c0_74, %c0_75] : memref<128x192xf32, #tpu.memory_space<vmem>>, vector<128x192xf32>
    %cst_76 = arith.constant dense<0.000000e+00> : vector<32x192xf32>
    %74 = tpu.matmul %65, %73, %cst_76 {dimension_numbers = #tpu.dot_dimension_numbers<[1], [0], [0], [1], [0, 0, 1, 1], [], []>} : vector<32x128xf32>, vector<128x192xf32>, vector<32x192xf32> -> vector<32x192xf32>
    %c0_77 = arith.constant 0 : index
    %c0_78 = arith.constant 0 : index
    %75 = vector.load %arg11[%c0_77, %c0_78] : memref<1x192xf32, #tpu.memory_space<vmem>>, vector<1x192xf32>
    %76 = vector.broadcast %75 : vector<1x192xf32> to vector<32x192xf32>
    %77 = arith.addf %74, %76 : vector<32x192xf32>
    %78 = vector.shape_cast %77 : vector<32x192xf32> to vector<16x2x192xf32>
    %c0_79 = arith.constant 0 : index
    %c0_80 = arith.constant 0 : index
    %c0_81 = arith.constant 0 : index
    %79 = vector.load %arg26[%c0_79, %c0_80, %c0_81] : memref<16x2x192xf32, #tpu.memory_space<vmem>>, vector<16x2x192xf32>
    tpu.vector_store %arg26[%c0_79, %c0_80, %c0_81], %78 {strides = array<i32>} : memref<16x2x192xf32, #tpu.memory_space<vmem>>, vector<16x2x192xf32>,
    %c0_82 = arith.constant 0 : index
    %c0_83 = arith.constant 0 : index
    %80 = vector.load %arg12[%c0_82, %c0_83] : memref<64x192xf32, #tpu.memory_space<vmem>>, vector<64x192xf32>
    %c0_84 = arith.constant 0 : index
    %c0_85 = arith.constant 0 : index
    %81 = vector.load %arg13[%c0_84, %c0_85] : memref<64x192xf32, #tpu.memory_space<vmem>>, vector<64x192xf32>
    %c0_86 = arith.constant 0 : index
    %c0_87 = arith.constant 0 : index
    %82 = vector.load %arg14[%c0_86, %c0_87] : memref<1x64xf32, #tpu.memory_space<vmem>>, vector<1x64xf32>
    %c0_88 = arith.constant 0 : index
    %c0_89 = arith.constant 0 : index
    %83 = vector.load %arg15[%c0_88, %c0_89] : memref<1x64xf32, #tpu.memory_space<vmem>>, vector<1x64xf32>
    %cst_90 = arith.constant 0.000000e+00 : f32
    %84 = vector.broadcast %cst_90 : f32 to vector<2x64xf32>
    %c0_i32 = arith.constant 0 : i32
    %c16_i32 = arith.constant 16 : i32
    %85 = arith.addi %c0_i32, %c16_i32 : i32
    %c1_i32 = arith.constant 1 : i32
    %86:2 = scf.for %arg29 = %c0_i32 to %85 step %c1_i32 iter_args(%arg30 = %84, %arg31 = %84) -> (vector<2x64xf32>, vector<2x64xf32>)  : i32 {
      %c15_i32 = arith.constant 15 : i32
      %124 = arith.subi %c15_i32, %arg29 : i32
      %125 = arith.index_cast %arg29 : i32 to index
      %c0_120 = arith.constant 0 : index
      %c0_121 = arith.constant 0 : index
      %126 = vector.load %arg25[%125, %c0_120, %c0_121] : memref<16x2x192xf32, #tpu.memory_space<vmem>>, vector<1x2x192xf32>
      %127 = vector.shape_cast %126 : vector<1x2x192xf32> to vector<2x192xf32>
      %128 = arith.index_cast %124 : i32 to index
      %c0_122 = arith.constant 0 : index
      %c0_123 = arith.constant 0 : index
      %129 = vector.load %arg26[%128, %c0_122, %c0_123] : memref<16x2x192xf32, #tpu.memory_space<vmem>>, vector<1x2x192xf32>
      %130 = vector.shape_cast %129 : vector<1x2x192xf32> to vector<2x192xf32>
      %cst_124 = arith.constant dense<0.000000e+00> : vector<2x192xf32>
      %131 = tpu.matmul %arg30, %80, %cst_124 {dimension_numbers = #tpu.dot_dimension_numbers<[1], [0], [0], [1], [0, 0, 1, 1], [], []>} : vector<2x64xf32>, vector<64x192xf32>, vector<2x192xf32> -> vector<2x192xf32>
      %cst_125 = arith.constant dense<0.000000e+00> : vector<2x192xf32>
      %132 = tpu.matmul %arg31, %81, %cst_125 {dimension_numbers = #tpu.dot_dimension_numbers<[1], [0], [0], [1], [0, 0, 1, 1], [], []>} : vector<2x64xf32>, vector<64x192xf32>, vector<2x192xf32> -> vector<2x192xf32>
      %133 = vector.extract_strided_slice %127 {offsets = [0, 0], sizes = [2, 128], strides = [1, 1]} : vector<2x192xf32> to vector<2x128xf32>
      %134 = vector.extract_strided_slice %131 {offsets = [0, 0], sizes = [2, 128], strides = [1, 1]} : vector<2x192xf32> to vector<2x128xf32>
      %135 = arith.addf %133, %134 : vector<2x128xf32>
      %cst_126 = arith.constant 5.000000e-01 : f32
      %136 = vector.broadcast %cst_126 : f32 to vector<2x128xf32>
      %137 = arith.mulf %136, %135 : vector<2x128xf32>
      %138 = math.tanh %137 : vector<2x128xf32>
      %cst_127 = arith.constant 1.000000e+00 : f32
      %139 = vector.broadcast %cst_127 : f32 to vector<2x128xf32>
      %140 = arith.addf %138, %139 : vector<2x128xf32>
      %cst_128 = arith.constant 5.000000e-01 : f32
      %141 = vector.broadcast %cst_128 : f32 to vector<2x128xf32>
      %142 = arith.mulf %141, %140 : vector<2x128xf32>
      %143 = vector.extract_strided_slice %130 {offsets = [0, 0], sizes = [2, 128], strides = [1, 1]} : vector<2x192xf32> to vector<2x128xf32>
      %144 = vector.extract_strided_slice %132 {offsets = [0, 0], sizes = [2, 128], strides = [1, 1]} : vector<2x192xf32> to vector<2x128xf32>
      %145 = arith.addf %143, %144 : vector<2x128xf32>
      %cst_129 = arith.constant 5.000000e-01 : f32
      %146 = vector.broadcast %cst_129 : f32 to vector<2x128xf32>
      %147 = arith.mulf %146, %145 : vector<2x128xf32>
      %148 = math.tanh %147 : vector<2x128xf32>
      %cst_130 = arith.constant 1.000000e+00 : f32
      %149 = vector.broadcast %cst_130 : f32 to vector<2x128xf32>
      %150 = arith.addf %148, %149 : vector<2x128xf32>
      %cst_131 = arith.constant 5.000000e-01 : f32
      %151 = vector.broadcast %cst_131 : f32 to vector<2x128xf32>
      %152 = arith.mulf %151, %150 : vector<2x128xf32>
      %153 = vector.extract_strided_slice %127 {offsets = [0, 128], sizes = [2, 64], strides = [1, 1]} : vector<2x192xf32> to vector<2x64xf32>
      %154 = vector.extract_strided_slice %142 {offsets = [0, 0], sizes = [2, 64], strides = [1, 1]} : vector<2x128xf32> to vector<2x64xf32>
      %155 = vector.extract_strided_slice %131 {offsets = [0, 128], sizes = [2, 64], strides = [1, 1]} : vector<2x192xf32> to vector<2x64xf32>
      %156 = vector.broadcast %82 : vector<1x64xf32> to vector<2x64xf32>
      %157 = arith.addf %155, %156 : vector<2x64xf32>
      %158 = arith.mulf %154, %157 : vector<2x64xf32>
      %159 = arith.addf %153, %158 : vector<2x64xf32>
      %160 = math.tanh %159 : vector<2x64xf32>
      %161 = vector.extract_strided_slice %130 {offsets = [0, 128], sizes = [2, 64], strides = [1, 1]} : vector<2x192xf32> to vector<2x64xf32>
      %162 = vector.extract_strided_slice %152 {offsets = [0, 0], sizes = [2, 64], strides = [1, 1]} : vector<2x128xf32> to vector<2x64xf32>
      %163 = vector.extract_strided_slice %132 {offsets = [0, 128], sizes = [2, 64], strides = [1, 1]} : vector<2x192xf32> to vector<2x64xf32>
      %164 = vector.broadcast %83 : vector<1x64xf32> to vector<2x64xf32>
      %165 = arith.addf %163, %164 : vector<2x64xf32>
      %166 = arith.mulf %162, %165 : vector<2x64xf32>
      %167 = arith.addf %161, %166 : vector<2x64xf32>
      %168 = math.tanh %167 : vector<2x64xf32>
      %169 = vector.extract_strided_slice %142 {offsets = [0, 64], sizes = [2, 64], strides = [1, 1]} : vector<2x128xf32> to vector<2x64xf32>
      %170 = vector.extract_strided_slice %152 {offsets = [0, 64], sizes = [2, 64], strides = [1, 1]} : vector<2x128xf32> to vector<2x64xf32>
      %171 = arith.subf %arg30, %160 : vector<2x64xf32>
      %172 = arith.mulf %169, %171 : vector<2x64xf32>
      %173 = arith.addf %160, %172 : vector<2x64xf32>
      %174 = arith.subf %arg31, %168 : vector<2x64xf32>
      %175 = arith.mulf %170, %174 : vector<2x64xf32>
      %176 = arith.addf %168, %175 : vector<2x64xf32>
      %177 = arith.index_cast %arg29 : i32 to index
      %c0_132 = arith.constant 0 : index
      %c0_133 = arith.constant 0 : index
      %178 = vector.load %arg27[%177, %c0_132, %c0_133] : memref<16x2x64xf32, #tpu.memory_space<vmem>>, vector<1x2x64xf32>
      %179 = vector.shape_cast %178 : vector<1x2x64xf32> to vector<2x64xf32>
      %180 = vector.shape_cast %173 : vector<2x64xf32> to vector<1x2x64xf32>
      tpu.vector_store %arg27[%177, %c0_132, %c0_133], %180 {strides = array<i32>} : memref<16x2x64xf32, #tpu.memory_space<vmem>>, vector<1x2x64xf32>,
      %181 = arith.index_cast %124 : i32 to index
      %c0_134 = arith.constant 0 : index
      %c0_135 = arith.constant 0 : index
      %182 = vector.load %arg28[%181, %c0_134, %c0_135] : memref<16x2x64xf32, #tpu.memory_space<vmem>>, vector<1x2x64xf32>
      %183 = vector.shape_cast %182 : vector<1x2x64xf32> to vector<2x64xf32>
      %184 = vector.shape_cast %176 : vector<2x64xf32> to vector<1x2x64xf32>
      tpu.vector_store %arg28[%181, %c0_134, %c0_135], %184 {strides = array<i32>} : memref<16x2x64xf32, #tpu.memory_space<vmem>>, vector<1x2x64xf32>,
      scf.yield %173, %176 : vector<2x64xf32>, vector<2x64xf32>
    }
    %c16_i32_91 = arith.constant 16 : i32
    %c0_92 = arith.constant 0 : index
    %c0_93 = arith.constant 0 : index
    %c0_94 = arith.constant 0 : index
    %87 = vector.load %arg27[%c0_92, %c0_93, %c0_94] : memref<16x2x64xf32, #tpu.memory_space<vmem>>, vector<16x2x64xf32>
    %c0_95 = arith.constant 0 : index
    %c0_96 = arith.constant 0 : index
    %c0_97 = arith.constant 0 : index
    %88 = vector.load %arg28[%c0_95, %c0_96, %c0_97] : memref<16x2x64xf32, #tpu.memory_space<vmem>>, vector<16x2x64xf32>
    %89 = tpu.concatenate %87, %88 in 2 : vector<16x2x64xf32>, vector<16x2x64xf32> -> vector<16x2x128xf32>
    %c0_98 = arith.constant 0 : index
    %c0_99 = arith.constant 0 : index
    %c0_100 = arith.constant 0 : index
    %90 = vector.load %arg16[%c0_98, %c0_99, %c0_100] : memref<1x1x128xf32, #tpu.memory_space<vmem>>, vector<1x1x128xf32>
    %91 = vector.broadcast %90 : vector<1x1x128xf32> to vector<16x2x128xf32>
    %92 = arith.mulf %89, %91 : vector<16x2x128xf32>
    %cst_101 = arith.constant dense<0.000000e+00> : vector<16x2xf32>
    %93 = vector.multi_reduction <add>, %92, %cst_101 [2] : vector<16x2x128xf32> to vector<16x2xf32>
    %94 = vector.shape_cast %93 : vector<16x2xf32> to vector<16x2x1xf32>
    %c0_102 = arith.constant 0 : index
    %c0_103 = arith.constant 0 : index
    %95 = vector.load %arg17[%c0_102, %c0_103] : memref<1x1xf32, #tpu.memory_space<vmem>>, vector<1x1xf32>
    %96 = vector.shape_cast %95 : vector<1x1xf32> to vector<1x1x1xf32>
    %97 = vector.broadcast %96 : vector<1x1x1xf32> to vector<16x2x1xf32>
    %98 = arith.addf %94, %97 : vector<16x2x1xf32>
    %cst_104 = arith.constant dense<0xFF800000> : vector<2x1xf32>
    %99 = vector.multi_reduction <maximumf>, %98, %cst_104 [0] : vector<16x2x1xf32> to vector<2x1xf32>
    %100 = vector.shape_cast %99 : vector<2x1xf32> to vector<1x2x1xf32>
    %101 = vector.broadcast %100 : vector<1x2x1xf32> to vector<16x2x1xf32>
    %102 = arith.subf %98, %101 : vector<16x2x1xf32>
    %103 = math.exp %102 : vector<16x2x1xf32>
    %cst_105 = arith.constant dense<0.000000e+00> : vector<2x1xf32>
    %104 = vector.multi_reduction <add>, %103, %cst_105 [0] : vector<16x2x1xf32> to vector<2x1xf32>
    %105 = vector.shape_cast %104 : vector<2x1xf32> to vector<1x2x1xf32>
    %106 = vector.broadcast %105 : vector<1x2x1xf32> to vector<16x2x1xf32>
    %107 = arith.divf %103, %106 : vector<16x2x1xf32>
    %108 = vector.broadcast %107 : vector<16x2x1xf32> to vector<16x2x128xf32>
    %109 = arith.mulf %89, %108 : vector<16x2x128xf32>
    %cst_106 = arith.constant dense<0.000000e+00> : vector<2x128xf32>
    %110 = vector.multi_reduction <add>, %109, %cst_106 [0] : vector<16x2x128xf32> to vector<2x128xf32>
    %c0_107 = arith.constant 0 : index
    %c0_108 = arith.constant 0 : index
    %111 = vector.load %arg18[%c0_107, %c0_108] : memref<128x64xf32, #tpu.memory_space<vmem>>, vector<128x64xf32>
    %cst_109 = arith.constant dense<0.000000e+00> : vector<2x64xf32>
    %112 = tpu.matmul %110, %111, %cst_109 {dimension_numbers = #tpu.dot_dimension_numbers<[1], [0], [0], [1], [0, 0, 1, 1], [], []>} : vector<2x128xf32>, vector<128x64xf32>, vector<2x64xf32> -> vector<2x64xf32>
    %c0_110 = arith.constant 0 : index
    %c0_111 = arith.constant 0 : index
    %113 = vector.load %arg19[%c0_110, %c0_111] : memref<1x64xf32, #tpu.memory_space<vmem>>, vector<1x64xf32>
    %114 = vector.broadcast %113 : vector<1x64xf32> to vector<2x64xf32>
    %115 = arith.addf %112, %114 : vector<2x64xf32>
    %cst_112 = arith.constant 0.000000e+00 : f32
    %116 = vector.broadcast %cst_112 : f32 to vector<2x64xf32>
    %117 = arith.maximumf %115, %116 : vector<2x64xf32>
    %c0_113 = arith.constant 0 : index
    %c0_114 = arith.constant 0 : index
    %118 = vector.load %arg20[%c0_113, %c0_114] : memref<64x2xf32, #tpu.memory_space<vmem>>, vector<64x2xf32>
    %cst_115 = arith.constant dense<0.000000e+00> : vector<2x2xf32>
    %119 = tpu.matmul %117, %118, %cst_115 {dimension_numbers = #tpu.dot_dimension_numbers<[1], [0], [0], [1], [0, 0, 1, 1], [], []>} : vector<2x64xf32>, vector<64x2xf32>, vector<2x2xf32> -> vector<2x2xf32>
    %c0_116 = arith.constant 0 : index
    %c0_117 = arith.constant 0 : index
    %120 = vector.load %arg21[%c0_116, %c0_117] : memref<1x2xf32, #tpu.memory_space<vmem>>, vector<1x2xf32>
    %121 = vector.broadcast %120 : vector<1x2xf32> to vector<2x2xf32>
    %122 = arith.addf %119, %121 : vector<2x2xf32>
    %c0_118 = arith.constant 0 : index
    %c0_119 = arith.constant 0 : index
    %123 = vector.load %arg22[%c0_118, %c0_119] : memref<2x2xf32, #tpu.memory_space<vmem>>, vector<2x2xf32>
    tpu.vector_store %arg22[%c0_118, %c0_119], %122 {strides = array<i32>} : memref<2x2xf32, #tpu.memory_space<vmem>>, vector<2x2xf32>,
    return
  }
  func.func @transform_0(%arg0: i32) -> (i32, i32) {
    %c0_i32 = arith.constant 0 : i32
    %c0_i32_0 = arith.constant 0 : i32
    %c0_i32_1 = arith.constant 0 : i32
    return %c0_i32, %c0_i32_0 : i32, i32
  }
  func.func @transform_1(%arg0: i32) -> (i32, i32, i32) {
    %c0_i32 = arith.constant 0 : i32
    %c0_i32_0 = arith.constant 0 : i32
    %c0_i32_1 = arith.constant 0 : i32
    %c0_i32_2 = arith.constant 0 : i32
    return %c0_i32, %c0_i32_0, %c0_i32_1 : i32, i32, i32
  }
  func.func @transform_2(%arg0: i32) -> (i32, i32) {
    %c0_i32 = arith.constant 0 : i32
    %c0_i32_0 = arith.constant 0 : i32
    %c0_i32_1 = arith.constant 0 : i32
    return %c0_i32, %c0_i32_0 : i32, i32
  }
  func.func @transform_3(%arg0: i32) -> (i32, i32) {
    %c0_i32 = arith.constant 0 : i32
    %c0_i32_0 = arith.constant 0 : i32
    %c0_i32_1 = arith.constant 0 : i32
    return %c0_i32, %c0_i32_0 : i32, i32
  }
  func.func @transform_4(%arg0: i32) -> (i32, i32, i32) {
    %c0_i32 = arith.constant 0 : i32
    %c0_i32_0 = arith.constant 0 : i32
    %c0_i32_1 = arith.constant 0 : i32
    %c0_i32_2 = arith.constant 0 : i32
    return %c0_i32, %c0_i32_0, %c0_i32_1 : i32, i32, i32
  }
  func.func @transform_5(%arg0: i32) -> (i32, i32) {
    %c0_i32 = arith.constant 0 : i32
    %c0_i32_0 = arith.constant 0 : i32
    %c0_i32_1 = arith.constant 0 : i32
    return %c0_i32, %c0_i32_0 : i32, i32
  }
  func.func @transform_6(%arg0: i32) -> (i32, i32) {
    %c0_i32 = arith.constant 0 : i32
    %c0_i32_0 = arith.constant 0 : i32
    %c0_i32_1 = arith.constant 0 : i32
    return %c0_i32, %c0_i32_0 : i32, i32
  }
  func.func @transform_7(%arg0: i32) -> (i32, i32) {
    %c0_i32 = arith.constant 0 : i32
    %c0_i32_0 = arith.constant 0 : i32
    %c0_i32_1 = arith.constant 0 : i32
    return %c0_i32, %c0_i32_0 : i32, i32
  }
  func.func @transform_8(%arg0: i32) -> (i32, i32) {
    %c0_i32 = arith.constant 0 : i32
    %c0_i32_0 = arith.constant 0 : i32
    %c0_i32_1 = arith.constant 0 : i32
    return %c0_i32, %c0_i32_0 : i32, i32
  }
  func.func @transform_9(%arg0: i32) -> (i32, i32) {
    %c0_i32 = arith.constant 0 : i32
    %c0_i32_0 = arith.constant 0 : i32
    %c0_i32_1 = arith.constant 0 : i32
    return %c0_i32, %c0_i32_0 : i32, i32
  }
  func.func @transform_10(%arg0: i32) -> (i32, i32) {
    %c0_i32 = arith.constant 0 : i32
    %c0_i32_0 = arith.constant 0 : i32
    %c0_i32_1 = arith.constant 0 : i32
    return %c0_i32, %c0_i32_0 : i32, i32
  }
  func.func @transform_11(%arg0: i32) -> (i32, i32) {
    %c0_i32 = arith.constant 0 : i32
    %c0_i32_0 = arith.constant 0 : i32
    %c0_i32_1 = arith.constant 0 : i32
    return %c0_i32, %c0_i32_0 : i32, i32
  }
  func.func @transform_12(%arg0: i32) -> (i32, i32) {
    %c0_i32 = arith.constant 0 : i32
    %c0_i32_0 = arith.constant 0 : i32
    %c0_i32_1 = arith.constant 0 : i32
    return %c0_i32, %c0_i32_0 : i32, i32
  }
  func.func @transform_13(%arg0: i32) -> (i32, i32) {
    %c0_i32 = arith.constant 0 : i32
    %c0_i32_0 = arith.constant 0 : i32
    %c0_i32_1 = arith.constant 0 : i32
    return %c0_i32, %c0_i32_0 : i32, i32
  }
  func.func @transform_14(%arg0: i32) -> (i32, i32) {
    %c0_i32 = arith.constant 0 : i32
    %c0_i32_0 = arith.constant 0 : i32
    %c0_i32_1 = arith.constant 0 : i32
    return %c0_i32, %c0_i32_0 : i32, i32
  }
  func.func @transform_15(%arg0: i32) -> (i32, i32, i32) {
    %c0_i32 = arith.constant 0 : i32
    %c0_i32_0 = arith.constant 0 : i32
    %c0_i32_1 = arith.constant 0 : i32
    %c0_i32_2 = arith.constant 0 : i32
    return %c0_i32, %c0_i32_0, %c0_i32_1 : i32, i32, i32
  }
  func.func @transform_16(%arg0: i32) -> (i32, i32) {
    %c0_i32 = arith.constant 0 : i32
    %c0_i32_0 = arith.constant 0 : i32
    %c0_i32_1 = arith.constant 0 : i32
    return %c0_i32, %c0_i32_0 : i32, i32
  }
  func.func @transform_17(%arg0: i32) -> (i32, i32) {
    %c0_i32 = arith.constant 0 : i32
    %c0_i32_0 = arith.constant 0 : i32
    %c0_i32_1 = arith.constant 0 : i32
    return %c0_i32, %c0_i32_0 : i32, i32
  }
  func.func @transform_18(%arg0: i32) -> (i32, i32) {
    %c0_i32 = arith.constant 0 : i32
    %c0_i32_0 = arith.constant 0 : i32
    %c0_i32_1 = arith.constant 0 : i32
    return %c0_i32, %c0_i32_0 : i32, i32
  }
  func.func @transform_19(%arg0: i32) -> (i32, i32) {
    %c0_i32 = arith.constant 0 : i32
    %c0_i32_0 = arith.constant 0 : i32
    %c0_i32_1 = arith.constant 0 : i32
    return %c0_i32, %c0_i32_0 : i32, i32
  }
  func.func @transform_20(%arg0: i32) -> (i32, i32) {
    %c0_i32 = arith.constant 0 : i32
    %c0_i32_0 = arith.constant 0 : i32
    %c0_i32_1 = arith.constant 0 : i32
    return %c0_i32, %c0_i32_0 : i32, i32
  }
  func.func @transform_21(%arg0: i32) -> (i32, i32) {
    %c0_i32 = arith.constant 0 : i32
    %c0_i32_0 = arith.constant 0 : i32
    %c0_i32_1 = arith.constant 0 : i32
    return %c0_i32, %c0_i32_0 : i32, i32
  }
}

</mosaic_0001>

<bundles_post_ra>
// kernel: tpu_custom_call.1
= control target key start
LH: loop header
LB: loop body
LE: loop exit
PB: predicated region body
PF: predicated region fallthrough
CT: control target
= control target key end

     0   :  { %s4448_s0 = inlined_call_operand.vmem [shape: bf16[32,32], index: 0, kind: input, shape index: {}]   ;;  %s4449_s1 = inlined_call_operand.vmem [shape: bf16[5,32,256], index: 1, kind: input, shape index: {}]   ;;  %s4450_s2 = inlined_call_operand.vmem [shape: f32[1,256], index: 2, kind: input, shape index: {}]   ;;  %s4451_s3 = inlined_call_operand.vmem [shape: f32[1,256], index: 3, kind: input, shape index: {}]   ;;  %s4452_s4 = inlined_call_operand.vmem [shape: bf16[3,256,128], index: 4, kind: input, shape index: {}]   ;;  %s4453_s5 = inlined_call_operand.vmem [shape: f32[1,128], index: 5, kind: input, shape index: {}]   ;;  %s4454_s6 = inlined_call_operand.vmem [shape: f32[1,128], index: 6, kind: input, shape index: {}]   ;;  %s4455_s7 = inlined_call_operand.vmem [shape: f32[128,192], index: 7, kind: input, shape index: {}]   ;;  %s4456_s8 = inlined_call_operand.vmem [shape: f32[128,192], index: 8, kind: input, shape index: {}]   ;;  %s4457_s9 = inlined_call_operand.vmem [shape: f32[1,192], index: 9, kind: input, shape index: {}]   ;;  %s4458_s10 = inlined_call_operand.vmem [shape: f32[1,192], index: 10, kind: input, shape index: {}]   ;;  %s4459_s11 = inlined_call_operand.vmem [shape: f32[64,192], index: 11, kind: input, shape index: {}]   ;;  %s4460_s12 = inlined_call_operand.hbm [shape: f32[64,192], index: 12, kind: input, shape index: {}]   ;;  %s4461_s13 = inlined_call_operand.vmem [shape: f32[1,64], index: 13, kind: input, shape index: {}]   ;;  %s4462_s14 = inlined_call_operand.vmem [shape: f32[1,64], index: 14, kind: input, shape index: {}]   ;;  %s4463_s15 = inlined_call_operand.vmem [shape: f32[1,1,128], index: 15, kind: input, shape index: {}]   ;;  %s4464_s16 = inlined_call_operand.<no memory space> [shape: f32[1,1], index: 16, kind: input, shape index: {}]   ;;  %s4465_s17 = inlined_call_operand.vmem [shape: f32[128,64], index: 17, kind: input, shape index: {}]   ;;  %s4466_s18 = inlined_call_operand.vmem [shape: f32[1,64], index: 18, kind: input, shape index: {}]   ;;  %s4467_s19 = inlined_call_operand.vmem [shape: f32[64,2], index: 19, kind: input, shape index: {}]   ;;  %s4468_s20 = inlined_call_operand.vmem [shape: f32[1,2], index: 20, kind: input, shape index: {}]   ;;  %s4469_s21 = inlined_call_operand.hbm [shape: f32[2,2], index: 21, kind: output, shape index: {}]  }
   0x1   :  { %4475 = sst [smem:[#allocation24_spill]] %s4448_s0  ;;  %v26_v0 = vstv %s4464_s16 }
   0x2   :  { %4476 = sst [smem:[#allocation25_spill]] %s4449_s1  ;;  %27 = vst [vmem:[#allocation8] sm:$0x1] %v26_v0 }
   0x3   :  { %4477 = sst [smem:[#allocation26_spill]] %s4450_s2 }
   0x4   :  { %4478 = sst [smem:[#allocation27_spill]] %s4451_s3 }
   0x5   :  { %4479 = sst [smem:[#allocation28_spill]] %s4452_s4 }
   0x6   :  { %4480 = sst [smem:[#allocation29_spill]] %s4453_s5 }
   0x7   :  { %28 = vsyncpa [#allocation10], 0 }
   0x8   :  { %29 = vsyncpa [#allocation11], 0  ;;  %s58_s3 = sshll.u32 %s4460_s12, 4  ;;  %s2980_s28 = smov [#allocation9]   ;;  %s59_s3 = int_to_ptr.hbm [resolvable:$true] %s58_s3 }
   0x9   :  { %s60_s29 = sshll.u32 %s2980_s28, 4  ;;  %s2981_s0 = smov 256   ;;  %s61_s29 = int_to_ptr.vmem [resolvable:$true] %s60_s29 }
   0xa   :  { %s2982_s4 = smov 16  }
   0xb   :  { %66 = dma.hbm_to_vmem [thread:$0]  %s59_s3, 2048, %s61_s29, [#allocation10], %s2981_s0, %s2981_s0, %s2982_s4  }
   0xc   :  { %2964 = dma.done.wait [#allocation10], 2048  }
   0xd   :  { %2965 = vsyncadd [#allocation10], 4294965248  ;;  %vm88_vm0 = vcmask 254976   ;;  %v4473_v1 = vmov 0   ;;  %vm90_vm1 = vcmask 257026   ;;  %v3112_v2 = vld [vmem:[%s4459_s11] sm:$0xff] }
   0xe   :  { %89 = vst.msk [vmem:[#allocation2] sm:$0x3] %vm88_vm0, %v4473_v1  ;;  %v3117_v3 = vld [vmem:[%s4459_s11 + $0x8] sm:$0xff]  ;;  %v3122_v4 = vld [vmem:[%s4459_s11 + $0x10] sm:$0xff]  ;;  %v3127_v5 = vld [vmem:[%s4459_s11 + $0x18] sm:$0xff]  ;;  %vm100_vm2 = vcmask 1041408  }
   0xf   :  { %91 = vst.msk [vmem:[#allocation2 + $0x10] sm:$0xc] %vm90_vm1, %v4473_v1  ;;  %v3132_v6 = vld [vmem:[%s4459_s11 + $0x20] sm:$0xff]  ;;  %v3137_v7 = vld [vmem:[%s4459_s11 + $0x28] sm:$0xff]  ;;  %v3142_v8 = vld [vmem:[%s4459_s11 + $0x30] sm:$0xff]  ;;  %vm101_vm3 = vcmask 1045508  }
  0x10   :  { %591 = vst [vmem:[#allocation3] sm:$0x11] %v4473_v1  ;;  %v3147_v9 = vld [vmem:[%s4459_s11 + $0x38] sm:$0xff]  ;;  %v3152_v10 = vld [vmem:[%s4459_s11 + $0x40] sm:$0xff]  ;;  %v3157_v11 = vld [vmem:[%s4459_s11 + $0x48] sm:$0xff]  ;;  %vm120_vm4 = vcmask 257024  }
  0x11   :  { %592 = vst [vmem:[#allocation3 + $0x20] sm:$0x22] %v4473_v1  ;;  %v3162_v12 = vld [vmem:[%s4459_s11 + $0x50] sm:$0xff]  ;;  %v3167_v13 = vld [vmem:[%s4459_s11 + $0x58] sm:$0xff]  ;;  %v3172_v14 = vld [vmem:[%s4459_s11 + $0x60] sm:$0xff]  ;;  %s4490_s5 = sld [smem:[#allocation25_spill]] }
  0x12   :  { %4481 = vst [vmem:[#allocation15_spill] sm:$0xff] %v3112_v2  ;;  %v3177_v15 = vld [vmem:[%s4459_s11 + $0x68] sm:$0xff]  ;;  %v3182_v16 = vld [vmem:[%s4459_s11 + $0x70] sm:$0xff]  ;;  %v3187_v17 = vld [vmem:[%s4459_s11 + $0x78] sm:$0xff]  ;;  %s4491_s2 = sld [smem:[#allocation24_spill]]  ;;  %vm179_vm6 = vcmask 261120  }
  0x13   :  { %4482 = vst [vmem:[#allocation16_spill] sm:$0xff] %v3117_v3  ;;  %v3189_v18 = vld [vmem:[#allocation9] sm:$0xff]  ;;  %v3191_v19 = vld [vmem:[#allocation9 + $0x8] sm:$0xff]  ;;  %v3193_v20 = vld [vmem:[#allocation9 + $0x10] sm:$0xff]  ;;  %vm153_vm7 = vcmask 1046528   ;;  %vm395_vm8 = vcmask 1044480  }
  0x14   :  { %4483 = vst [vmem:[#allocation17_spill] sm:$0xff] %v3127_v5  ;;  %v3195_v21 = vld [vmem:[#allocation9 + $0x18] sm:$0xff]  ;;  %v3197_v22 = vld [vmem:[#allocation9 + $0x20] sm:$0xff]  ;;  %v3199_v23 = vld [vmem:[#allocation9 + $0x28] sm:$0xff]  ;;  %vm304_vm9 = vcmask 1045504   ;;  %s4494_s29 = sld [smem:[#allocation28_spill]] }
  0x15   :  { %4484 = vst [vmem:[#allocation18_spill] sm:$0xff] %v3189_v18  ;;  %v3201_v24 = vld [vmem:[#allocation9 + $0x30] sm:$0xff]  ;;  %v3203_v25 = vld [vmem:[#allocation9 + $0x38] sm:$0xff]  ;;  %v3205_v26 = vld [vmem:[#allocation9 + $0x40] sm:$0xff]  ;;  %s4495_s22 = sld [smem:[#allocation26_spill]]  ;;  %vm601_vm10 = vcmask 1040384  }
  0x16   :  { %4485 = vst [vmem:[#allocation19_spill] sm:$0xff] %v3191_v19  ;;  %v3207_v27 = vld [vmem:[#allocation9 + $0x48] sm:$0xff]  ;;  %v3209_v28 = vld [vmem:[#allocation9 + $0x50] sm:$0xff]  ;;  %v3211_v29 = vld [vmem:[#allocation9 + $0x58] sm:$0xff]  ;;  %s4496_s24 = sld [smem:[#allocation27_spill]]  ;;  %vm602_vm11 = vcmask 1044484  }
  0x17   :  { %4486 = vst [vmem:[#allocation20_spill] sm:$0xff] %v3193_v20  ;;  %v3213_v30 = vld [vmem:[#allocation9 + $0x60] sm:$0xff]  ;;  %v3215_v31 = vld [vmem:[#allocation9 + $0x68] sm:$0xff]  ;;  %v3217_v32 = vld [vmem:[#allocation9 + $0x70] sm:$0xff]  ;;  %vm1381_vm13 = vcmask 519170   ;;  %vm1335_vm14 = vcmask 1043458  }
  0x18   :  { %4487 = vst [vmem:[#allocation21_spill] sm:$0xff] %v3195_v21  ;;  %v3219_v33 = vld [vmem:[#allocation9 + $0x78] sm:$0xff]  ;;  %v3224_v34 = vld [vmem:[%s4461_s13] sm:$0x1]  ;;  %v2379_v36 = vld [vmem:[%s4490_s5 + $0x10] sm:$0xf] }
  0x19   :  { %4488 = vst [vmem:[#allocation22_spill] sm:$0xff] %v3224_v34  ;;  %v3229_v35 = vld [vmem:[%s4462_s14] sm:$0x1]  ;;  %v2737_v37 = vld [vmem:[%s4490_s5 + $0x14] sm:$0xf0]  ;;  %vm3281_vm5 = vmor %vm100_vm2, %vm101_vm3  ;;  %s4499_s14 = sld [smem:[#allocation29_spill]] }
  0x1a   :  { %4489 = vst [vmem:[#allocation23_spill] sm:$0xff] %v3229_v35  ;;  %v2380_v38 = vor.u32 %v2737_v37, %v2379_v36  ;;  %v2736_v39 = vld [vmem:[%s4490_s5 + $0x14] sm:$0xf]  ;;  %v2381_v40 = vld [vmem:[%s4490_s5 + $0x18] sm:$0xf0]  ;;  %v2764_v1 = vld [vmem:[%s4494_s29 + $0x40] sm:$0xff] }
  0x1b   :  { %v2371_v41 = vld [vmem:[%s4490_s5] sm:$0xf]  ;;  %v2384_v42 = vor.u32 %v2736_v39, %v2381_v40  ;;  %v2735_v43 = vld [vmem:[%s4490_s5 + $0x4] sm:$0xf0]  ;;  %v2734_v44 = vld [vmem:[%s4490_s5 + $0x4] sm:$0xf] }
  0x1c   :  { %v2373_v45 = vld [vmem:[%s4490_s5 + $0x8] sm:$0xf0]  ;;  %259 = vmatpush.bf16.msra.mxu2 %v2380_v38  ;;  %v2372_v46 = vor.u32 %v2735_v43, %v2371_v41  ;;  %v2359_v47 = vld [vmem:[%s4490_s5 + $0x30] sm:$0xf]  ;;  %v2741_v48 = vld [vmem:[%s4490_s5 + $0x34] sm:$0xf0] }
  0x1d   :  { %v2740_v49 = vld [vmem:[%s4490_s5 + $0x34] sm:$0xf]  ;;  %278 = vmatpush.bf16.msra.mxu3 %v2384_v42  ;;  %v2376_v50 = vor.u32 %v2734_v44, %v2373_v45  ;;  %v2360_v51 = vor.u32 %v2741_v48, %v2359_v47  ;;  %v2361_v52 = vld [vmem:[%s4490_s5 + $0x38] sm:$0xf0]  ;;  %v92_v53 = vld [vmem:[%s4491_s2] sm:$0xf] }
  0x1e   :  { %v93_v54 = vld [vmem:[%s4491_s2 + $0x4] sm:$0xf]  ;;  %v2364_v55 = vor.u32 %v2740_v49, %v2361_v52  ;;  %v94_v56 = vld [vmem:[%s4491_s2 + $0x8] sm:$0xf]  ;;  %v95_v57 = vld [vmem:[%s4491_s2 + $0xc] sm:$0xf] }
  0x1f   :  { %v103_v58 = vrot.slane %v92_v53, 6  ;;  %v105_v59 = vrot.slane %v93_v54, 6  ;;  %192 = vmatpush.bf16.msra.mxu0 %v2360_v51  ;;  %v108_v61 = vrot.slane %v94_v56, 6  ;;  %v111_v62 = vrot.slane %v95_v57, 6  ;;  %v2351_v63 = vld [vmem:[%s4490_s5 + $0x20] sm:$0xf]  ;;  %vm3594_vm12 = vmor %vm601_vm10, %vm602_vm11 }
  0x20   :  { %v2739_v0 = vld [vmem:[%s4490_s5 + $0x24] sm:$0xf0]  ;;  %260 = vmatpush.bf16.msra.mxu2 %v2372_v46  ;;  %211 = vmatpush.bf16.msra.mxu1 %v2364_v55  ;;  %v2738_v39 = vld [vmem:[%s4490_s5 + $0x24] sm:$0xf]  ;;  %v2353_v42 = vld [vmem:[%s4490_s5 + $0x28] sm:$0xf0] }
  0x21   :  { %v104_v36 = vrot.slane %v103_v58, 4  ;;  %v107_v37 = vrot.slane %v105_v59, 4  ;;  %119 = vst.msk [vmem:[#allocation2] sm:$0xc] %vm90_vm1, %v103_v58  ;;  %v2352_v38 = vor.u32 %v2739_v0, %v2351_v63  ;;  %279 = vmatpush.bf16.msra.mxu3 %v2376_v50  ;;  %v110_v40 = vrot.slane %v108_v61, 4  ;;  %v2778_v35 = vld [vmem:[%s4494_s29 + $0xb0] sm:$0xff]  ;;  %vm3888_vm15 = vmor %vm1381_vm13, %vm100_vm2 }
  0x22   :  { %v113_v41 = vrot.slane %v111_v62, 4  ;;  %v2403_v43 = vld [vmem:[%s4490_s5 + $0x50] sm:$0xf]  ;;  %v2356_v46 = vor.u32 %v2738_v39, %v2353_v42  ;;  %v2745_v47 = vld [vmem:[%s4490_s5 + $0x54] sm:$0xf0]  ;;  %v2777_v19 = vld [vmem:[%s4494_s29 + $0xa8] sm:$0xff] }
  0x23   :  { %v106_v44 = vsel %vm3281_vm5, %v104_v36, %v105_v59  ;;  %v109_v45 = vsel %vm3281_vm5, %v107_v37, %v108_v61  ;;  %v2744_v48 = vld [vmem:[%s4490_s5 + $0x54] sm:$0xf]  ;;  %v2405_v49 = vld [vmem:[%s4490_s5 + $0x58] sm:$0xf0]  ;;  %v112_v50 = vsel %vm3281_vm5, %v110_v40, %v111_v62  ;;  %193 = vmatpush.bf16.msra.mxu0 %v2352_v38  ;;  %v2404_v51 = vor.u32 %v2745_v47, %v2403_v43  ;;  %v2395_v53 = vld [vmem:[%s4490_s5 + $0x40] sm:$0xf] }
  0x24   :  { %121 = vst.msk [vmem:[#allocation2 + $0x4] sm:$0xf] %vm120_vm4, %v106_v44  ;;  %v2408_v52 = vor.u32 %v2744_v48, %v2405_v49  ;;  %v2743_v54 = vld [vmem:[%s4490_s5 + $0x44] sm:$0xf0]  ;;  %212 = vmatpush.bf16.msra.mxu1 %v2356_v46  ;;  %v2742_v55 = vld [vmem:[%s4490_s5 + $0x44] sm:$0xf] }
  0x25   :  { %122 = vst.msk [vmem:[#allocation2 + $0x8] sm:$0xf] %vm120_vm4, %v109_v45  ;;  %v2397_v56 = vld [vmem:[%s4490_s5 + $0x48] sm:$0xf0]  ;;  %v2396_v57 = vor.u32 %v2743_v54, %v2395_v53  ;;  %v2427_v59 = vld [vmem:[%s4490_s5 + $0x70] sm:$0xf] }
  0x26   :  { %123 = vst.msk [vmem:[#allocation2 + $0xc] sm:$0xf] %vm120_vm4, %v112_v50  ;;  %v2400_v58 = vor.u32 %v2742_v55, %v2397_v56  ;;  %v2749_v60 = vld [vmem:[%s4490_s5 + $0x74] sm:$0xf0]  ;;  %v2748_v62 = vld [vmem:[%s4490_s5 + $0x74] sm:$0xf] }
  0x27   :  { %342 = vmatpush.bf16.msrb.mxu0 %v2404_v51  ;;  %124 = vst.msk [vmem:[#allocation2 + $0x10] sm:$0x3] %vm88_vm0, %v113_v41  ;;  %v2428_v61 = vor.u32 %v2749_v60, %v2427_v59  ;;  %v2429_v63 = vld [vmem:[%s4490_s5 + $0x78] sm:$0xf0]  ;;  %v2419_v37 = vld [vmem:[%s4490_s5 + $0x60] sm:$0xf] }
  0x28   :  { %361 = vmatpush.bf16.msrb.mxu1 %v2408_v52  ;;  %v133_v0 = vld [vmem:[#allocation2] sm:$0xe]  ;;  %v2432_v36 = vor.u32 %v2748_v62, %v2429_v63  ;;  %v2747_v38 = vld [vmem:[%s4490_s5 + $0x64] sm:$0xf0]  ;;  %v2746_v40 = vld [vmem:[%s4490_s5 + $0x64] sm:$0xf] }
  0x29   :  { %433 = vmatpush.bf16.msrb.mxu2 %v2428_v61  ;;  %v2420_v39 = vor.u32 %v2747_v38, %v2419_v37  ;;  %v2421_v41 = vld [vmem:[%s4490_s5 + $0x68] sm:$0xf0]  ;;  %v145_v42 = vunpack.c.l.b16 %v133_v0  ;;  %v2451_v52 = vld [vmem:[%s4490_s5 + $0x90] sm:$0xf]  ;;  %v2753_v53 = vld [vmem:[%s4490_s5 + $0x94] sm:$0xf0] }
  0x2a   :  { %452 = vmatpush.bf16.msrb.mxu3 %v2432_v36  ;;  %v2424_v44 = vor.u32 %v2746_v40, %v2421_v41  ;;  %v2452_v55 = vor.u32 %v2753_v53, %v2451_v52  ;;  %v2752_v56 = vld [vmem:[%s4490_s5 + $0x94] sm:$0xf]  ;;  %v382_v60 = vld [vmem:[#allocation2] sm:$0x8]  ;;  %v2751_v38 = vld [vmem:[%s4490_s5 + $0x84] sm:$0xf0] }
  0x2b   :  { %343 = vmatpush.bf16.msrb.mxu0 %v2396_v57  ;;  %v2807_v43 = vld [vmem:[#allocation2] sm:$0xff]   ;;  %v2453_v57 = vld [vmem:[%s4490_s5 + $0x98] sm:$0xf0]  ;;  %v391_v62 = vunpack.c.l.b16 %v382_v60  ;;  %v2785_v3 = vld [vmem:[%s4494_s29 + $0xe8] sm:$0xff] }
  0x2c   :  { %362 = vmatpush.bf16.msrb.mxu1 %v2400_v58  ;;  %v3356_v45 = vunpack.c.h.b16 %v2807_v43  ;;  %2385 = vmatmul.msk.bf16.vlgmr.msra.gmra.mxu2 %vm179_vm6, %v2807_v43  ;;  %v2456_v58 = vor.u32 %v2752_v56, %v2453_v57  ;;  %v291_v36 = vld [vmem:[#allocation2] sm:$0xc]  ;;  %v555_v18 = vld [vmem:[%s4495_s22] sm:$0x3] }
  0x2d   :  { %2387 = vmatmul.msk.bf16.vlgmr.msra.gmra.mxu3 %vm179_vm6, %v2807_v43  ;;  %v3360_v46 = vld [vmem:[#allocation2 + $0x8] sm:$0xff]   ;;  %434 = vmatpush.bf16.msrb.mxu2 %v2420_v39  ;;  %v2443_v37 = vld [vmem:[%s4490_s5 + $0x80] sm:$0xf]  ;;  %v2750_v39 = vld [vmem:[%s4490_s5 + $0x84] sm:$0xf]  ;;  %v300_v40 = vunpack.c.l.b16 %v291_v36 }
  0x2e   :  { %v150_v47 = vpack.c.b16 %v3356_v45, %v145_v42  ;;  %v155_v48 = vrot.slane %v3360_v46, 1  ;;  %453 = vmatpush.bf16.msrb.mxu3 %v2424_v44  ;;  %v134_v50 = vld [vmem:[#allocation2 + $0x10] sm:$0x1]  ;;  %v393_v0 = vpack.c.b16 %v3356_v45, %v391_v62  ;;  %v2444_v41 = vor.u32 %v2751_v38, %v2443_v37  ;;  %v2445_v42 = vld [vmem:[%s4490_s5 + $0x88] sm:$0xf0] }
  0x2f   :  { %v149_v54 = vunpack.c.l.b16 %v134_v50  ;;  %v397_v44 = vrot.slane %v3360_v46, 3  ;;  %v383_v50 = vld [vmem:[#allocation2 + $0x10] sm:$0x7]  ;;  %v306_v52 = vrot.slane %v3360_v46, 2 }
  0x30   :  { %v154_v49 = vrot.slane %v150_v47, 1  ;;  %v396_v43 = vrot.slane %v393_v0, 3  ;;  %v2448_v47 = vor.u32 %v2750_v39, %v2445_v42  ;;  %v392_v53 = vunpack.c.l.b16 %v383_v50  ;;  %v292_v56 = vld [vmem:[#allocation2 + $0x10] sm:$0x3]  ;;  %v2771_v50 = vld [vmem:[%s4494_s29 + $0x78] sm:$0xff] }
  0x31   :  { %v152_v59 = vpack.c.b16 %v149_v54, %v149_v54  ;;  %v301_v57 = vunpack.c.l.b16 %v292_v56  ;;  %v2821_v36 = vld [vmem:[#allocation2 + $0xc] sm:$0xff] }
  0x32   :  { %v156_v51 = vsel %vm153_vm7, %v154_v49, %v155_v48  ;;  %v398_v49 = vsel %vm395_vm8, %v396_v43, %v397_v44  ;;  %v2769_v56 = vld [vmem:[%s4494_s29 + $0x68] sm:$0xff] }
  0x33   :  { %2365 = vmatmul.msk.bf16.vlgmr.msra.gmra.mxu0 %vm179_vm6, %v156_v51  ;;  %2367 = vmatmul.msk.bf16.vlgmr.msra.gmra.mxu1 %vm179_vm6, %v156_v51  ;;  %v157_v61 = vrot.slane %v152_v59, 1  ;;  %v303_v59 = vpack.c.b16 %v301_v57, %v301_v57 }
  0x34   :  { %515 = vmatpush.bf16.msra.mxu0 %v2452_v55  ;;  %534 = vmatpush.bf16.msra.mxu1 %v2456_v58  ;;  %v394_v55 = vpack.c.b16 %v392_v53, %v392_v53 }
  0x35   :  { %v158_v63 = vsel %vm153_vm7, %v155_v48, %v157_v61  ;;  %v302_v48 = vpack.c.b16 %v3356_v45, %v300_v40  ;;  %v308_v61 = vrot.slane %v303_v59, 2  ;;  %v2760_v59 = vld [vmem:[%s4494_s29 + $0x20] sm:$0xff] }
  0x36   :  { %v399_v58 = vrot.slane %v394_v55, 3  ;;  %v2761_v55 = vld [vmem:[%s4494_s29 + $0x28] sm:$0xff] }
  0x37   :  { %v305_v51 = vrot.slane %v302_v48, 2  ;;  %v309_v62 = vsel %vm304_vm9, %v306_v52, %v308_v61 }
  0x38   :  { %516 = vmatpush.bf16.msra.mxu0 %v2444_v41  ;;  %535 = vmatpush.bf16.msra.mxu1 %v2448_v47  ;;  %v400_v60 = vsel %vm395_vm8, %v397_v44, %v399_v58 }
  0x39   :  { %v307_v54 = vsel %vm304_vm9, %v305_v51, %v306_v52  ;;  %v2762_v51 = vld [vmem:[%s4494_s29 + $0x30] sm:$0xff] }
  0x3a   :  { %v2770_v52 = vld [vmem:[%s4494_s29 + $0x70] sm:$0xff] }
  0x3c   :  { %2386 = vmatmul.msk.bf16.gmra.mxu2 %vm179_vm6, %v3360_v46 }
  0x3d   :  { %2388 = vmatmul.msk.bf16.gmra.mxu3 %vm179_vm6, %v3360_v46 }
  0x43   :  { %2366 = vmatmul.msk.bf16.gmra.mxu0 %vm179_vm6, %v158_v63  ;;  %2368 = vmatmul.msk.bf16.gmra.mxu1 %vm179_vm6, %v158_v63  ;;  %v2812_v63 = vunpack.c.l.b16 %v3360_v46 }
  0x45   :  { %v481_v0 = vpack.c.b16 %v2812_v63, %v3356_v45  ;;  %v2759_v63 = vld [vmem:[%s4494_s29 + $0x18] sm:$0xff] }
  0x4c   :  { %2433 = vmatmul.msk.bf16.vlgmr.msrb.gmra.mxu2 %vm179_vm6, %v398_v49 }
  0x4d   :  { %2435 = vmatmul.msk.bf16.vlgmr.msrb.gmra.mxu3 %vm179_vm6, %v398_v49  ;;  %v2763_v49 = vld [vmem:[%s4494_s29 + $0x38] sm:$0xff] }
  0x53   :  { %2409 = vmatmul.msk.bf16.vlgmr.msrb.gmra.mxu0 %vm179_vm6, %v307_v54  ;;  %2411 = vmatmul.msk.bf16.vlgmr.msrb.gmra.mxu1 %vm179_vm6, %v307_v54 }
  0x54   :  { %970 = vmatpush.bf16.msrb.mxu0 %v2763_v49  ;;  %989 = vmatpush.bf16.msrb.mxu1 %v2771_v50  ;;  %v2758_v50 = vld [vmem:[%s4494_s29 + $0x10] sm:$0xff] }
  0x58   :  { %971 = vmatpush.bf16.msrb.mxu0 %v2762_v51  ;;  %990 = vmatpush.bf16.msrb.mxu1 %v2770_v52  ;;  %v2766_v51 = vld [vmem:[%s4494_s29 + $0x50] sm:$0xff] }
  0x5c   :  { %2434 = vmatmul.msk.bf16.gmra.mxu2 %vm179_vm6, %v400_v60  ;;  %972 = vmatpush.bf16.msrb.mxu0 %v2761_v55 }
  0x5d   :  { %2436 = vmatmul.msk.bf16.gmra.mxu3 %vm179_vm6, %v400_v60  ;;  %991 = vmatpush.bf16.msrb.mxu1 %v2769_v56  ;;  %v2768_v60 = vld [vmem:[%s4494_s29 + $0x60] sm:$0xff]  ;;  %v2757_v56 = vld [vmem:[%s4494_s29 + $0x8] sm:$0xff] }
  0x60   :  { %973 = vmatpush.bf16.msrb.mxu0 %v2760_v59  ;;  %v2765_v59 = vld [vmem:[%s4494_s29 + $0x48] sm:$0xff] }
  0x61   :  { %992 = vmatpush.bf16.msrb.mxu1 %v2768_v60  ;;  %v2779_v60 = vld [vmem:[%s4494_s29 + $0xb8] sm:$0xff] }
  0x62   :  { %827 = vmatpush.bf16.msra.mxu2 %v2779_v60 }
  0x63   :  { %2410 = vmatmul.msk.bf16.gmra.mxu0 %vm179_vm6, %v309_v62  ;;  %2412 = vmatmul.msk.bf16.gmra.mxu1 %vm179_vm6, %v309_v62 }
  0x64   :  { %974 = vmatpush.bf16.msrb.mxu0 %v2759_v63  ;;  %v2787_v63 = vld [vmem:[%s4494_s29 + $0xf8] sm:$0xff] }
  0x65   :  { %846 = vmatpush.bf16.msra.mxu3 %v2787_v63 }
  0x66   :  { %828 = vmatpush.bf16.msra.mxu2 %v2778_v35  ;;  %v569_v35 = vld [vmem:[%s4496_s24] sm:$0x3] }
  0x67   :  { %v3544_v5 = vperm.slane %v569_v35, 0 }
  0x68   :  { %975 = vmatpush.bf16.msrb.mxu0 %v2758_v50 }
  0x6a   :  { %829 = vmatpush.bf16.msra.mxu2 %v2777_v19  ;;  %v3538_v19 = vperm.slane %v555_v18, 1 }
  0x6c   :  { %976 = vmatpush.bf16.msrb.mxu0 %v2757_v56  ;;  %v2786_v56 = vld [vmem:[%s4494_s29 + $0xf0] sm:$0xff] }
  0x6d   :  { %847 = vmatpush.bf16.msra.mxu3 %v2786_v56 }
  0x71   :  { %848 = vmatpush.bf16.msra.mxu3 %v2785_v3 }
  0x73   :  { %2457 = vmatmul.msk.bf16.vlgmr.msra.gmra.mxu0 %vm179_vm6, %v481_v0  ;;  %2459 = vmatmul.msk.bf16.vlgmr.msra.gmra.mxu1 %vm179_vm6, %v481_v0  ;;  %v2767_v0 = vld [vmem:[%s4494_s29 + $0x58] sm:$0xff] }
  0x74   :  { %993 = vmatpush.bf16.msrb.mxu1 %v2767_v0 }
  0x78   :  { %994 = vmatpush.bf16.msrb.mxu1 %v2766_v51  ;;  %v2756_v51 = vld [vmem:[%s4494_s29] sm:$0xff] }
  0x79   :  { %977 = vmatpush.bf16.msrb.mxu0 %v2756_v51 }
  0x7c   :  { %995 = vmatpush.bf16.msrb.mxu1 %v2765_v59 }
  0x80   :  { %996 = vmatpush.bf16.msrb.mxu1 %v2764_v1 }
  0x83   :  { %2458 = vmatmul.msk.bf16.gmra.mxu0 %vm179_vm6, %v2821_v36  ;;  %2460 = vmatmul.msk.bf16.gmra.mxu1 %vm179_vm6, %v2821_v36 }
  0xaf   :  { %v262_v46 = vpop.f32.mrf.mxu2 }
  0xb0   :  { %v3420_v37 = vpop.f32.mrf.mxu0  ;;  %v3422_v38 = vpop.f32.mrf.mxu1 }
  0xb1   :  { %v281_v41 = vpop.f32.mrf.mxu3  ;;  %v263_v63 = vadd.f32 %v262_v46, %v3420_v37  ;;  %v2776_v37 = vld [vmem:[%s4494_s29 + $0xa0] sm:$0xff] }
  0xb2   :  { %v282_v34 = vadd.f32 %v281_v41, %v3422_v38  ;;  %v2784_v38 = vld [vmem:[%s4494_s29 + $0xe0] sm:$0xff]  ;;  %830 = vmatpush.bf16.msra.mxu2 %v2776_v37  ;;  %v2782_v37 = vld [vmem:[%s4494_s29 + $0xd0] sm:$0xff] }
  0xb3   :  { %849 = vmatpush.bf16.msra.mxu3 %v2784_v38 }
  0xb7   :  { %v3436_v47 = vpop.f32.mrf.mxu2 }
  0xb8   :  { %v3424_v39 = vpop.f32.mrf.mxu0  ;;  %v3426_v40 = vpop.f32.mrf.mxu1 }
  0xb9   :  { %v3438_v48 = vpop.f32.mrf.mxu3  ;;  %v265_v3 = vadd.f32 %v3436_v47, %v3424_v39  ;;  %v2775_v39 = vld [vmem:[%s4494_s29 + $0x98] sm:$0xff] }
  0xba   :  { %v284_v56 = vadd.f32 %v3438_v48, %v3426_v40  ;;  %v2783_v40 = vld [vmem:[%s4494_s29 + $0xd8] sm:$0xff]  ;;  %831 = vmatpush.bf16.msra.mxu2 %v2775_v39 }
  0xbb   :  { %850 = vmatpush.bf16.msra.mxu3 %v2783_v40 }
  0xbf   :  { %v3458_v57 = vpop.f32.mrf.mxu2  ;;  %851 = vmatpush.bf16.msra.mxu3 %v2782_v37 }
  0xc0   :  { %v3428_v45 = vpop.f32.mrf.mxu0  ;;  %v3430_v42 = vpop.f32.mrf.mxu1 }
  0xc1   :  { %v3460_v58 = vpop.f32.mrf.mxu3  ;;  %v268_v38 = vadd.f32 %v3458_v57, %v3428_v45 }
  0xc7   :  { %v3474_v36 = vpop.f32.mrf.mxu2 }
  0xc8   :  { %v3432_v43 = vpop.f32.mrf.mxu0  ;;  %v3434_v44 = vpop.f32.mrf.mxu1 }
  0xc9   :  { %v3476_v49 = vpop.f32.mrf.mxu3 }
  0xcf   :  { %v436_v0 = vpop.f32.mrf.mxu2 }
  0xd0   :  { %v345_v53 = vpop.f32.mrf.mxu0  ;;  %v364_v54 = vpop.f32.mrf.mxu1 }
  0xd1   :  { %v455_v50 = vpop.f32.mrf.mxu3  ;;  %v374_v51 = vadd.f32 %v345_v53, %v263_v63  ;;  %v375_v1 = vadd.f32 %v364_v54, %v282_v34  ;;  %v3536_v54 = vperm.slane %v555_v18, 0 }
  0xd3   :  { %v465_v46 = vadd.f32 %v436_v0, %v374_v51  ;;  %v466_v34 = vadd.f32 %v455_v50, %v375_v1  ;;  %v3546_v50 = vperm.slane %v569_v35, 1  ;;  %v2774_v35 = vld [vmem:[%s4494_s29 + $0x90] sm:$0xff] }
  0xd4   :  { %832 = vmatpush.bf16.msra.mxu2 %v2774_v35 }
  0xd7   :  { %v438_v41 = vpop.f32.mrf.mxu2 }
  0xd8   :  { %v347_v61 = vpop.f32.mrf.mxu0  ;;  %v366_v62 = vpop.f32.mrf.mxu1 }
  0xd9   :  { %v457_v53 = vpop.f32.mrf.mxu3  ;;  %v376_v51 = vadd.f32 %v347_v61, %v265_v3  ;;  %v377_v1 = vadd.f32 %v366_v62, %v284_v56  ;;  %v2773_v56 = vld [vmem:[%s4494_s29 + $0x88] sm:$0xff] }
  0xda   :  { %833 = vmatpush.bf16.msra.mxu2 %v2773_v56 }
  0xdb   :  { %v467_v48 = vadd.f32 %v438_v41, %v376_v51  ;;  %v468_v61 = vadd.f32 %v457_v53, %v377_v1 }
  0xdf   :  { %v441_v57 = vpop.f32.mrf.mxu2 }
  0xe0   :  { %v3484_v52 = vpop.f32.mrf.mxu0  ;;  %v3486_v55 = vpop.f32.mrf.mxu1 }
  0xe1   :  { %v378_v45 = vadd.f32 %v3484_v52, %v268_v38  ;;  %v2772_v52 = vld [vmem:[%s4494_s29 + $0x80] sm:$0xff] }
  0xe2   :  { %834 = vmatpush.bf16.msra.mxu2 %v2772_v52 }
  0xe3   :  { %v469_v40 = vadd.f32 %v441_v57, %v378_v45 }
  0xe8   :  { %v3512_v59 = vpop.f32.mrf.mxu0  ;;  %v3514_v60 = vpop.f32.mrf.mxu1 }
  0xf0   :  { %v518_v63 = vpop.f32.mrf.mxu0  ;;  %v537_v2 = vpop.f32.mrf.mxu1 }
  0xf1   :  { %v547_v21 = vadd.f32 %v518_v63, %v465_v46  ;;  %v548_v0 = vadd.f32 %v537_v2, %v466_v34  ;;  %v2781_v63 = vld [vmem:[%s4494_s29 + $0xc8] sm:$0xff] }
  0xf2   :  { %852 = vmatpush.bf16.msra.mxu3 %v2781_v63 }
  0xf3   :  { %v561_v18 = vmul.f32 %v3536_v54, %v547_v21  ;;  %v562_v20 = vmul.f32 %v3538_v19, %v548_v0  ;;  %v460_v0 = vpop.f32.mrf.mxu3 }
  0xf5   :  { %v575_v47 = vadd.f32 %v3544_v5, %v561_v18  ;;  %v576_v2 = vadd.f32 %v3546_v50, %v562_v20  ;;  %v287_v20 = vadd.f32 %v3460_v58, %v3430_v42 }
  0xf7   :  { %v583_v62 = vmax.f32 %v575_v47, 0.0  ;;  %v584_v21 = vmax.f32 %v576_v2, 0.0  ;;  %v379_v42 = vadd.f32 %v3486_v55, %v287_v20  ;;  %v2780_v55 = vld [vmem:[%s4494_s29 + $0xc0] sm:$0xff] }
  0xf8   :  { %v520_v46 = vpop.f32.mrf.mxu0  ;;  %v539_v34 = vpop.f32.mrf.mxu1  ;;  %853 = vmatpush.bf16.msra.mxu3 %v2780_v55 }
  0xf9   :  { %v593_v41 = vpack.c.bf16 %v584_v21, %v583_v62  ;;  %v549_v53 = vadd.f32 %v520_v46, %v467_v48  ;;  %v550_v3 = vadd.f32 %v539_v34, %v468_v61  ;;  %v470_v47 = vadd.f32 %v460_v0, %v379_v42  ;;  %v2794_v0 = vld [vmem:[%s4494_s29 + $0x130] sm:$0xff] }
  0xfa   :  { %v270_v61 = vadd.f32 %v3474_v36, %v3432_v43  ;;  %v289_v62 = vadd.f32 %v3476_v49, %v3434_v44 }
  0xfb   :  { %v604_v58 = vrot.slane %v593_v41, 7  ;;  %v563_v51 = vmul.f32 %v3536_v54, %v549_v53  ;;  %v564_v1 = vmul.f32 %v3538_v19, %v550_v3  ;;  %v2795_v53 = vld [vmem:[%s4494_s29 + $0x138] sm:$0xff]  ;;  %v462_v3 = vpop.f32.mrf.mxu3  ;;  %v2789_v41 = vld [vmem:[%s4494_s29 + $0x108] sm:$0xff] }
  0xfc   :  { %v380_v46 = vadd.f32 %v3512_v59, %v270_v61  ;;  %v381_v34 = vadd.f32 %v3514_v60, %v289_v62  ;;  %v2803_v59 = vld [vmem:[%s4494_s29 + $0x178] sm:$0xff]  ;;  %v443_v60 = vpop.f32.mrf.mxu2  ;;  %1163 = vmatpush.bf16.msrb.mxu2 %v2795_v53 }
  0xfd   :  { %620 = vst [vmem:[#allocation3] sm:$0xee] %v604_v58  ;;  %v577_v18 = vadd.f32 %v3544_v5, %v563_v51  ;;  %v578_v39 = vadd.f32 %v3546_v50, %v564_v1  ;;  %v605_v43 = vrot.slane %v604_v58, 4  ;;  %1182 = vmatpush.bf16.msrb.mxu3 %v2803_v59  ;;  %v2800_v59 = vld [vmem:[%s4494_s29 + $0x160] sm:$0xff] }
  0xff   :  { %v585_v2 = vmax.f32 %v577_v18, 0.0  ;;  %v586_v48 = vmax.f32 %v578_v39, 0.0  ;;  %v471_v18 = vadd.f32 %v443_v60, %v380_v46  ;;  %v472_v39 = vadd.f32 %v462_v3, %v381_v34 }
 0x100   :  { %v523_v21 = vpop.f32.mrf.mxu0  ;;  %v542_v35 = vpop.f32.mrf.mxu1  ;;  %1164 = vmatpush.bf16.msrb.mxu2 %v2794_v0  ;;  %v2790_v0 = vld [vmem:[%s4494_s29 + $0x110] sm:$0xff] }
 0x101   :  { %v594_v37 = vpack.c.bf16 %v586_v48, %v585_v2  ;;  %v551_v38 = vadd.f32 %v523_v21, %v469_v40  ;;  %v552_v20 = vadd.f32 %v542_v35, %v470_v47  ;;  %v2802_v40 = vld [vmem:[%s4494_s29 + $0x170] sm:$0xff] }
 0x102   :  { %1183 = vmatpush.bf16.msrb.mxu3 %v2802_v40 }
 0x103   :  { %v606_v36 = vrot.slane %v594_v37, 7  ;;  %v565_v44 = vmul.f32 %v3536_v54, %v551_v38  ;;  %v566_v49 = vmul.f32 %v3538_v19, %v552_v20  ;;  %v2793_v37 = vld [vmem:[%s4494_s29 + $0x128] sm:$0xff] }
 0x104   :  { %v625_v56 = vld [vmem:[#allocation3] sm:$0xff]  ;;  %1165 = vmatpush.bf16.msrb.mxu2 %v2793_v37 }
 0x105   :  { %v607_v63 = vsel %vm3594_vm12, %v605_v43, %v606_v36  ;;  %v579_v45 = vadd.f32 %v3544_v5, %v565_v44  ;;  %v580_v57 = vadd.f32 %v3546_v50, %v566_v49  ;;  %v866_v58 = vunpack.c.l.b16 %v625_v56  ;;  %v2801_v43 = vld [vmem:[%s4494_s29 + $0x168] sm:$0xff] }
 0x106   :  { %v3613_v42 = vunpack.c.l.b16 %v607_v63  ;;  %v3615_v51 = vunpack.c.h.b16 %v607_v63  ;;  %v867_v1 = vunpack.c.h.b16 %v625_v56  ;;  %v608_v38 = vrot.slane %v606_v36, 4  ;;  %v2792_v36 = vld [vmem:[%s4494_s29 + $0x120] sm:$0xff]  ;;  %1184 = vmatpush.bf16.msrb.mxu3 %v2801_v43 }
 0x107   :  { %v587_v52 = vmax.f32 %v579_v45, 0.0  ;;  %v588_v55 = vmax.f32 %v580_v57, 0.0  ;;  %v661_v57 = vld [vmem:[#allocation3] sm:$0xee] }
 0x108   :  { %v525_v47 = vpop.f32.mrf.mxu0  ;;  %v544_v2 = vpop.f32.mrf.mxu1  ;;  %v868_v48 = vpack.c.b16 %v3613_v42, %v866_v58  ;;  %v869_v61 = vpack.c.b16 %v3615_v51, %v867_v1  ;;  %1166 = vmatpush.bf16.msrb.mxu2 %v2792_v36  ;;  %v2798_v58 = vld [vmem:[%s4494_s29 + $0x150] sm:$0xff]  ;;  %v701_v1 = vunpack.c.l.b16 %v661_v57 }
 0x109   :  { %v595_v62 = vpack.c.bf16 %v588_v55, %v587_v52  ;;  %v553_v21 = vadd.f32 %v525_v47, %v471_v18  ;;  %v554_v35 = vadd.f32 %v544_v2, %v472_v39  ;;  %v702_v18 = vunpack.c.h.b16 %v661_v57  ;;  %v2797_v39 = vld [vmem:[%s4494_s29 + $0x148] sm:$0xff] }
 0x10a   :  { %978 = vmatmul.bf16.vlgmr.msrb.gmra.mxu0 %v868_v48  ;;  %997 = vmatmul.bf16.vlgmr.msrb.gmra.mxu1 %v869_v61  ;;  %v711_v40 = vpack.c.b16 %v3613_v42, %v701_v1  ;;  %v2788_v61 = vld [vmem:[%s4494_s29 + $0x100] sm:$0xff] }
 0x10b   :  { %v609_v20 = vrot.slane %v595_v62, 7  ;;  %v567_v46 = vmul.f32 %v3536_v54, %v553_v21  ;;  %v568_v34 = vmul.f32 %v3538_v19, %v554_v35  ;;  %1185 = vmatpush.bf16.msrb.mxu3 %v2800_v59  ;;  %v712_v47 = vpack.c.b16 %v3615_v51, %v702_v18 }
 0x10c   :  { %v717_v35 = vrot.slane %v711_v40, 1 }
 0x10d   :  { %v610_v44 = vsel %vm3594_vm12, %v608_v38, %v609_v20  ;;  %v581_v49 = vadd.f32 %v3544_v5, %v567_v46  ;;  %v582_v53 = vadd.f32 %v3546_v50, %v568_v34  ;;  %v611_v3 = vrot.slane %v609_v20, 4  ;;  %v2791_v5 = vld [vmem:[%s4494_s29 + $0x118] sm:$0xff]  ;;  %v2796_v46 = vld [vmem:[%s4494_s29 + $0x140] sm:$0xff] }
 0x10e   :  { %622 = vst [vmem:[#allocation3 + $0x10] sm:$0xff] %v610_v44  ;;  %v2799_v50 = vld [vmem:[%s4494_s29 + $0x158] sm:$0xff]  ;;  %1167 = vmatpush.bf16.msrb.mxu2 %v2791_v5  ;;  %v720_v38 = vrot.slane %v712_v47, 1 }
 0x10f   :  { %v589_v54 = vmax.f32 %v581_v49, 0.0  ;;  %v590_v19 = vmax.f32 %v582_v53, 0.0  ;;  %1186 = vmatpush.bf16.msrb.mxu3 %v2799_v50 }
 0x111   :  { %v596_v60 = vpack.c.bf16 %v590_v19, %v589_v54 }
 0x112   :  { %1168 = vmatpush.bf16.msrb.mxu2 %v2790_v0 }
 0x113   :  { %v612_v56 = vrot.slane %v596_v60, 7  ;;  %1187 = vmatpush.bf16.msrb.mxu3 %v2798_v58 }
 0x115   :  { %v613_v63 = vsel %vm3594_vm12, %v611_v3, %v612_v56  ;;  %v614_v45 = vrot.slane %v612_v56, 4  ;;  %v2495_v52 = vld [vmem:[#allocation3 + $0x10] sm:$0xf]  ;;  %v2754_v55 = vld [vmem:[#allocation3 + $0x14] sm:$0xf] }
 0x116   :  { %623 = vst [vmem:[#allocation3 + $0x18] sm:$0xff] %v613_v63  ;;  %1169 = vmatpush.bf16.msrb.mxu2 %v2789_v41  ;;  %v1008_v56 = vld [vmem:[#allocation3] sm:$0xcc] }
 0x117   :  { %624 = vst [vmem:[#allocation3 + $0x20] sm:$0x11] %v614_v45  ;;  %1188 = vmatpush.bf16.msrb.mxu3 %v2797_v39  ;;  %v1045_v5 = vunpack.c.l.b16 %v1008_v56  ;;  %v1046_v50 = vunpack.c.h.b16 %v1008_v56  ;;  %v1421_v56 = vld [vmem:[%s4456_s8 + $0xb0] sm:$0xff] }
 0x119   :  { %v1049_v63 = vpack.c.b16 %v3613_v42, %v1045_v5  ;;  %v1050_v45 = vpack.c.b16 %v3615_v51, %v1046_v50  ;;  %v1420_v5 = vld [vmem:[%s4456_s8 + $0xa8] sm:$0xff]  ;;  %v1245_v50 = vld [vmem:[%s4455_s7 + $0xa0] sm:$0xff] }
 0x11a   :  { %1170 = vmatpush.bf16.msrb.mxu2 %v2788_v61  ;;  %v1430_v61 = vld [vmem:[%s4456_s8 + $0xf8] sm:$0xff] }
 0x11b   :  { %1189 = vmatpush.bf16.msrb.mxu3 %v2796_v46  ;;  %v1053_v58 = vrot.slane %v1049_v63, 2  ;;  %v1056_v1 = vrot.slane %v1050_v45, 2  ;;  %v1427_v46 = vld [vmem:[%s4456_s8 + $0xe0] sm:$0xff]  ;;  %v1246_v63 = vld [vmem:[%s4455_s7 + $0xa8] sm:$0xff] }
 0x11c   :  { %v1419_v45 = vld [vmem:[%s4456_s8 + $0xa0] sm:$0xff] }
 0x11d   :  { %v2755_v2 = vld [vmem:[#allocation3 + $0x14] sm:$0xf0]  ;;  %v2497_v48 = vld [vmem:[#allocation3 + $0x18] sm:$0xf0] }
 0x11e   :  { %v2496_v62 = vor.u32 %v2755_v2, %v2495_v52  ;;  %v2500_v21 = vor.u32 %v2754_v55, %v2497_v48  ;;  %v662_v44 = vld [vmem:[#allocation3 + $0x20] sm:$0x11] }
 0x11f   :  { %v709_v49 = vunpack.c.l.b16 %v662_v44  ;;  %v710_v53 = vunpack.c.h.b16 %v662_v44  ;;  %v1009_v39 = vld [vmem:[#allocation3 + $0x20] sm:$0x33] }
 0x120   :  { %983 = vmatmul.bf16.gmra.mxu0 %v2496_v62  ;;  %1002 = vmatmul.bf16.gmra.mxu1 %v2500_v21  ;;  %v718_v37 = vrot.slane %v2496_v62, 1  ;;  %v721_v20 = vrot.slane %v2500_v21, 1  ;;  %v1054_v57 = vrot.slane %v2496_v62, 2  ;;  %v1057_v0 = vrot.slane %v2500_v21, 2  ;;  %v1255_v62 = vld [vmem:[%s4455_s7 + $0xf0] sm:$0xff]  ;;  %v1256_v21 = vld [vmem:[%s4455_s7 + $0xf8] sm:$0xff] }
 0x121   :  { %v715_v36 = vpack.c.b16 %v709_v49, %v709_v49  ;;  %v716_v54 = vpack.c.b16 %v710_v53, %v710_v53  ;;  %v1047_v52 = vunpack.c.l.b16 %v1009_v39  ;;  %v1048_v55 = vunpack.c.h.b16 %v1009_v39  ;;  %1263 = vmatpush.msra.mxu0 %v1255_v62  ;;  %1292 = vmatpush.msra.mxu1 %v1256_v21  ;;  %v1252_v44 = vld [vmem:[%s4455_s7 + $0xd8] sm:$0xff]  ;;  %v1425_v49 = vld [vmem:[%s4456_s8 + $0xd0] sm:$0xff]  ;;  %v1424_v53 = vld [vmem:[%s4456_s8 + $0xc8] sm:$0xff] }
 0x122   :  { %v719_v34 = vsel %vm153_vm7, %v717_v35, %v718_v37  ;;  %v722_v43 = vsel %vm153_vm7, %v720_v38, %v721_v20  ;;  %v1055_v18 = vsel %vm304_vm9, %v1053_v58, %v1054_v57  ;;  %v1058_v41 = vsel %vm304_vm9, %v1056_v1, %v1057_v0  ;;  %v1429_v35 = vld [vmem:[%s4456_s8 + $0xf0] sm:$0xff]  ;;  %v1253_v38 = vld [vmem:[%s4455_s7 + $0xe0] sm:$0xff]  ;;  %v1244_v58 = vld [vmem:[%s4455_s7 + $0x98] sm:$0xff] }
 0x123   :  { %835 = vmatmul.bf16.vlgmr.msra.gmra.mxu2 %v719_v34  ;;  %854 = vmatmul.bf16.vlgmr.msra.gmra.mxu3 %v722_v43  ;;  %v723_v19 = vrot.slane %v715_v36, 1  ;;  %v725_v59 = vrot.slane %v716_v54, 1  ;;  %v1051_v40 = vpack.c.b16 %v1047_v52, %v1047_v52  ;;  %v1052_v47 = vpack.c.b16 %v1048_v55, %v1048_v55  ;;  %v1426_v34 = vld [vmem:[%s4456_s8 + $0xd8] sm:$0xff]  ;;  %v1251_v43 = vld [vmem:[%s4455_s7 + $0xd0] sm:$0xff]  ;;  %v1249_v36 = vld [vmem:[%s4455_s7 + $0xc0] sm:$0xff] }
 0x124   :  { %1466 = vmatpush.msra.mxu3 %v1430_v61  ;;  %1437 = vmatpush.msra.mxu2 %v1429_v35  ;;  %v1250_v54 = vld [vmem:[%s4455_s7 + $0xc8] sm:$0xff]  ;;  %v1417_v1 = vld [vmem:[%s4456_s8 + $0x90] sm:$0xff]  ;;  %v1415_v52 = vld [vmem:[%s4456_s8 + $0x80] sm:$0xff] }
 0x125   :  { %v724_v60 = vsel %vm153_vm7, %v718_v37, %v723_v19  ;;  %v726_v3 = vsel %vm153_vm7, %v721_v20, %v725_v59  ;;  %v1059_v2 = vrot.slane %v1051_v40, 2  ;;  %v1061_v48 = vrot.slane %v1052_v47, 2  ;;  %v1428_v37 = vld [vmem:[%s4456_s8 + $0xe8] sm:$0xff]  ;;  %1264 = vmatpush.msra.mxu0 %v1253_v38  ;;  %v1423_v19 = vld [vmem:[%s4456_s8 + $0xc0] sm:$0xff]  ;;  %v1422_v59 = vld [vmem:[%s4456_s8 + $0xb8] sm:$0xff] }
 0x126   :  { %v1254_v20 = vld [vmem:[%s4455_s7 + $0xe8] sm:$0xff]  ;;  %1467 = vmatpush.msra.mxu3 %v1428_v37  ;;  %1438 = vmatpush.msra.mxu2 %v1427_v46  ;;  %v1414_v55 = vld [vmem:[%s4456_s8 + $0x78] sm:$0xff]  ;;  %v1239_v40 = vld [vmem:[%s4455_s7 + $0x70] sm:$0xff] }
 0x127   :  { %v1060_v42 = vsel %vm304_vm9, %v1054_v57, %v1059_v2  ;;  %v1062_v51 = vsel %vm304_vm9, %v1057_v0, %v1061_v48  ;;  %1293 = vmatpush.msra.mxu1 %v1254_v20  ;;  %1265 = vmatpush.msra.mxu0 %v1251_v43  ;;  %v1418_v57 = vld [vmem:[%s4456_s8 + $0x98] sm:$0xff]  ;;  %v1243_v0 = vld [vmem:[%s4455_s7 + $0x90] sm:$0xff]  ;;  %v1242_v39 = vld [vmem:[%s4455_s7 + $0x88] sm:$0xff] }
 0x128   :  { %1468 = vmatpush.msra.mxu3 %v1426_v34  ;;  %1439 = vmatpush.msra.mxu2 %v1425_v49  ;;  %v1240_v47 = vld [vmem:[%s4455_s7 + $0x78] sm:$0xff]  ;;  %v1413_v2 = vld [vmem:[%s4456_s8 + $0x70] sm:$0xff]  ;;  %v1412_v48 = vld [vmem:[%s4456_s8 + $0x68] sm:$0xff] }
 0x129   :  { %1294 = vmatpush.msra.mxu1 %v1252_v44  ;;  %1266 = vmatpush.msra.mxu0 %v1249_v36  ;;  %v1411_v61 = vld [vmem:[%s4456_s8 + $0x60] sm:$0xff]  ;;  %v1410_v62 = vld [vmem:[%s4456_s8 + $0x58] sm:$0xff]  ;;  %v1235_v37 = vld [vmem:[%s4455_s7 + $0x50] sm:$0xff] }
 0x12a   :  { %1469 = vmatpush.msra.mxu3 %v1424_v53  ;;  %1440 = vmatpush.msra.mxu2 %v1423_v19  ;;  %v1236_v38 = vld [vmem:[%s4455_s7 + $0x58] sm:$0xff]  ;;  %v1409_v20 = vld [vmem:[%s4456_s8 + $0x50] sm:$0xff]  ;;  %v1408_v46 = vld [vmem:[%s4456_s8 + $0x48] sm:$0xff] }
 0x12b   :  { %1295 = vmatpush.msra.mxu1 %v1250_v54  ;;  %v1233_v34 = vld [vmem:[%s4455_s7 + $0x40] sm:$0xff]  ;;  %v1234_v43 = vld [vmem:[%s4455_s7 + $0x48] sm:$0xff]  ;;  %v1406_v49 = vld [vmem:[%s4456_s8 + $0x38] sm:$0xff] }
 0x12c   :  { %1470 = vmatpush.msra.mxu3 %v1422_v59  ;;  %1441 = vmatpush.msra.mxu2 %v1421_v56  ;;  %v1407_v44 = vld [vmem:[%s4456_s8 + $0x40] sm:$0xff]  ;;  %v1231_v53 = vld [vmem:[%s4455_s7 + $0x30] sm:$0xff]  ;;  %v1232_v36 = vld [vmem:[%s4455_s7 + $0x38] sm:$0xff] }
 0x12d   :  { %v1405_v54 = vld [vmem:[%s4456_s8 + $0x30] sm:$0xff]  ;;  %v1230_v56 = vld [vmem:[%s4455_s7 + $0x28] sm:$0xff] }
 0x12e   :  { %1471 = vmatpush.msra.mxu3 %v1420_v5  ;;  %1442 = vmatpush.msra.mxu2 %v1419_v45  ;;  %v1403_v5 = vld [vmem:[%s4456_s8 + $0x20] sm:$0xff]  ;;  %v1228_v45 = vld [vmem:[%s4455_s7 + $0x18] sm:$0xff] }
 0x130   :  { %1472 = vmatpush.msra.mxu3 %v1418_v57  ;;  %1443 = vmatpush.msra.mxu2 %v1417_v1  ;;  %v1401_v57 = vld [vmem:[%s4456_s8 + $0x10] sm:$0xff]  ;;  %v1226_v1 = vld [vmem:[%s4455_s7 + $0x8] sm:$0xff] }
 0x132   :  { %1444 = vmatpush.msra.mxu2 %v1415_v52 }
 0x133   :  { %840 = vmatmul.bf16.gmra.mxu2 %v724_v60  ;;  %859 = vmatmul.bf16.gmra.mxu3 %v726_v3  ;;  %v1247_v60 = vld [vmem:[%s4455_s7 + $0xb0] sm:$0xff]  ;;  %v1248_v3 = vld [vmem:[%s4455_s7 + $0xb8] sm:$0xff] }
 0x134   :  { %1267 = vmatpush.msra.mxu0 %v1247_v60  ;;  %1296 = vmatpush.msra.mxu1 %v1248_v3  ;;  %v1404_v60 = vld [vmem:[%s4456_s8 + $0x28] sm:$0xff]  ;;  %v1229_v3 = vld [vmem:[%s4455_s7 + $0x20] sm:$0xff] }
 0x135   :  { %1445 = vmatpush.msra.mxu2 %v1413_v2 }
 0x136   :  { %1268 = vmatpush.msra.mxu0 %v1245_v50  ;;  %1297 = vmatpush.msra.mxu1 %v1246_v63  ;;  %v1402_v50 = vld [vmem:[%s4456_s8 + $0x18] sm:$0xff]  ;;  %v1227_v63 = vld [vmem:[%s4455_s7 + $0x10] sm:$0xff] }
 0x137   :  { %1446 = vmatpush.msra.mxu2 %v1411_v61 }
 0x138   :  { %1269 = vmatpush.msra.mxu0 %v1243_v0  ;;  %1298 = vmatpush.msra.mxu1 %v1244_v58  ;;  %v1400_v0 = vld [vmem:[%s4456_s8 + $0x8] sm:$0xff]  ;;  %v1225_v58 = vld [vmem:[%s4455_s7] sm:$0xff] }
 0x139   :  { %1447 = vmatpush.msra.mxu2 %v1409_v20 }
 0x13a   :  { %1299 = vmatpush.msra.mxu1 %v1242_v39 }
 0x13b   :  { %1448 = vmatpush.msra.mxu2 %v1407_v44 }
 0x13c   :  { %1300 = vmatpush.msra.mxu1 %v1240_v47 }
 0x13d   :  { %1449 = vmatpush.msra.mxu2 %v1405_v54 }
 0x13f   :  { %1450 = vmatpush.msra.mxu2 %v1403_v5 }
 0x141   :  { %1451 = vmatpush.msra.mxu2 %v1401_v57 }
 0x143   :  { %1171 = vmatmul.bf16.vlgmr.msrb.gmra.mxu2 %v1055_v18  ;;  %1190 = vmatmul.bf16.vlgmr.msrb.gmra.mxu3 %v1058_v41  ;;  %v1416_v18 = vld [vmem:[%s4456_s8 + $0x88] sm:$0xff]  ;;  %v1241_v41 = vld [vmem:[%s4455_s7 + $0x80] sm:$0xff] }
 0x144   :  { %1473 = vmatpush.msra.mxu3 %v1416_v18  ;;  %1270 = vmatpush.msra.mxu0 %v1241_v41  ;;  %v1399_v18 = vld [vmem:[%s4456_s8] sm:$0xff] }
 0x145   :  { %1452 = vmatpush.msra.mxu2 %v1399_v18 }
 0x146   :  { %1474 = vmatpush.msra.mxu3 %v1414_v55  ;;  %1271 = vmatpush.msra.mxu0 %v1239_v40 }
 0x148   :  { %1475 = vmatpush.msra.mxu3 %v1412_v48 }
 0x14a   :  { %1476 = vmatpush.msra.mxu3 %v1410_v62 }
 0x14c   :  { %1477 = vmatpush.msra.mxu3 %v1408_v46 }
 0x14e   :  { %1478 = vmatpush.msra.mxu3 %v1406_v49 }
 0x150   :  { %1479 = vmatpush.msra.mxu3 %v1404_v60 }
 0x152   :  { %1480 = vmatpush.msra.mxu3 %v1402_v50 }
 0x153   :  { %1176 = vmatmul.bf16.gmra.mxu2 %v1060_v42  ;;  %1195 = vmatmul.bf16.gmra.mxu3 %v1062_v51  ;;  %v1237_v42 = vld [vmem:[%s4455_s7 + $0x60] sm:$0xff]  ;;  %v1238_v51 = vld [vmem:[%s4455_s7 + $0x68] sm:$0xff] }
 0x154   :  { %1272 = vmatpush.msra.mxu0 %v1237_v42  ;;  %1301 = vmatpush.msra.mxu1 %v1238_v51 }
 0x155   :  { %1481 = vmatpush.msra.mxu3 %v1400_v0 }
 0x156   :  { %1273 = vmatpush.msra.mxu0 %v1235_v37  ;;  %1302 = vmatpush.msra.mxu1 %v1236_v38  ;;  %v2853_v38 = vld [vmem:[%s4499_s14] ss:$0 sm:$0xff] }
 0x158   :  { %1274 = vmatpush.msra.mxu0 %v1233_v34  ;;  %1303 = vmatpush.msra.mxu1 %v1234_v43  ;;  %v2854_v34 = vld [vmem:[%s4454_s6] ss:$0 sm:$0xff] }
 0x15a   :  { %1275 = vmatpush.msra.mxu0 %v1231_v53  ;;  %1304 = vmatpush.msra.mxu1 %v1232_v36 }
 0x15c   :  { %1276 = vmatpush.msra.mxu0 %v1229_v3  ;;  %1305 = vmatpush.msra.mxu1 %v1230_v56 }
 0x15e   :  { %1277 = vmatpush.msra.mxu0 %v1227_v63  ;;  %1306 = vmatpush.msra.mxu1 %v1228_v45 }
 0x160   :  { %1278 = vmatpush.msra.mxu0 %v1225_v58  ;;  %1307 = vmatpush.msra.mxu1 %v1226_v1 }
 0x187   :  { %v979_v52 = vpop.f32.mrf.mxu0  ;;  %v998_v2 = vpop.f32.mrf.mxu1 }
 0x18f   :  { %v981_v20 = vpop.f32.mrf.mxu0  ;;  %v1000_v43 = vpop.f32.mrf.mxu1 }
 0x19d   :  { %v984_v60 = vpop.f32.mrf.mxu0  ;;  %v1003_v56 = vpop.f32.mrf.mxu1 }
 0x1a6   :  { %v836_v21 = vpop.f32.mrf.mxu2  ;;  %v855_v35 = vpop.f32.mrf.mxu3 }
 0x1a7   :  { %v856_v47 = vadd.f32 %v855_v35, %v836_v21 }
 0x1a9   :  { %v980_v48 = vadd.f32 %v979_v52, %v856_v47 }
 0x1ab   :  { %v999_v62 = vadd.f32 %v998_v2, %v980_v48  ;;  %v1005_v2 = vpop.f32.mrf.mxu1 }
 0x1ae   :  { %v838_v19 = vpop.f32.mrf.mxu2  ;;  %v857_v59 = vpop.f32.mrf.mxu3 }
 0x1af   :  { %v858_v61 = vadd.f32 %v857_v59, %v838_v19 }
 0x1b1   :  { %v982_v44 = vadd.f32 %v981_v20, %v858_v61 }
 0x1b3   :  { %v1001_v19 = vadd.f32 %v1000_v43, %v982_v44  ;;  %v1257_v43 = vld [vmem:[%s4457_s9] sm:$0x3]  ;;  %s4011_s9 = smov 0  }
 0x1b4   :  { %v3879_v44 = vperm.slane %v1257_v43, 1 }
 0x1b6   :  { %v841_v41 = vpop.f32.mrf.mxu2  ;;  %v860_v39 = vpop.f32.mrf.mxu3 }
 0x1b7   :  { %v861_v36 = vadd.f32 %v860_v39, %v841_v41  ;;  %v986_v39 = vpop.f32.mrf.mxu0 }
 0x1b9   :  { %v985_v5 = vadd.f32 %v984_v60, %v861_v36 }
 0x1bb   :  { %v1004_v1 = vadd.f32 %v1003_v56, %v985_v5 }
 0x1be   :  { %v843_v55 = vpop.f32.mrf.mxu2  ;;  %v862_v40 = vpop.f32.mrf.mxu3 }
 0x1bf   :  { %v863_v0 = vadd.f32 %v862_v40, %v843_v55 }
 0x1c1   :  { %v987_v52 = vadd.f32 %v986_v39, %v863_v0 }
 0x1c6   :  { %v1172_v42 = vpop.f32.mrf.mxu2  ;;  %v1191_v51 = vpop.f32.mrf.mxu3 }
 0x1c7   :  { %v1192_v37 = vadd.f32 %v1191_v51, %v1172_v42 }
 0x1c9   :  { %v1201_v46 = vadd.f32 %v1192_v37, %v999_v62  ;;  %v1006_v62 = vadd.f32 %v1005_v2, %v987_v52 }
 0x1cb   :  { %v1209_v21 = vmul.f32 %v2853_v38, %v1201_v46 }
 0x1cd   :  { %v1217_v35 = vadd.f32 %v2854_v34, %v1209_v21  ;;  %v3881_v21 = vperm.slane %v1257_v43, 0 }
 0x1ce   :  { %v1174_v49 = vpop.f32.mrf.mxu2  ;;  %v1193_v53 = vpop.f32.mrf.mxu3 }
 0x1cf   :  { %v1221_v54 = vmax.f32 %v1217_v35, 0.0  ;;  %v1194_v59 = vadd.f32 %v1193_v53, %v1174_v49 }
 0x1d1   :  { %v1202_v3 = vadd.f32 %v1194_v59, %v1001_v19  ;;  %1279 = vmatmul.f32.vlgmr.msra.gmra.mxu0 %v1221_v54  ;;  %1308 = vmatmul.f32.vlgmr.msra.gmra.mxu1 %v1221_v54 }
 0x1d2   :  { %1453 = vmatmul.f32.vlgmr.msra.gmra.mxu2 %v1221_v54  ;;  %1482 = vmatmul.f32.vlgmr.msra.gmra.mxu3 %v1221_v54 }
 0x1d3   :  { %v1210_v50 = vmul.f32 %v2853_v38, %v1202_v3 }
 0x1d5   :  { %v1218_v63 = vadd.f32 %v2854_v34, %v1210_v50 }
 0x1d6   :  { %v1177_v45 = vpop.f32.mrf.mxu2  ;;  %v1196_v57 = vpop.f32.mrf.mxu3 }
 0x1d7   :  { %v1222_v58 = vmax.f32 %v1218_v63, 0.0  ;;  %v1197_v18 = vadd.f32 %v1196_v57, %v1177_v45 }
 0x1d9   :  { %v1203_v41 = vadd.f32 %v1197_v18, %v1004_v1  ;;  %1282 = vmatmul.f32.gmra.mxu0 %v1222_v58  ;;  %1311 = vmatmul.f32.gmra.mxu1 %v1222_v58 }
 0x1da   :  { %1456 = vmatmul.f32.gmra.mxu2 %v1222_v58  ;;  %1485 = vmatmul.f32.gmra.mxu3 %v1222_v58 }
 0x1db   :  { %v1211_v47 = vmul.f32 %v2853_v38, %v1203_v41 }
 0x1dd   :  { %v1219_v48 = vadd.f32 %v2854_v34, %v1211_v47 }
 0x1de   :  { %v1179_v42 = vpop.f32.mrf.mxu2  ;;  %v1198_v51 = vpop.f32.mrf.mxu3 }
 0x1df   :  { %v1223_v61 = vmax.f32 %v1219_v48, 0.0  ;;  %v1199_v37 = vadd.f32 %v1198_v51, %v1179_v42 }
 0x1e1   :  { %v1204_v20 = vadd.f32 %v1199_v37, %v1006_v62  ;;  %1285 = vmatmul.f32.gmra.mxu0 %v1223_v61  ;;  %1314 = vmatmul.f32.gmra.mxu1 %v1223_v61 }
 0x1e2   :  { %1459 = vmatmul.f32.gmra.mxu2 %v1223_v61  ;;  %1488 = vmatmul.f32.gmra.mxu3 %v1223_v61 }
 0x1e3   :  { %v1212_v55 = vmul.f32 %v2853_v38, %v1204_v20  ;;  %v1431_v38 = vld [vmem:[%s4458_s10] sm:$0x3] }
 0x1e4   :  { %v3893_v19 = vperm.slane %v1431_v38, 1  ;;  %v3901_v45 = vperm.slane %v1431_v38, 0 }
 0x1e5   :  { %v1220_v40 = vadd.f32 %v2854_v34, %v1212_v55 }
 0x1e7   :  { %v1224_v46 = vmax.f32 %v1220_v40, 0.0 }
 0x1e9   :  { %1288 = vmatmul.f32.gmra.mxu0 %v1224_v46  ;;  %1317 = vmatmul.f32.gmra.mxu1 %v1224_v46 }
 0x1ea   :  { %1462 = vmatmul.f32.gmra.mxu2 %v1224_v46  ;;  %1491 = vmatmul.f32.gmra.mxu3 %v1224_v46 }
 0x24e   :  { %v1280_v35 = vpop.f32.mrf.mxu0  ;;  %v1309_v49 = vpop.f32.mrf.mxu1 }
 0x24f   :  { %v1310_v53 = vadd.f32 %v1309_v49, %v3879_v44  ;;  %v1281_v36 = vadd.f32 %v1280_v35, %v3881_v21 }
 0x251   :  { %v1329_v54 = vrot.slane %v1310_v53, 6 }
 0x253   :  { %v1334_v59 = vsel %vm100_vm2, %v1281_v36, %v1329_v54  ;;  %v1336_v60 = vsel %vm1335_vm14, %v1281_v36, %v1329_v54  ;;  %v1339_v3 = vsel %vm101_vm3, %v1281_v36, %v1329_v54  ;;  %v1342_v56 = vsel %vm304_vm9, %v1329_v54, %v1281_v36 }
 0x254   :  { %v1337_v5 = vrot.slane %v1336_v60, 2  ;;  %v1340_v50 = vrot.slane %v1339_v3, 4  ;;  %v1343_v63 = vrot.slane %v1342_v56, 6  ;;  %1383 = vst.msk [vmem:[#allocation4] sm:$0xf] %vm3888_vm15, %v1334_v59 }
 0x255   :  { %v1454_v57 = vpop.f32.mrf.mxu2  ;;  %v1483_v0 = vpop.f32.mrf.mxu3 }
 0x256   :  { %1384 = vst.msk [vmem:[#allocation4 + $0x4] sm:$0xf] %vm3888_vm15, %v1337_v5  ;;  %v1484_v58 = vadd.f32 %v1483_v0, %v3893_v19  ;;  %v1283_v1 = vpop.f32.mrf.mxu0  ;;  %v1312_v18 = vpop.f32.mrf.mxu1  ;;  %v1455_v39 = vadd.f32 %v1454_v57, %v3901_v45 }
 0x257   :  { %1385 = vst.msk [vmem:[#allocation4 + $0x8] sm:$0xf] %vm3888_vm15, %v1340_v50  ;;  %v1313_v41 = vadd.f32 %v1312_v18, %v3879_v44  ;;  %v1284_v47 = vadd.f32 %v1283_v1, %v3881_v21 }
 0x258   :  { %1386 = vst.msk [vmem:[#allocation4 + $0xc] sm:$0xf] %vm3888_vm15, %v1343_v63  ;;  %v1503_v52 = vrot.slane %v1484_v58, 6 }
 0x259   :  { %v1330_v2 = vrot.slane %v1313_v41, 6 }
 0x25a   :  { %v1507_v48 = vsel %vm100_vm2, %v1455_v39, %v1503_v52  ;;  %v1508_v42 = vsel %vm1335_vm14, %v1455_v39, %v1503_v52  ;;  %v1510_v51 = vsel %vm101_vm3, %v1455_v39, %v1503_v52  ;;  %v1512_v61 = vsel %vm304_vm9, %v1503_v52, %v1455_v39 }
 0x25b   :  { %v1509_v62 = vrot.slane %v1508_v42, 2  ;;  %v1511_v37 = vrot.slane %v1510_v51, 4  ;;  %v1513_v20 = vrot.slane %v1512_v61, 6  ;;  %1551 = vst.msk [vmem:[#allocation5] sm:$0xf] %vm3888_vm15, %v1507_v48  ;;  %v1344_v55 = vsel %vm100_vm2, %v1284_v47, %v1330_v2 }
 0x25c   :  { %v1345_v40 = vsel %vm1335_vm14, %v1284_v47, %v1330_v2  ;;  %v1347_v46 = vsel %vm101_vm3, %v1284_v47, %v1330_v2  ;;  %v1349_v43 = vsel %vm304_vm9, %v1330_v2, %v1284_v47  ;;  %1387 = vst.msk [vmem:[#allocation4 + $0x10] sm:$0xf] %vm3888_vm15, %v1344_v55 }
 0x25d   :  { %1552 = vst.msk [vmem:[#allocation5 + $0x4] sm:$0xf] %vm3888_vm15, %v1509_v62  ;;  %v1346_v35 = vrot.slane %v1345_v40, 2  ;;  %v1348_v49 = vrot.slane %v1347_v46, 4  ;;  %v1457_v53 = vpop.f32.mrf.mxu2  ;;  %v1486_v38 = vpop.f32.mrf.mxu3  ;;  %v1350_v36 = vrot.slane %v1349_v43, 6 }
 0x25e   :  { %1553 = vst.msk [vmem:[#allocation5 + $0x8] sm:$0xf] %vm3888_vm15, %v1511_v37  ;;  %v1487_v54 = vadd.f32 %v1486_v38, %v3893_v19  ;;  %v1286_v59 = vpop.f32.mrf.mxu0  ;;  %v1315_v60 = vpop.f32.mrf.mxu1  ;;  %v1458_v56 = vadd.f32 %v1457_v53, %v3901_v45 }
 0x25f   :  { %1554 = vst.msk [vmem:[#allocation5 + $0xc] sm:$0xf] %vm3888_vm15, %v1513_v20  ;;  %v1316_v3 = vadd.f32 %v1315_v60, %v3879_v44  ;;  %v1287_v50 = vadd.f32 %v1286_v59, %v3881_v21 }
 0x260   :  { %1388 = vst.msk [vmem:[#allocation4 + $0x14] sm:$0xf] %vm3888_vm15, %v1346_v35  ;;  %v1504_v5 = vrot.slane %v1487_v54, 6 }
 0x261   :  { %1389 = vst.msk [vmem:[#allocation4 + $0x18] sm:$0xf] %vm3888_vm15, %v1348_v49  ;;  %v1331_v63 = vrot.slane %v1316_v3, 6 }
 0x262   :  { %1390 = vst.msk [vmem:[#allocation4 + $0x1c] sm:$0xf] %vm3888_vm15, %v1350_v36  ;;  %v1514_v57 = vsel %vm100_vm2, %v1458_v56, %v1504_v5  ;;  %v1515_v0 = vsel %vm1335_vm14, %v1458_v56, %v1504_v5  ;;  %v1517_v58 = vsel %vm101_vm3, %v1458_v56, %v1504_v5  ;;  %v1519_v1 = vsel %vm304_vm9, %v1504_v5, %v1458_v56 }
 0x263   :  { %v1516_v18 = vrot.slane %v1515_v0, 2  ;;  %v1518_v41 = vrot.slane %v1517_v58, 4  ;;  %v1520_v39 = vrot.slane %v1519_v1, 6  ;;  %1555 = vst.msk [vmem:[#allocation5 + $0x10] sm:$0xf] %vm3888_vm15, %v1514_v57  ;;  %v1351_v52 = vsel %vm100_vm2, %v1287_v50, %v1331_v63 }
 0x264   :  { %v1352_v47 = vsel %vm1335_vm14, %v1287_v50, %v1331_v63  ;;  %v1354_v2 = vsel %vm101_vm3, %v1287_v50, %v1331_v63  ;;  %v1356_v48 = vsel %vm304_vm9, %v1331_v63, %v1287_v50  ;;  %1391 = vst.msk [vmem:[#allocation4 + $0x20] sm:$0xf] %vm3888_vm15, %v1351_v52 }
 0x265   :  { %1556 = vst.msk [vmem:[#allocation5 + $0x14] sm:$0xf] %vm3888_vm15, %v1516_v18  ;;  %v1353_v42 = vrot.slane %v1352_v47, 2  ;;  %v1355_v51 = vrot.slane %v1354_v2, 4  ;;  %v1460_v61 = vpop.f32.mrf.mxu2  ;;  %v1489_v62 = vpop.f32.mrf.mxu3  ;;  %v1357_v37 = vrot.slane %v1356_v48, 6 }
 0x266   :  { %1557 = vst.msk [vmem:[#allocation5 + $0x18] sm:$0xf] %vm3888_vm15, %v1518_v41  ;;  %v1490_v20 = vadd.f32 %v1489_v62, %v3893_v19  ;;  %v1289_v55 = vpop.f32.mrf.mxu0  ;;  %v1318_v40 = vpop.f32.mrf.mxu1  ;;  %v1461_v43 = vadd.f32 %v1460_v61, %v3901_v45  ;;  %v4009_v61 = vmov 0.0  }
 0x267   :  { %1558 = vst.msk [vmem:[#allocation5 + $0x1c] sm:$0xf] %vm3888_vm15, %v1520_v39  ;;  %v1319_v46 = vadd.f32 %v1318_v40, %v3879_v44  ;;  %v1290_v49 = vadd.f32 %v1289_v55, %v3881_v21 }
 0x268   :  { %1392 = vst.msk [vmem:[#allocation4 + $0x24] sm:$0xf] %vm3888_vm15, %v1353_v42  ;;  %v1505_v35 = vrot.slane %v1490_v20, 6 }
 0x269   :  { %1393 = vst.msk [vmem:[#allocation4 + $0x28] sm:$0xf] %vm3888_vm15, %v1355_v51  ;;  %v1332_v53 = vrot.slane %v1319_v46, 6 }
 0x26a   :  { %1394 = vst.msk [vmem:[#allocation4 + $0x2c] sm:$0xf] %vm3888_vm15, %v1357_v37  ;;  %v1521_v38 = vsel %vm100_vm2, %v1461_v43, %v1505_v35  ;;  %v1522_v36 = vsel %vm1335_vm14, %v1461_v43, %v1505_v35  ;;  %v1524_v44 = vsel %vm101_vm3, %v1461_v43, %v1505_v35  ;;  %v1526_v54 = vsel %vm304_vm9, %v1505_v35, %v1461_v43 }
 0x26b   :  { %v1523_v59 = vrot.slane %v1522_v36, 2  ;;  %v1525_v60 = vrot.slane %v1524_v44, 4  ;;  %v1527_v3 = vrot.slane %v1526_v54, 6  ;;  %1559 = vst.msk [vmem:[#allocation5 + $0x20] sm:$0xf] %vm3888_vm15, %v1521_v38  ;;  %v1358_v21 = vsel %vm100_vm2, %v1290_v49, %v1332_v53 }
 0x26c   :  { %v1359_v56 = vsel %vm1335_vm14, %v1290_v49, %v1332_v53  ;;  %v1361_v5 = vsel %vm101_vm3, %v1290_v49, %v1332_v53  ;;  %v1363_v50 = vsel %vm304_vm9, %v1332_v53, %v1290_v49  ;;  %1395 = vst.msk [vmem:[#allocation4 + $0x30] sm:$0xf] %vm3888_vm15, %v1358_v21 }
 0x26d   :  { %1560 = vst.msk [vmem:[#allocation5 + $0x24] sm:$0xf] %vm3888_vm15, %v1523_v59  ;;  %v1360_v63 = vrot.slane %v1359_v56, 2  ;;  %v1362_v57 = vrot.slane %v1361_v5, 4  ;;  %v1463_v0 = vpop.f32.mrf.mxu2  ;;  %v1492_v58 = vpop.f32.mrf.mxu3  ;;  %v1364_v1 = vrot.slane %v1363_v50, 6 }
 0x26e   :  { %1561 = vst.msk [vmem:[#allocation5 + $0x28] sm:$0xf] %vm3888_vm15, %v1525_v60  ;;  %v1493_v18 = vadd.f32 %v1492_v58, %v3893_v19  ;;  %v1464_v41 = vadd.f32 %v1463_v0, %v3901_v45  ;;  %v4007_v45 = vmov 0.0  }
 0x26f   :  { %1562 = vst.msk [vmem:[#allocation5 + $0x2c] sm:$0xf] %vm3888_vm15, %v1527_v3 }
 0x270   :  { %1396 = vst.msk [vmem:[#allocation4 + $0x34] sm:$0xf] %vm3888_vm15, %v1360_v63  ;;  %v1506_v39 = vrot.slane %v1493_v18, 6 }
 0x271   :  { %1397 = vst.msk [vmem:[#allocation4 + $0x38] sm:$0xf] %vm3888_vm15, %v1362_v57 }
 0x272   :  { %1398 = vst.msk [vmem:[#allocation4 + $0x3c] sm:$0xf] %vm3888_vm15, %v1364_v1  ;;  %v1528_v52 = vsel %vm100_vm2, %v1464_v41, %v1506_v39  ;;  %v1529_v47 = vsel %vm1335_vm14, %v1464_v41, %v1506_v39  ;;  %v1531_v19 = vsel %vm101_vm3, %v1464_v41, %v1506_v39  ;;  %v1533_v2 = vsel %vm304_vm9, %v1506_v39, %v1464_v41 }
 0x273   :  { %v1530_v48 = vrot.slane %v1529_v47, 2  ;;  %v1532_v42 = vrot.slane %v1531_v19, 4  ;;  %v1534_v51 = vrot.slane %v1533_v2, 6  ;;  %1563 = vst.msk [vmem:[#allocation5 + $0x30] sm:$0xf] %vm3888_vm15, %v1528_v52 }
 0x275   :  { %1564 = vst.msk [vmem:[#allocation5 + $0x34] sm:$0xf] %vm3888_vm15, %v1530_v48 }
 0x276   :  { %1565 = vst.msk [vmem:[#allocation5 + $0x38] sm:$0xf] %vm3888_vm15, %v1532_v42 }
 0x277   :  { %1566 = vst.msk [vmem:[#allocation5 + $0x3c] sm:$0xf] %vm3888_vm15, %v1534_v51 }
 0x278 LB: > { %1630 = vmatpush.msra.mxu0 %v3182_v16  ;;  %1673 = vmatpush.msra.mxu2 %v3217_v32  ;;  %v4502_v34 = vld [vmem:[#allocation20_spill] sm:$0xff]  ;;  %vm1618_vm0 = vcmask 523264   ;;  %v4503_v62 = vld [vmem:[#allocation17_spill] sm:$0xff]  ;;  %v4505_v20 = vld [vmem:[#allocation15_spill] sm:$0xff]  ;;  %s2804_s10 = sshll.u32 %s2978_s9, 2  ;;  %s1609_s28 = ssub.s32 15, %s2978_s9  ;;  %s2978_s9 = sphi %s4011_s9, %s1606_s9   ;;  %v2974_v61 = vphi %v4009_v61, %v1745_v61   ;;  %v2970_v45 = vphi %v4007_v45, %v1756_v45  }
 0x279   : > { %1650 = vmatpush.msra.mxu1 %v3187_v17  ;;  %1693 = vmatpush.msra.mxu3 %v3219_v33  ;;  %v4504_v37 = vld [vmem:[#allocation21_spill] sm:$0xff]  ;;  %v4506_v55 = vld [vmem:[#allocation18_spill] sm:$0xff]  ;;  %v4507_v40 = vld [vmem:[#allocation16_spill] sm:$0xff]  ;;  %s1612_s11 = scalar_lea.vmem [#allocation4], %s2804_s10  ;;  %s2805_s0 = sshll.u32 %s1609_s28, 2  ;;  %vm1758_vm1 = vcmask 517120  }
 0x27a   : > { %1631 = vmatpush.msra.mxu0 %v3172_v14  ;;  %1674 = vmatpush.msra.mxu2 %v3213_v30  ;;  %v4508_v46 = vld [vmem:[#allocation19_spill] sm:$0xff]  ;;  %s1616_s4 = scalar_lea.vmem [#allocation5], %s2805_s0  ;;  %v4509_v54 = vld [vmem:[#allocation22_spill] sm:$0xff]  ;;  %s2984_s12 = smov 64  }
 0x27b   : > { %1651 = vmatpush.msra.mxu1 %v3177_v15  ;;  %1694 = vmatpush.msra.mxu3 %v3215_v31  ;;  %v1613_v43 = vld [vmem:[%s1612_s11] sm:$0xf]  ;;  %v1716_v59 = vperm.slane %v4509_v54, 0  ;;  %s2725_s16 = sshll.u32 %s2978_s9, 1  ;;  %s2727_s30 = sshll.u32 %s1609_s28, 1 }
 0x27c   : > { %1632 = vmatpush.msra.mxu0 %v3162_v12  ;;  %1675 = vmatpush.msra.mxu2 %v3209_v28  ;;  %v1721_v63 = vrot.slane %v1613_v43, 2  ;;  %v4510_v57 = vld [vmem:[#allocation23_spill] sm:$0xff]  ;;  %s1757_s29 = scalar_lea.vmem [#allocation6], %s2725_s16  ;;  %s1760_s22 = scalar_lea.vmem [#allocation7], %s2727_s30 }
 0x27d   : > { %1652 = vmatpush.msra.mxu1 %v3167_v13  ;;  %1695 = vmatpush.msra.mxu3 %v3211_v29  ;;  %v1726_v0 = vperm.slane %v4510_v57, 0  ;;  %s1606_s9 = sadd.s32 1, %s2978_s9  }
 0x27e   : > { %1633 = vmatpush.msra.mxu0 %v3152_v10  ;;  %1676 = vmatpush.msra.mxu2 %v3205_v26  ;;  %v1617_v38 = vld [vmem:[%s1616_s4] sm:$0xf]  ;;  %p1603_p0 = scmp.ge.s32.totalorder %s1606_s9, 16  }
 0x27f   : > { %1653 = vmatpush.msra.mxu1 %v3157_v11  ;;  %1696 = vmatpush.msra.mxu3 %v3207_v27  ;;  %v1731_v19 = vrot.slane %v1617_v38, 2  ;;  %s2985_s23 = smov (%p1603_p0), 64   ;;  %vm1963_vm3 = vcmask (%p1603_p0), 1024   ;;  %s2986_s24 = smov (%p1603_p0), [#allocation12]  }
 0x280   : > { %1634 = vmatpush.msra.mxu0 %v3142_v8  ;;  %1677 = vmatpush.msra.mxu2 %v3201_v24 }
 0x281   : > { %1654 = vmatpush.msra.mxu1 %v3147_v9  ;;  %1697 = vmatpush.msra.mxu3 %v3203_v25 }
 0x282   : > { %1635 = vmatpush.msra.mxu0 %v3132_v6  ;;  %1678 = vmatpush.msra.mxu2 %v3197_v22  ;;  %v4102_v22 = vld [vmem:[%s4463_s15] ss:$0 sm:$0xff] (%p1603_p0)  ;;  %s2314_s15 = sshll.u32 (%p1603_p0), %s2986_s24, 4  ;;  %s2315_s15 = int_to_ptr.vmem [resolvable:$true] %s2314_s15 }
 0x283   : > { %1655 = vmatpush.msra.mxu1 %v3137_v7  ;;  %1698 = vmatpush.msra.mxu3 %v3199_v23 }
 0x284   : > { %1636 = vmatpush.msra.mxu0 %v3122_v4  ;;  %1679 = vmatpush.msra.mxu2 %v4502_v34 }
 0x285   : > { %1656 = vmatpush.msra.mxu1 %v4503_v62  ;;  %1699 = vmatpush.msra.mxu3 %v4504_v37 }
 0x286   : > { %1637 = vmatpush.msra.mxu0 %v4505_v20  ;;  %1680 = vmatpush.msra.mxu2 %v4506_v55 }
 0x287   : > { %2729 = vmatmul.msk.f32.vlgmr.msra.gmra.mxu0 %vm1618_vm0, %v2974_v61  ;;  %2731 = vmatmul.msk.f32.vlgmr.msra.gmra.mxu2 %vm1618_vm0, %v2970_v45 }
 0x288   : > { %1657 = vmatpush.msra.mxu1 %v4507_v40  ;;  %1700 = vmatpush.msra.mxu3 %v4508_v46 }
 0x289   : > { %2730 = vmatmul.msk.f32.vlgmr.msra.gmra.mxu1 %vm1618_vm0, %v2974_v61  ;;  %2732 = vmatmul.msk.f32.vlgmr.msra.gmra.mxu3 %vm1618_vm0, %v2970_v45 }
 0x304   : > { %v1639_v35 = vpop.f32.mrf.mxu0 }
 0x305   : > { %v1705_v49 = vadd.f32 %v1639_v35, %v1613_v43 }
 0x306   : > { %v1659_v3 = vpop.f32.mrf.mxu1 }
 0x307   : > { %v1706_v53 = vmul.f32 0.5, %v1705_v49  ;;  %v1718_v5 = vadd.f32 %v1716_v59, %v1659_v3 }
 0x309   : > { %2855 = vtanh.f32 %v1706_v53  ;;  %v4511_v53 = vmov (%p1603_p0), 0  }
 0x30a   : > { %v1682_v36 = vpop.f32.mrf.mxu2  ;;  %2865 = vset.pattern.permute.xlu0 (%p1603_p0), %v4511_v53  ;;  %2864 = vset.pattern.permute.xlu2 (%p1603_p0), %v4511_v53 }
 0x30b   : > { %v1710_v44 = vadd.f32 %v1682_v36, %v1617_v38  ;;  %2863 = vset.pattern.permute.xlu1 (%p1603_p0), %v4511_v53 }
 0x30c   : > { %v1702_v58 = vpop.f32.mrf.mxu3 }
 0x30d   : > { %v1711_v60 = vmul.f32 0.5, %v1710_v44  ;;  %v1728_v52 = vadd.f32 %v1726_v0, %v1702_v58 }
 0x30f   : > { %v2856_v21 = vpop.eup %2855  ;;  %2857 = vtanh.f32 %v1711_v60 }
 0x310   : > { %v1708_v56 = vadd.f32 1.0, %v2856_v21 }
 0x312   : > { %v1709_v50 = vmul.f32 0.5, %v1708_v56 }
 0x314   : > { %v1719_v1 = vmul.f32 %v1718_v5, %v1709_v50 }
 0x315   : > { %v2858_v18 = vpop.eup %2857 }
 0x316   : > { %v1713_v41 = vadd.f32 1.0, %v2858_v18  ;;  %v1723_v39 = vadd.f32 %v1721_v63, %v1719_v1 }
 0x318   : > { %v1714_v47 = vmul.f32 0.5, %v1713_v41  ;;  %2859 = vtanh.f32 %v1723_v39 }
 0x31a   : > { %v1729_v2 = vmul.f32 %v1728_v52, %v1714_v47 }
 0x31c   : > { %v1733_v48 = vadd.f32 %v1731_v19, %v1729_v2 }
 0x31e   : > { %v2860_v42 = vpop.eup %2859  ;;  %2861 = vtanh.f32 %v1733_v48 }
 0x31f   : > { %v1735_v51 = vsub.f32 %v2974_v61, %v2860_v42 }
 0x321   : > { %1737 = vrot.lane.b32.xlu0 %v1735_v51, %s2984_s12 }
 0x324   : > { %v2862_v34 = vpop.eup %2861 }
 0x325   : > { %v1746_v62 = vsub.f32 %v2970_v45, %v2862_v34 }
 0x329   : > { %1748 = vrot.lane.b32.xlu0 %v1746_v62, %s2984_s12 }
 0x393   : > { %v1738_v37 = vpop.permute.xlu0 %1737 }
 0x394   : > { %v1740_v20 = vmul.f32 %v1738_v37, %v1709_v50 }
 0x396   : > { %1742 = vrot.lane.b32.xlu1 %v1740_v20, %s2984_s12 }
 0x39b   : > { %v1749_v55 = vpop.permute.xlu0 %1748 }
 0x39c   : > { %v1751_v40 = vmul.f32 %v1749_v55, %v1714_v47 }
 0x39e   : > { %1753 = vrot.lane.b32.xlu1 %v1751_v40, %s2984_s12 }
 0x408   : > { %v1743_v46 = vpop.permute.xlu1 %1742 }
 0x409   : > { %v1745_v61 = vadd.f32 %v2860_v42, %v1743_v46  }
 0x40b   : > { %1759 = vst.msk [vmem:[%s1757_s29] sm:$0x3] %vm1758_vm1, %v1745_v61 }
 0x40f   :  { %1605 = sbr.rel (!%p1603_p0) target bundleno = 632 (0x278), region = 125 }
 0x410   : > { %v1754_v43 = vpop.permute.xlu1 %1753 }
 0x411   : > { %v1756_v45 = vadd.f32 %v2862_v34, %v1754_v43  }
 0x412   :  { %v1764_v16 = vld [vmem:[#allocation6 + $0x4] sm:$0x3] (%p1603_p0)  ;;  %v1762_v17 = vld [vmem:[#allocation6] sm:$0x3] (%p1603_p0)  ;;  %v1766_v26 = vld [vmem:[#allocation6 + $0x8] sm:$0x3] (%p1603_p0) }
 0x413   : > { %1761 = vst.msk [vmem:[%s1760_s22] sm:$0x3] %vm1758_vm1, %v1756_v45  ;;  %v1763_v45 = vld [vmem:[#allocation6 + $0x2] sm:$0x3] (%p1603_p0)  ;;  %v1765_v59 = vld [vmem:[#allocation6 + $0x6] sm:$0x3] (%p1603_p0) }
 0x414   :  { %v1769_v57 = vld [vmem:[#allocation6 + $0xe] sm:$0x3]  ;;  %v1768_v0 = vld [vmem:[#allocation6 + $0xc] sm:$0x3]  ;;  %v1767_v41 = vld [vmem:[#allocation6 + $0xa] sm:$0x3] }
 0x415   :  { %v1772_v62 = vld [vmem:[#allocation6 + $0x14] sm:$0x3]  ;;  %v1771_v37 = vld [vmem:[#allocation6 + $0x12] sm:$0x3]  ;;  %v1770_v46 = vld [vmem:[#allocation6 + $0x10] sm:$0x3] }
 0x41a   :  { %v1780_v35 = vld [vmem:[#allocation7 + $0x4] sm:$0x3]  ;;  %v1778_v49 = vld [vmem:[#allocation7] sm:$0x3]  ;;  %v1782_v38 = vld [vmem:[#allocation7 + $0x8] sm:$0x3] }
 0x41b   :  { %1814 = vrot.lane.b32.xlu1 %v1780_v35, %s2985_s23  ;;  %1810 = vrot.lane.b32.xlu0 %v1778_v49, %s2985_s23  ;;  %v1781_v61 = vld [vmem:[#allocation7 + $0x6] sm:$0x3]  ;;  %v1779_v36 = vld [vmem:[#allocation7 + $0x2] sm:$0x3]  ;;  %v1783_v4 = vld [vmem:[#allocation7 + $0xa] sm:$0x3] }
 0x41c   :  { %1818 = vrot.lane.b32.xlu2 %v1782_v38, %s2985_s23  ;;  %v1785_v6 = vld [vmem:[#allocation7 + $0xe] sm:$0x3]  ;;  %v1784_v7 = vld [vmem:[#allocation7 + $0xc] sm:$0x3]  ;;  %v1786_v8 = vld [vmem:[#allocation7 + $0x10] sm:$0x3] }
 0x41d   :  { %v1788_v9 = vld [vmem:[#allocation7 + $0x14] sm:$0x3]  ;;  %v1787_v10 = vld [vmem:[#allocation7 + $0x12] sm:$0x3]  ;;  %v1789_v11 = vld [vmem:[#allocation7 + $0x16] sm:$0x3] }
 0x41e   :  { %v1791_v12 = vld [vmem:[#allocation7 + $0x1a] sm:$0x3]  ;;  %v1790_v13 = vld [vmem:[#allocation7 + $0x18] sm:$0x3]  ;;  %v1792_v14 = vld [vmem:[#allocation7 + $0x1c] sm:$0x3] }
 0x41f   :  { %v1793_v15 = vld [vmem:[#allocation7 + $0x1e] sm:$0x3] }
 0x423   :  { %1816 = vrot.lane.b32.xlu1 %v1781_v61, %s2985_s23  ;;  %1812 = vrot.lane.b32.xlu0 %v1779_v36, %s2985_s23 }
 0x424   :  { %1820 = vrot.lane.b32.xlu2 %v1783_v4, %s2985_s23 }
 0x42b   :  { %1824 = vrot.lane.b32.xlu1 %v1785_v6, %s2985_s23  ;;  %1822 = vrot.lane.b32.xlu0 %v1784_v7, %s2985_s23  ;;  %v1775_v6 = vld [vmem:[#allocation6 + $0x1a] sm:$0x3]  ;;  %v1774_v7 = vld [vmem:[#allocation6 + $0x18] sm:$0x3] }
 0x42c   :  { %1826 = vrot.lane.b32.xlu2 %v1786_v8, %s2985_s23 }
 0x433   :  { %1830 = vrot.lane.b32.xlu1 %v1788_v9, %s2985_s23  ;;  %1828 = vrot.lane.b32.xlu0 %v1787_v10, %s2985_s23 }
 0x434   :  { %1832 = vrot.lane.b32.xlu2 %v1789_v11, %s2985_s23 }
 0x43b   :  { %1836 = vrot.lane.b32.xlu1 %v1791_v12, %s2985_s23  ;;  %1834 = vrot.lane.b32.xlu0 %v1790_v13, %s2985_s23  ;;  %v1773_v12 = vld [vmem:[#allocation6 + $0x16] sm:$0x3] }
 0x43c   :  { %1838 = vrot.lane.b32.xlu2 %v1792_v14, %s2985_s23 }
 0x443   :  { %1840 = vrot.lane.b32.xlu0 %v1793_v15, %s2985_s23 }
 0x476   :  { %v1819_v23 = vpop.permute.xlu2 %1818 }
 0x477   :  { %v4115_v31 = vsel %vm1618_vm0, %v1766_v26, %v1819_v23  ;;  %v1777_v26 = vld [vmem:[#allocation6 + $0x1e] sm:$0x3] }
 0x478   :  { %v1883_v44 = vmul.f32 %v4102_v22, %v4115_v31 }
 0x47a   :  { %v1907_v56 = vsel %vm100_vm2, %v1883_v44, 0.0 }
 0x47e   :  { %v1821_v5 = vpop.permute.xlu2 %1820 }
 0x47f   :  { %v4145_v48 = vsel %vm1618_vm0, %v1767_v41, %v1821_v5 }
 0x480   :  { %v1884_v20 = vmul.f32 %v4102_v22, %v4145_v48 }
 0x482   :  { %v1910_v49 = vsel %vm100_vm2, %v1884_v20, 0.0 }
 0x486   :  { %v1827_v34 = vpop.permute.xlu2 %1826 }
 0x487   :  { %v4163_v61 = vsel %vm1618_vm0, %v1770_v46, %v1827_v34 }
 0x488   :  { %v1887_v8 = vmul.f32 %v4102_v22, %v4163_v61 }
 0x48a   :  { %v1919_v15 = vsel %vm100_vm2, %v1887_v8, 0.0 }
 0x48d   :  { %v1815_v24 = vpop.permute.xlu1 %1814  ;;  %v1811_v25 = vpop.permute.xlu0 %1810 }
 0x48e   :  { %v4105_v27 = vsel %vm1618_vm0, %v1764_v16, %v1815_v24  ;;  %v4108_v28 = vsel %vm1618_vm0, %v1762_v17, %v1811_v25  ;;  %v1833_v9 = vpop.permute.xlu2 %1832 }
 0x48f   :  { %v1879_v29 = vmul.f32 %v4102_v22, %v4108_v28  ;;  %v1881_v30 = vmul.f32 %v4102_v22, %v4105_v27  ;;  %v4181_v23 = vsel %vm1618_vm0, %v1773_v12, %v1833_v9 }
 0x491   :  { %v1895_v32 = vsel %vm100_vm2, %v1879_v29, 0.0  ;;  %v1901_v33 = vsel %vm100_vm2, %v1881_v30, 0.0  ;;  %v1890_v29 = vmul.f32 %v4102_v22, %v4181_v23 }
 0x492   :  { %1896 = vadd.xlane.f32.xlu1 %v1895_v32  ;;  %1902 = vadd.xlane.f32.xlu0 %v1901_v33  ;;  %v1776_v33 = vld [vmem:[#allocation6 + $0x1c] sm:$0x3] }
 0x493   :  { %v1928_v44 = vsel %vm100_vm2, %v1890_v29, 0.0 }
 0x495   :  { %v1817_v54 = vpop.permute.xlu1 %1816  ;;  %v1813_v60 = vpop.permute.xlu0 %1812 }
 0x496   :  { %v4122_v3 = vsel %vm1618_vm0, %v1763_v45, %v1813_v60  ;;  %v4128_v50 = vsel %vm1618_vm0, %v1765_v59, %v1817_v54  ;;  %v1839_v32 = vpop.permute.xlu2 %1838 }
 0x497   :  { %v1880_v21 = vmul.f32 %v4102_v22, %v4122_v3  ;;  %v1882_v58 = vmul.f32 %v4102_v22, %v4128_v50  ;;  %v4194_v59 = vsel %vm1618_vm0, %v1776_v33, %v1839_v32 }
 0x499   :  { %v1898_v63 = vsel %vm100_vm2, %v1880_v21, 0.0  ;;  %v1904_v19 = vsel %vm100_vm2, %v1882_v58, 0.0  ;;  %v1893_v21 = vmul.f32 %v4102_v22, %v4194_v59 }
 0x49a   :  { %1899 = vadd.xlane.f32.xlu2 %v1898_v63  ;;  %1908 = vadd.xlane.f32.xlu1 %v1907_v56 }
 0x49b   :  { %v1937_v56 = vsel %vm100_vm2, %v1893_v21, 0.0 }
 0x49d   :  { %v1825_v1 = vpop.permute.xlu1 %1824  ;;  %v1823_v18 = vpop.permute.xlu0 %1822 }
 0x49e   :  { %v4134_v39 = vsel %vm1618_vm0, %v1769_v57, %v1825_v1  ;;  %v4137_v52 = vsel %vm1618_vm0, %v1768_v0, %v1823_v18 }
 0x49f   :  { %v1885_v47 = vmul.f32 %v4102_v22, %v4137_v52  ;;  %v1886_v2 = vmul.f32 %v4102_v22, %v4134_v39 }
 0x4a1   :  { %v1913_v42 = vsel %vm100_vm2, %v1885_v47, 0.0  ;;  %v1916_v51 = vsel %vm100_vm2, %v1886_v2, 0.0 }
 0x4a2   :  { %1914 = vadd.xlane.f32.xlu0 %v1913_v42  ;;  %1905 = vadd.xlane.f32.xlu2 %v1904_v19 }
 0x4a3   :  { %1917 = vadd.xlane.f32.xlu1 %v1916_v51  ;;  %v2867_v51 = vld [vmem:[#allocation8] ss:$0 sm:$0xff] }
 0x4a5   :  { %v1831_v55 = vpop.permute.xlu1 %1830  ;;  %v1829_v40 = vpop.permute.xlu0 %1828 }
 0x4a6   :  { %v4152_v43 = vsel %vm1618_vm0, %v1772_v62, %v1831_v55  ;;  %v4155_v35 = vsel %vm1618_vm0, %v1771_v37, %v1829_v40 }
 0x4a7   :  { %v1889_v53 = vmul.f32 %v4102_v22, %v4152_v43  ;;  %v1888_v38 = vmul.f32 %v4102_v22, %v4155_v35 }
 0x4a9   :  { %v1925_v36 = vsel %vm100_vm2, %v1889_v53, 0.0  ;;  %v1922_v4 = vsel %vm100_vm2, %v1888_v38, 0.0 }
 0x4aa   :  { %1911 = vadd.xlane.f32.xlu2 %v1910_v49  ;;  %1923 = vadd.xlane.f32.xlu0 %v1922_v4 }
 0x4ab   :  { %1926 = vadd.xlane.f32.xlu1 %v1925_v36 }
 0x4ad   :  { %v1837_v10 = vpop.permute.xlu1 %1836  ;;  %v1835_v11 = vpop.permute.xlu0 %1834 }
 0x4ae   :  { %v4170_v13 = vsel %vm1618_vm0, %v1775_v6, %v1837_v10  ;;  %v4173_v14 = vsel %vm1618_vm0, %v1774_v7, %v1835_v11 }
 0x4af   :  { %v1892_v16 = vmul.f32 %v4102_v22, %v4170_v13  ;;  %v1891_v17 = vmul.f32 %v4102_v22, %v4173_v14 }
 0x4b1   :  { %v1934_v24 = vsel %vm100_vm2, %v1892_v16, 0.0  ;;  %v1931_v25 = vsel %vm100_vm2, %v1891_v17, 0.0 }
 0x4b2   :  { %1920 = vadd.xlane.f32.xlu2 %v1919_v15  ;;  %1932 = vadd.xlane.f32.xlu0 %v1931_v25 }
 0x4b3   :  { %1935 = vadd.xlane.f32.xlu1 %v1934_v24 }
 0x4b5   :  { %v1841_v30 = vpop.permute.xlu0 %1840 }
 0x4b6   :  { %v4188_v45 = vsel %vm1618_vm0, %v1777_v26, %v1841_v30 }
 0x4b7   :  { %v1894_v54 = vmul.f32 %v4102_v22, %v4188_v45 }
 0x4b9   :  { %v1940_v60 = vsel %vm100_vm2, %v1894_v54, 0.0 }
 0x4ba   :  { %1929 = vadd.xlane.f32.xlu2 %v1928_v44  ;;  %1941 = vadd.xlane.f32.xlu0 %v1940_v60 }
 0x4c2   :  { %1938 = vadd.xlane.f32.xlu2 %v1937_v56 }
 0x505   :  { %v1897_v5 = vpop.xlane.xlu1 %1896  ;;  %v1903_v63 = vpop.xlane.xlu0 %1902 }
 0x506   :  { %v1947_v62 = vadd.f32 %v2867_v51, %v1897_v5  ;;  %v1949_v49 = vadd.f32 %v2867_v51, %v1903_v63 }
 0x508   :  { %v1964_v4 = vsel %vm1963_vm3, %v1947_v62, -inf  ;;  %v1966_v54 = vsel %vm1963_vm3, %v1949_v49, -inf }
 0x50d   :  { %v1900_v57 = vpop.xlane.xlu2 %1899  ;;  %v1909_v0 = vpop.xlane.xlu1 %1908 }
 0x50e   :  { %v4200_v34 = vadd.f32 %v2867_v51, %v1909_v0  ;;  %v1948_v40 = vadd.f32 %v2867_v51, %v1900_v57 }
 0x510   :  { %v1968_v53 = vsel %vm1963_vm3, %v4200_v34, -inf  ;;  %v1965_v17 = vsel %vm1963_vm3, %v1948_v40, -inf }
 0x511   :  { %v1969_v24 = vmax.f32 %v1964_v4, %v1968_v53 }
 0x515   :  { %v1915_v58 = vpop.xlane.xlu0 %1914  ;;  %v1906_v1 = vpop.xlane.xlu2 %1905 }
 0x516   :  { %v1918_v18 = vpop.xlane.xlu1 %1917  ;;  %v1950_v22 = vadd.f32 %v2867_v51, %v1906_v1  ;;  %v1953_v38 = vadd.f32 %v2867_v51, %v1915_v58 }
 0x517   :  { %v4202_v37 = vadd.f32 %v2867_v51, %v1918_v18 }
 0x518   :  { %v1967_v6 = vsel %vm1963_vm3, %v1950_v22, -inf  ;;  %v1972_v25 = vsel %vm1963_vm3, %v1953_v38, -inf }
 0x519   :  { %v1974_v7 = vsel %vm1963_vm3, %v4202_v37, -inf  ;;  %v1973_v5 = vmax.f32 %v1966_v54, %v1972_v25 }
 0x51a   :  { %v1975_v32 = vmax.f32 %v1967_v6, %v1974_v7 }
 0x51d   :  { %v1912_v41 = vpop.xlane.xlu2 %1911  ;;  %v1924_v47 = vpop.xlane.xlu0 %1923 }
 0x51e   :  { %v1927_v19 = vpop.xlane.xlu1 %1926  ;;  %v4204_v20 = vadd.f32 %v2867_v51, %v1912_v41  ;;  %v4216_v8 = vadd.f32 %v2867_v51, %v1924_v47 }
 0x51f   :  { %v4220_v12 = vadd.f32 %v2867_v51, %v1927_v19 }
 0x520   :  { %v1970_v11 = vsel %vm1963_vm3, %v4204_v20, -inf  ;;  %v1978_v21 = vsel %vm1963_vm3, %v4216_v8, -inf }
 0x521   :  { %v1971_v33 = vmax.f32 %v1965_v17, %v1970_v11  ;;  %v1980_v60 = vsel %vm1963_vm3, %v4220_v12, -inf }
 0x522   :  { %v1981_v18 = vmax.f32 %v1973_v5, %v1980_v60 }
 0x523   :  { %v1979_v41 = vmax.f32 %v1971_v33, %v1978_v21 }
 0x525   :  { %v1921_v2 = vpop.xlane.xlu2 %1920  ;;  %v1933_v42 = vpop.xlane.xlu0 %1932 }
 0x526   :  { %v4206_v55 = vadd.f32 %v2867_v51, %v1921_v2  ;;  %v1936_v9 = vpop.xlane.xlu1 %1935  ;;  %v4224_v16 = vadd.f32 %v2867_v51, %v1933_v42 }
 0x527   :  { %v4228_v26 = vadd.f32 %v2867_v51, %v1936_v9 }
 0x528   :  { %v1976_v15 = vsel %vm1963_vm3, %v4206_v55, -inf  ;;  %v1984_v56 = vsel %vm1963_vm3, %v4224_v16, -inf }
 0x529   :  { %v1977_v44 = vmax.f32 %v1969_v24, %v1976_v15  ;;  %v1986_v0 = vsel %vm1963_vm3, %v4228_v26, -inf }
 0x52a   :  { %v1987_v2 = vmax.f32 %v1979_v41, %v1986_v0 }
 0x52b   :  { %v1985_v47 = vmax.f32 %v1977_v44, %v1984_v56 }
 0x52d   :  { %v1930_v46 = vpop.xlane.xlu2 %1929  ;;  %v1942_v10 = vpop.xlane.xlu0 %1941  ;;  %v1992_v53 = vmax.f32 %v1985_v47, %v1987_v2 }
 0x52e   :  { %v4210_v36 = vadd.f32 %v2867_v51, %v1930_v46  ;;  %v4232_v30 = vadd.f32 %v2867_v51, %v1942_v10 }
 0x530   :  { %v1982_v29 = vsel %vm1963_vm3, %v4210_v36, -inf  ;;  %v1990_v58 = vsel %vm1963_vm3, %v4232_v30, -inf }
 0x531   :  { %v1983_v63 = vmax.f32 %v1975_v32, %v1982_v29 }
 0x533   :  { %v1991_v42 = vmax.f32 %v1983_v63, %v1990_v58 }
 0x535   :  { %v1939_v57 = vpop.xlane.xlu2 %1938 }
 0x536   :  { %v4245_v1 = vadd.f32 %v2867_v51, %v1939_v57 }
 0x538   :  { %v1988_v19 = vsel %vm1963_vm3, %v4245_v1, -inf }
 0x539   :  { %v1989_v46 = vmax.f32 %v1981_v18, %v1988_v19 }
 0x53b   :  { %v1993_v4 = vmax.f32 %v1989_v46, %v1991_v42 }
 0x53d   :  { %v4249_v6 = vmax.f32 %v1992_v53, %v1993_v4 }
 0x53f   :  { %v1995_v7 = vsub.f32 %v1947_v62, %v4249_v6  ;;  %v1996_v9 = vsub.f32 %v1948_v40, %v4249_v6  ;;  %v1997_v51 = vsub.f32 %v1949_v49, %v4249_v6  ;;  %v1998_v10 = vsub.f32 %v1950_v22, %v4249_v6 }
 0x540   :  { %v1999_v11 = vsub.f32 %v4200_v34, %v4249_v6  ;;  %v2000_v24 = vsub.f32 %v4204_v20, %v4249_v6  ;;  %v2001_v32 = vsub.f32 %v1953_v38, %v4249_v6  ;;  %v2002_v40 = vsub.f32 %v4202_v37, %v4249_v6 }
 0x541   :  { %v2011_v15 = vmul.f32 1.442695, %v1995_v7  ;;  %v2013_v17 = vmul.f32 1.442695, %v1996_v9  ;;  %v2015_v25 = vmul.f32 1.442695, %v1997_v51  ;;  %v2003_v34 = vsub.f32 %v4206_v55, %v4249_v6 }
 0x542   :  { %v2017_v29 = vmul.f32 1.442695, %v1998_v10  ;;  %v2019_v62 = vmul.f32 1.442695, %v1999_v11  ;;  %v2021_v22 = vmul.f32 1.442695, %v2000_v24  ;;  %v2004_v38 = vsub.f32 %v4216_v8, %v4249_v6 }
 0x543   :  { %2870 = vpow2.f32 %v2011_v15  ;;  %v2023_v49 = vmul.f32 1.442695, %v2001_v32  ;;  %v2025_v44 = vmul.f32 1.442695, %v2002_v40  ;;  %v2005_v21 = vsub.f32 %v4220_v12, %v4249_v6 }
 0x544   :  { %2872 = vpow2.f32 %v2013_v17  ;;  %v2027_v56 = vmul.f32 1.442695, %v2003_v34  ;;  %v2006_v57 = vsub.f32 %v4210_v36, %v4249_v6  ;;  %v2029_v0 = vmul.f32 1.442695, %v2004_v38 }
 0x545   :  { %2874 = vpow2.f32 %v2015_v25  ;;  %v2007_v12 = vsub.f32 %v4224_v16, %v4249_v6  ;;  %v2031_v47 = vmul.f32 1.442695, %v2005_v21  ;;  %v2008_v36 = vsub.f32 %v4228_v26, %v4249_v6 }
 0x546   :  { %2876 = vpow2.f32 %v2017_v29  ;;  %v2033_v46 = vmul.f32 1.442695, %v2006_v57  ;;  %v2009_v16 = vsub.f32 %v4245_v1, %v4249_v6  ;;  %v2010_v26 = vsub.f32 %v4232_v30, %v4249_v6 }
 0x547   :  { %2878 = vpow2.f32 %v2019_v62  ;;  %v2035_v9 = vmul.f32 1.442695, %v2007_v12  ;;  %v2037_v15 = vmul.f32 1.442695, %v2008_v36 }
 0x548   :  { %2880 = vpow2.f32 %v2021_v22  ;;  %v2039_v29 = vmul.f32 1.442695, %v2009_v16  ;;  %v2041_v40 = vmul.f32 1.442695, %v2010_v26 }
 0x549   :  { %v4264_v33 = vpop.eup %2870  ;;  %2882 = vpow2.f32 %v2023_v49 }
 0x54a   :  { %v4266_v20 = vpop.eup %2872  ;;  %v2043_v54 = vsel %vm1963_vm3, %v4264_v33, 0.0  ;;  %2884 = vpow2.f32 %v2025_v44 }
 0x54b   :  { %v4272_v37 = vpop.eup %2874  ;;  %v2044_v60 = vsel %vm1963_vm3, %v4266_v20, 0.0  ;;  %2886 = vpow2.f32 %v2027_v56 }
 0x54c   :  { %v4276_v55 = vpop.eup %2876  ;;  %v2045_v5 = vadd.f32 %v2044_v60, %v2043_v54  ;;  %v2046_v8 = vsel %vm1963_vm3, %v4272_v37, 0.0  ;;  %2888 = vpow2.f32 %v2029_v0 }
 0x54d   :  { %v4282_v63 = vpop.eup %2878  ;;  %v2048_v18 = vsel %vm1963_vm3, %v4276_v55, 0.0  ;;  %2890 = vpow2.f32 %v2031_v47 }
 0x54e   :  { %v2047_v58 = vadd.f32 %v2046_v8, %v2045_v5  ;;  %v4288_v41 = vpop.eup %2880  ;;  %v2050_v2 = vsel %vm1963_vm3, %v4282_v63, 0.0  ;;  %2892 = vpow2.f32 %v2033_v46 }
 0x54f   :  { %v4294_v42 = vpop.eup %2882  ;;  %v2052_v4 = vsel %vm1963_vm3, %v4288_v41, 0.0  ;;  %2894 = vpow2.f32 %v2035_v9 }
 0x550   :  { %v2049_v19 = vadd.f32 %v2048_v18, %v2047_v58  ;;  %v4300_v7 = vpop.eup %2884  ;;  %v2054_v10 = vsel %vm1963_vm3, %v4294_v42, 0.0  ;;  %2896 = vpow2.f32 %v2037_v15 }
 0x551   :  { %v4306_v11 = vpop.eup %2886  ;;  %v2056_v24 = vsel %vm1963_vm3, %v4300_v7, 0.0  ;;  %2898 = vpow2.f32 %v2039_v29 }
 0x552   :  { %v2051_v53 = vadd.f32 %v2050_v2, %v2049_v19  ;;  %v2889_v25 = vpop.eup %2888  ;;  %v2058_v32 = vsel %vm1963_vm3, %v4306_v11, 0.0  ;;  %2900 = vpow2.f32 %v2041_v40 }
 0x553   :  { %v4314_v62 = vpop.eup %2890  ;;  %v2060_v30 = vsel %vm1963_vm3, %v2889_v25, 0.0 }
 0x554   :  { %v2053_v51 = vadd.f32 %v2052_v4, %v2051_v53  ;;  %v2893_v6 = vpop.eup %2892  ;;  %v2062_v49 = vsel %vm1963_vm3, %v4314_v62, 0.0 }
 0x555   :  { %v2895_v38 = vpop.eup %2894  ;;  %v2064_v54 = vsel %vm1963_vm3, %v2893_v6, 0.0 }
 0x556   :  { %v2055_v17 = vadd.f32 %v2054_v10, %v2053_v51  ;;  %v2897_v60 = vpop.eup %2896  ;;  %v2066_v56 = vsel %vm1963_vm3, %v2895_v38, 0.0 }
 0x557   :  { %v2899_v5 = vpop.eup %2898  ;;  %v2068_v57 = vsel %vm1963_vm3, %v2897_v60, 0.0 }
 0x558   :  { %v2057_v1 = vadd.f32 %v2056_v24, %v2055_v17  ;;  %v2901_v0 = vpop.eup %2900  ;;  %v2070_v18 = vsel %vm1963_vm3, %v2899_v5, 0.0 }
 0x559   :  { %v2072_v47 = vsel %vm1963_vm3, %v2901_v0, 0.0 }
 0x55a   :  { %v2059_v22 = vadd.f32 %v2058_v32, %v2057_v1 }
 0x55c   :  { %v2061_v34 = vadd.f32 %v2060_v30, %v2059_v22 }
 0x55e   :  { %v2063_v44 = vadd.f32 %v2062_v49, %v2061_v34  ;;  %v2246_v34 = vld [vmem:[%s4465_s17 + $0x78] sm:$0xff] }
 0x55f   :  { %2251 = vmatpush.msra.mxu0 %v2246_v34  ;;  %v2242_v49 = vld [vmem:[%s4465_s17 + $0x58] sm:$0xff] }
 0x560   :  { %v2065_v21 = vadd.f32 %v2064_v54, %v2063_v44  ;;  %v2241_v44 = vld [vmem:[%s4465_s17 + $0x50] sm:$0xff]  ;;  %v2240_v54 = vld [vmem:[%s4465_s17 + $0x48] sm:$0xff] }
 0x562   :  { %v2067_v8 = vadd.f32 %v2066_v56, %v2065_v21 }
 0x564   :  { %v2069_v58 = vadd.f32 %v2068_v57, %v2067_v8  ;;  %v2238_v8 = vld [vmem:[%s4465_s17 + $0x38] sm:$0xff] }
 0x566   :  { %v2071_v12 = vadd.f32 %v2070_v18, %v2069_v58 }
 0x568   :  { %v2073_v19 = vadd.f32 %v2072_v47, %v2071_v12 }
 0x56a   :  { %2902 = vrcp.f32 %v2073_v19  ;;  %v2085_v53 = vand.u32 2147483648, %v2073_v19  ;;  %v2083_v16 = vand.u32 2147483647, %v2073_v19  ;;  %vm2079_vm5 = vweird.f32 %v2073_v19 }
 0x56c   :  { %v2086_v51 = vor.u32 1.1754944e-38, %v2085_v53  ;;  %vm2084_vm7 = vcmp.eq.f32.partialorder %v2083_v16, 8.507059e+37 }
 0x570   :  { %v2903_v2 = vpop.eup %2902 }
 0x571   :  { %v2075_v36 = vmul.f32 %v2903_v2, %v2073_v19  ;;  %vm2080_vm4 = vweird.f32 %v2903_v2  ;;  %v2236_v19 = vld [vmem:[%s4465_s17 + $0x28] sm:$0xff] }
 0x572   :  { %vm2081_vm6 = vmor %vm2079_vm5, %vm2080_vm4 }
 0x573   :  { %v2076_v46 = vsub.f32 1.0, %v2075_v36 }
 0x575   :  { %v2077_v4 = vmul.f32 %v2903_v2, %v2076_v46 }
 0x577   :  { %v2078_v9 = vadd.f32 %v2903_v2, %v2077_v4 }
 0x579   :  { %v2082_v10 = vsel %vm2081_vm6, %v2903_v2, %v2078_v9  ;;  %v2235_v2 = vld [vmem:[%s4465_s17 + $0x20] sm:$0xff]  ;;  %v2233_v9 = vld [vmem:[%s4465_s17 + $0x10] sm:$0xff] }
 0x57a   :  { %v2087_v26 = vsel %vm2084_vm7, %v2086_v51, %v2082_v10 }
 0x57b   :  { %v2090_v15 = vmul.f32 %v4272_v37, %v2087_v26  ;;  %v2089_v17 = vmul.f32 %v4266_v20, %v2087_v26  ;;  %v2088_v24 = vmul.f32 %v4264_v33, %v2087_v26  ;;  %v2097_v29 = vmul.f32 %v2889_v25, %v2087_v26 }
 0x57c   :  { %v2092_v1 = vmul.f32 %v4282_v63, %v2087_v26  ;;  %v2091_v32 = vmul.f32 %v4276_v55, %v2087_v26  ;;  %v2100_v40 = vmul.f32 %v2895_v38, %v2087_v26  ;;  %v2094_v22 = vmul.f32 %v4294_v42, %v2087_v26 }
 0x57d   :  { %2116 = vperm.xlu0 %2865, %v2090_v15   ;;  %2111 = vperm.xlu2 %2864, %v2089_v17   ;;  %v2093_v37 = vmul.f32 %v4288_v41, %v2087_v26  ;;  %v2103_v33 = vmul.f32 %v2901_v0, %v2087_v26  ;;  %v2096_v20 = vmul.f32 %v4306_v11, %v2087_v26  ;;  %v2244_v11 = vld [vmem:[%s4465_s17 + $0x68] sm:$0xff]  ;;  %v2279_v15 = vld [vmem:[%s4467_s19 + $0x38] sm:$0xff] }
 0x57e   :  { %2106 = vperm.xlu1 %2863, %v2088_v24   ;;  %v2095_v25 = vmul.f32 %v4300_v7, %v2087_v26  ;;  %v2099_v55 = vmul.f32 %v2893_v6, %v2087_v26  ;;  %v2098_v63 = vmul.f32 %v4314_v62, %v2087_v26  ;;  %v2102_v30 = vmul.f32 %v2899_v5, %v2087_v26  ;;  %v2245_v7 = vld [vmem:[%s4465_s17 + $0x70] sm:$0xff]  ;;  %v2243_v6 = vld [vmem:[%s4465_s17 + $0x60] sm:$0xff] }
 0x57f   :  { %v2101_v42 = vmul.f32 %v2897_v60, %v2087_v26  ;;  %2252 = vmatpush.msra.mxu0 %v2245_v7  ;;  %v2239_v5 = vld [vmem:[%s4465_s17 + $0x40] sm:$0xff]  ;;  %v2232_v26 = vld [vmem:[%s4465_s17 + $0x8] sm:$0xff]  ;;  %2295 = vmatpush.msra.mxu1 %v2279_v15 }
 0x581   :  { %2253 = vmatpush.msra.mxu0 %v2244_v11 }
 0x583   :  { %2254 = vmatpush.msra.mxu0 %v2243_v6 }
 0x585   :  { %2151 = vperm.xlu0 %2865, %v2097_v29   ;;  %2126 = vperm.xlu2 %2864, %v2092_v1   ;;  %v2231_v1 = vld [vmem:[%s4465_s17] sm:$0xff] }
 0x586   :  { %2121 = vperm.xlu1 %2863, %v2091_v32   ;;  %2255 = vmatpush.msra.mxu0 %v2242_v49  ;;  %v2277_v32 = vld [vmem:[%s4467_s19 + $0x28] sm:$0xff] }
 0x588   :  { %2256 = vmatpush.msra.mxu0 %v2241_v44 }
 0x58a   :  { %2257 = vmatpush.msra.mxu0 %v2240_v54 }
 0x58c   :  { %2258 = vmatpush.msra.mxu0 %v2239_v5 }
 0x58d   :  { %2166 = vperm.xlu0 %2865, %v2100_v40   ;;  %2136 = vperm.xlu2 %2864, %v2094_v22  }
 0x58e   :  { %2131 = vperm.xlu1 %2863, %v2093_v37   ;;  %2259 = vmatpush.msra.mxu0 %v2238_v8  ;;  %v2276_v37 = vld [vmem:[%s4467_s19 + $0x20] sm:$0xff] }
 0x595   :  { %2181 = vperm.xlu0 %2865, %v2103_v33   ;;  %2146 = vperm.xlu2 %2864, %v2096_v20   ;;  %v2275_v20 = vld [vmem:[%s4467_s19 + $0x18] sm:$0xff] }
 0x596   :  { %2141 = vperm.xlu1 %2863, %v2095_v25  }
 0x59d   :  { %2161 = vperm.xlu2 %2864, %v2099_v55  }
 0x59e   :  { %2156 = vperm.xlu1 %2863, %v2098_v63  }
 0x5a5   :  { %2176 = vperm.xlu2 %2864, %v2102_v30  }
 0x5a6   :  { %2171 = vperm.xlu1 %2863, %v2101_v42  }
 0x5d7   :  { %v2112_v41 = vpop.permute.xlu2 %2111 }
 0x5d8   :  { %v2185_v21 = vmul.f32 %v2112_v41, %v4122_v3 }
 0x5da   :  { %v2201_v3 = vsel %vm100_vm2, %v2185_v21, 0.0 }
 0x5df   :  { %v2127_v62 = vpop.permute.xlu2 %2126 }
 0x5e7   :  { %v2137_v0 = vpop.permute.xlu2 %2136 }
 0x5e8   :  { %v2190_v40 = vmul.f32 %v2137_v0, %v4137_v52 }
 0x5ea   :  { %v2211_v25 = vsel %vm100_vm2, %v2190_v40, 0.0 }
 0x5ef   :  { %v2117_v56 = vpop.permute.xlu0 %2116  ;;  %v2147_v10 = vpop.permute.xlu2 %2146 }
 0x5f0   :  { %v2107_v38 = vpop.permute.xlu1 %2106  ;;  %v2186_v18 = vmul.f32 %v2117_v56, %v4105_v27  ;;  %v2234_v27 = vld [vmem:[%s4465_s17 + $0x18] sm:$0xff]  ;;  %v2192_v55 = vmul.f32 %v2147_v10, %v4163_v61 }
 0x5f1   :  { %v2184_v60 = vmul.f32 %v2107_v38, %v4108_v28  ;;  %v2237_v28 = vld [vmem:[%s4465_s17 + $0x30] sm:$0xff] }
 0x5f2   :  { %2260 = vmatpush.msra.mxu0 %v2237_v28  ;;  %v2203_v36 = vsel %vm100_vm2, %v2186_v18, 0.0  ;;  %v2215_v34 = vsel %vm100_vm2, %v2192_v55, 0.0 }
 0x5f3   :  { %v2200_v57 = vsel %vm100_vm2, %v2184_v60, 0.0 }
 0x5f4   :  { %v2202_v47 = vadd.f32 %v2201_v3, %v2200_v57  ;;  %2261 = vmatpush.msra.mxu0 %v2236_v19  ;;  %v2274_v19 = vld [vmem:[%s4467_s19 + $0x10] sm:$0xff] }
 0x5f6   :  { %v2204_v53 = vadd.f32 %v2203_v36, %v2202_v47  ;;  %2262 = vmatpush.msra.mxu0 %v2235_v2 }
 0x5f7   :  { %v2162_v42 = vpop.permute.xlu2 %2161 }
 0x5f8   :  { %v2122_v58 = vpop.permute.xlu1 %2121  ;;  %2263 = vmatpush.msra.mxu0 %v2234_v27  ;;  %v2195_v61 = vmul.f32 %v2162_v42, %v4181_v23 }
 0x5f9   :  { %v2187_v12 = vmul.f32 %v2122_v58, %v4128_v50  ;;  %v2188_v50 = vmul.f32 %v2127_v62, %v4115_v31  ;;  %v2278_v31 = vld [vmem:[%s4467_s19 + $0x30] sm:$0xff] }
 0x5fa   :  { %2264 = vmatpush.msra.mxu0 %v2233_v9  ;;  %2296 = vmatpush.msra.mxu1 %v2278_v31  ;;  %v2221_v60 = vsel %vm100_vm2, %v2195_v61, 0.0 }
 0x5fb   :  { %v2205_v46 = vsel %vm100_vm2, %v2187_v12, 0.0  ;;  %v2207_v17 = vsel %vm100_vm2, %v2188_v50, 0.0 }
 0x5fc   :  { %v2206_v4 = vadd.f32 %v2205_v46, %v2204_v53  ;;  %2265 = vmatpush.msra.mxu0 %v2232_v26  ;;  %2297 = vmatpush.msra.mxu1 %v2277_v32  ;;  %v2869_v53 = vld [vmem:[%s4468_s20] ss:$0 sm:$0xff] }
 0x5fe   :  { %v2208_v29 = vadd.f32 %v2207_v17, %v2206_v4  ;;  %2266 = vmatpush.msra.mxu0 %v2231_v1  ;;  %2298 = vmatpush.msra.mxu1 %v2276_v37 }
 0x5ff   :  { %v2177_v56 = vpop.permute.xlu2 %2176 }
 0x600   :  { %v2132_v16 = vpop.permute.xlu1 %2131  ;;  %2299 = vmatpush.msra.mxu1 %v2275_v20  ;;  %v2198_v0 = vmul.f32 %v2177_v56, %v4194_v59  ;;  %v2868_v59 = vld [vmem:[%s4466_s18] ss:$0 sm:$0xff] }
 0x601   :  { %v2189_v51 = vmul.f32 %v2132_v16, %v4145_v48  ;;  %v2152_v48 = vpop.permute.xlu0 %2151 }
 0x602   :  { %v2193_v7 = vmul.f32 %v2152_v48, %v4155_v35  ;;  %v2227_v18 = vsel %vm100_vm2, %v2198_v0, 0.0  ;;  %2300 = vmatpush.msra.mxu1 %v2274_v19 }
 0x603   :  { %v2209_v24 = vsel %vm100_vm2, %v2189_v51, 0.0 }
 0x604   :  { %v2210_v22 = vadd.f32 %v2209_v24, %v2208_v29  ;;  %v2217_v49 = vsel %vm100_vm2, %v2193_v7, 0.0 }
 0x606   :  { %v2212_v63 = vadd.f32 %v2211_v25, %v2210_v22 }
 0x608   :  { %v2142_v33 = vpop.permute.xlu1 %2141 }
 0x609   :  { %v2191_v52 = vmul.f32 %v2142_v33, %v4134_v39  ;;  %v2167_v11 = vpop.permute.xlu0 %2166 }
 0x60a   :  { %v2196_v21 = vmul.f32 %v2167_v11, %v4173_v14 }
 0x60b   :  { %v2213_v30 = vsel %vm100_vm2, %v2191_v52, 0.0 }
 0x60c   :  { %v2214_v41 = vadd.f32 %v2213_v30, %v2212_v63  ;;  %v2223_v57 = vsel %vm100_vm2, %v2196_v21, 0.0 }
 0x60e   :  { %v2216_v62 = vadd.f32 %v2215_v34, %v2214_v41 }
 0x610   :  { %v2157_v6 = vpop.permute.xlu1 %2156  ;;  %v2218_v38 = vadd.f32 %v2217_v49, %v2216_v62 }
 0x611   :  { %v2194_v39 = vmul.f32 %v2157_v6, %v4152_v43  ;;  %v2182_v35 = vpop.permute.xlu0 %2181 }
 0x612   :  { %v2199_v43 = vmul.f32 %v2182_v35, %v4188_v45  ;;  %v2272_v45 = vld [vmem:[%s4467_s19] sm:$0xff] }
 0x613   :  { %v2219_v44 = vsel %vm100_vm2, %v2194_v39, 0.0 }
 0x614   :  { %v2220_v54 = vadd.f32 %v2219_v44, %v2218_v38  ;;  %v2229_v14 = vsel %vm100_vm2, %v2199_v43, 0.0 }
 0x616   :  { %v2222_v5 = vadd.f32 %v2221_v60, %v2220_v54 }
 0x618   :  { %v2172_v8 = vpop.permute.xlu1 %2171  ;;  %v2224_v58 = vadd.f32 %v2223_v57, %v2222_v5 }
 0x619   :  { %v2197_v23 = vmul.f32 %v2172_v8, %v4170_v13  ;;  %v2273_v13 = vld [vmem:[%s4467_s19 + $0x8] sm:$0xff]  ;;  %s2316_s19 = sshll.u32 %s4469_s21, 4  ;;  %s2317_s19 = int_to_ptr.hbm [resolvable:$true] %s2316_s19 }
 0x61a   :  { %2301 = vmatpush.msra.mxu1 %v2273_v13 }
 0x61b   :  { %v2225_v28 = vsel %vm100_vm2, %v2197_v23, 0.0  ;;  %vm2307_vm2 = vcmask 9216  }
 0x61c   :  { %v2226_v3 = vadd.f32 %v2225_v28, %v2224_v58  ;;  %2302 = vmatpush.msra.mxu1 %v2272_v45 }
 0x61e   :  { %v2228_v12 = vadd.f32 %v2227_v18, %v2226_v3 }
 0x620   :  { %v2230_v47 = vadd.f32 %v2229_v14, %v2228_v12 }
 0x622   :  { %2267 = vmatmul.f32.vlgmr.msra.gmra.mxu0 %v2230_v47 }
 0x69f   :  { %v2268_v2 = vpop.f32.mrf.mxu0 }
 0x6a0   :  { %v2269_v36 = vadd.f32 %v2868_v59, %v2268_v2 }
 0x6a2   :  { %v2271_v46 = vmax.f32 %v2269_v36, 0.0 }
 0x6a4   :  { %2733 = vmatmul.msk.f32.vlgmr.msra.gmra.mxu1 %vm1618_vm0, %v2271_v46 }
 0x721   :  { %v2304_v27 = vpop.f32.mrf.mxu1 }
 0x722   :  { %v2305_v50 = vadd.f32 %v2869_v53, %v2304_v27 }
 0x724   :  { %2308 = vst.msk [vmem:[#allocation12] sm:$0x3] %vm2307_vm2, %v2305_v50 }
 0x725   :  { %2319 = dma.vmem_to_hbm [thread:$0]  %s2315_s15, 32, %s2317_s19, [#allocation11]  }
 0x726   :  { %2966 = dma.done.wait [#allocation11], 32  }
 0x727   :  { %2967 = vsyncadd [#allocation11], 4294967264 }
 0x728   :  { %2324 = vsyncpa [#allocation10], 1 }
 0x729   :  { %2325 = vsyncpa [#allocation11], 1 }

</bundles_post_ra>
